<compile_context>
chip_gen: v5e
topology: v5e:2x2
jax: 0.10.0
libtpu: 0.0.40
codegen_flags: <defaults>
</compile_context>

<pallas_src>
import functools

import jax
import jax.numpy as jnp
from jax.experimental import pallas as pl
from jax.experimental.pallas import tpu as pltpu

EPS = 1e-5                      # torch.nn.LayerNorm default eps
BF16 = jnp.bfloat16
NAME_LST = ("diag", "proc", "med")


def _round_up(x, m):
    return ((x + m - 1) // m) * m


def _pick_vmem_limit():
    cap = 128 * 1024 * 1024
    try:
        cap = int(getattr(pltpu.get_tpu_info(), "vmem_capacity_bytes", cap))
    except Exception:
        pass
    # v7x: 64 MiB physical -> 32 MiB scoped; v5e/v6e: 128 MiB -> 64 MiB scoped.
    return max(32 * 1024 * 1024, min(96 * 1024 * 1024, cap // 2))


_VMEM_LIMIT = _pick_vmem_limit()


# --------------------------------------------------------------------------
# batched-matmul helpers (batch in the leading dim, f32 accumulation)
# --------------------------------------------------------------------------
def _bmm(a, b):
    """(B, M, K) @ (B, K, N) -> (B, M, N)."""
    return jax.lax.dot_general(a, b, (((2,), (1,)), ((0,), (0,))),
                               preferred_element_type=jnp.float32)


def _bmm_nt(a, b):
    """(B, M, K) @ (B, N, K)^T -> (B, M, N)."""
    return jax.lax.dot_general(a, b, (((2,), (2,)), ((0,), (0,))),
                               preferred_element_type=jnp.float32)


# --------------------------------------------------------------------------
# Kernel 1: fused embedding LayerNorm + Node2Edge attention pooling
#   grid = (modality, nv_tile) ; both axes "parallel"
# --------------------------------------------------------------------------
def _node2edge_kernel(emb_ref, g_ref, b_ref, kq_ref, wvo_ref, o_ref, *, n_heads):
    x = emb_ref[0].astype(jnp.float32)                       # (NVt, S, D)
    nvt, s, d = x.shape
    dh = d // n_heads

    # embedding LayerNorm (dropout = identity in eval mode)
    mu = jnp.mean(x, axis=-1, keepdims=True)
    var = jnp.mean(jnp.square(x - mu), axis=-1, keepdims=True)
    xn = (x - mu) * jax.lax.rsqrt(var + EPS) * g_ref[0] + b_ref[0]
    xnb = xn.astype(BF16)                                    # (NVt, S, D)

    # scores on the MXU: s[n,h,t] = <kq_h, xn[n,t,:]> / sqrt(dh)
    kqb = jnp.broadcast_to(kq_ref[0][None], (nvt, n_heads, d))   # (NVt, H, D) bf16
    sc = _bmm_nt(kqb, xnb) * (1.0 / (dh ** 0.5))                 # (NVt, H, S)
    m_ = jnp.max(sc, axis=-1, keepdims=True)
    e_ = jnp.exp(sc - m_)
    a = e_ * pl.reciprocal(jnp.sum(e_, axis=-1, keepdims=True), approx=True)

    # token pooling on the MXU: pooled[n,h,:] = sum_t a[n,h,t] * xn[n,t,:]
    pooled = _bmm(a.astype(BF16), xnb)                        # (NVt, H, D) f32

    # fold heads through (Wv_h Wo_h): out = sum_h pooled[:,h,:] @ wvo[h]
    wvo = wvo_ref[0]                                          # (H, D, D) bf16
    out = jnp.dot(pooled[:, 0, :].astype(BF16), wvo[0],
                  preferred_element_type=jnp.float32)
    for h in range(1, n_heads):
        out = out + jnp.dot(pooled[:, h, :].astype(BF16), wvo[h],
                            preferred_element_type=jnp.float32)
    o_ref[0] = out.astype(o_ref.dtype)                        # (NVt, D)


def _pick_nv_tile(nv, s, d):
    budget = max(8, _VMEM_LIMIT // (16 * s * d))              # rough rows-in-VMEM cap
    for cand in (512, 256, 128, 64, 32, 16, 8):
        if cand <= budget and nv > cand and nv % cand == 0:
            return cand
    return nv


def node2edge_fused(emb_all, ln_g, ln_b, kq, wvo, n_heads):
    m, nv, s, d = emb_all.shape
    nv_tile = _pick_nv_tile(nv, s, d)
    grid = (m, nv // nv_tile)
    return pl.pallas_call(
        functools.partial(_node2edge_kernel, n_heads=n_heads),
        grid=grid,
        in_specs=[
            pl.BlockSpec((1, nv_tile, s, d), lambda i, j: (i, j, 0, 0)),
            pl.BlockSpec((1, 1, d), lambda i, j: (i, 0, 0)),
            pl.BlockSpec((1, 1, d), lambda i, j: (i, 0, 0)),
            pl.BlockSpec((1,) + kq.shape[1:], lambda i, j: (i, 0, 0)),
            pl.BlockSpec((1,) + wvo.shape[1:], lambda i, j: (i, 0, 0, 0)),
        ],
        out_specs=pl.BlockSpec((1, nv_tile, d), lambda i, j: (i, j, 0)),
        out_shape=jax.ShapeDtypeStruct((m, nv, d), jnp.float32),
        compiler_params=pltpu.CompilerParams(
            dimension_semantics=("parallel", "parallel"),
            vmem_limit_bytes=_VMEM_LIMIT),
    )(emb_all, ln_g, ln_b, kq, wvo)


# --------------------------------------------------------------------------
# Kernel 2: fused decoder tail
#   streaming EHR-memory cross-attn -> 3x masked self-attn -> gate fusion ->
#   top-k MoE -> fusion LayerNorm (lane-padded) -> DDI loss
# --------------------------------------------------------------------------
def _tail_kernel(visit_ref, med_hist_ref, mask_ref, edp_ref, em_ref,
                 mem_wq_ref, mem_wk_ref, mem_wv_ref, mem_wo_ref,
                 ctx_wq_ref, ctx_wk_ref, ctx_wv_ref, ctx_wo_ref,
                 gate_w_ref, gate_b_ref,
                 moe_wg_ref, moe_we_ref, moe_be_ref,
                 ln_g_ref, ln_b_ref, ddi_ref,
                 out_ref, moe_loss_ref, ddi_loss_ref,
                 m_scr, l_scr, acc_scr, qm_scr,
                 *, n_heads, n_experts, experts_k, med_size,
                 n_edges_real, n_edges_pad):
    c = pl.program_id(0)
    nc = pl.num_programs(0)
    t, d = visit_ref.shape
    h = n_heads
    dh = d // h
    eb = edp_ref.shape[0]
    scale = 1.0 / (dh ** 0.5)

    @pl.when(c == 0)
    def _init():
        m_scr[...] = jnp.full(m_scr.shape, -jnp.inf, jnp.float32)
        l_scr[...] = jnp.zeros(l_scr.shape, jnp.float32)
        acc_scr[...] = jnp.zeros(acc_scr.shape, jnp.float32)
        # chunk-invariant query projection, computed once (head-major columns)
        qw = jnp.dot(visit_ref[...].astype(BF16), mem_wq_ref[...],
                     preferred_element_type=jnp.float32)        # (T, D)
        qwb = qw.astype(BF16)
        for i in range(h):
            qm_scr[i] = qwb[:, i * dh:(i + 1) * dh]

    # ---- streaming EHR-memory cross-attention over this edge chunk ----------
    kc_w = jnp.dot(edp_ref[...], mem_wk_ref[...],
                   preferred_element_type=jnp.float32).astype(BF16)   # (EB, D)
    vc_w = jnp.dot(em_ref[...], mem_wv_ref[...],
                   preferred_element_type=jnp.float32).astype(BF16)   # (EB, D)
    kc = jnp.stack([kc_w[:, i * dh:(i + 1) * dh] for i in range(h)], 0)  # (H,EB,dh)
    vc = jnp.stack([vc_w[:, i * dh:(i + 1) * dh] for i in range(h)], 0)
    qm = qm_scr[...]                                                      # (H,T,dh)

    s = _bmm_nt(qm, kc) * scale                                           # (H,T,EB)
    if n_edges_pad != n_edges_real:      # mask padded edge columns (tail chunk)
        eidx = c * eb + jax.lax.broadcasted_iota(jnp.int32, (1, 1, eb), 2)
        s = jnp.where(eidx < n_edges_real, s, -jnp.inf)

    m_prev = m_scr[...]
    m_new = jnp.maximum(m_prev, jnp.max(s, axis=-1, keepdims=True))
    alpha = jnp.exp(m_prev - m_new)
    p = jnp.exp(s - m_new)
    l_scr[...] = alpha * l_scr[...] + jnp.sum(p, axis=-1, keepdims=True)
    acc_scr[...] = alpha * acc_scr[...] + _bmm(p.astype(BF16), vc)
    m_scr[...] = m_new

    @pl.when(c == nc - 1)
    def _finish():
        # finalize cross-attention; concat heads over lanes -> one K=D matmul
        inv_l = pl.reciprocal(l_scr[...], approx=True)
        ctx_h = acc_scr[...] * inv_l                                      # (H,T,dh)
        ctx_mem = jnp.concatenate([ctx_h[i] for i in range(h)], axis=-1)  # (T,D)
        visit_mem = jnp.dot(ctx_mem.astype(BF16), mem_wo_ref[...],
                            preferred_element_type=jnp.float32)           # (T,D)

        visit = visit_ref[...].astype(jnp.float32)
        med_hist = med_hist_ref[...].astype(jnp.float32)
        mask = mask_ref[...].astype(jnp.float32)                          # (T,T)

        # ---- the three masked history self-attentions -----------------------
        streams = jnp.stack([visit, visit_mem, med_hist], axis=0)         # (3,T,D)
        xs = streams.astype(BF16)
        q = _bmm(xs, ctx_wq_ref[...])                                     # (3,T,D)
        k = _bmm(xs, ctx_wk_ref[...])
        v = _bmm(xs, ctx_wv_ref[...])
        qb, kb, vb = q.astype(BF16), k.astype(BF16), v.astype(BF16)
        ctx_parts = []
        for i in range(h):
            sl0, sl1 = i * dh, (i + 1) * dh
            sc = _bmm_nt(qb[:, :, sl0:sl1], kb[:, :, sl0:sl1]) * scale + mask[None]
            smax = jnp.max(sc, axis=-1, keepdims=True)
            pc = jnp.exp(sc - smax)
            pc = pc * pl.reciprocal(jnp.sum(pc, axis=-1, keepdims=True),
                                    approx=True)
            ctx_parts.append(_bmm(pc.astype(BF16), vb[:, :, sl0:sl1]))    # (3,T,dh)
        ctx = jnp.concatenate(ctx_parts, axis=-1)                         # (3,T,D)
        yo = _bmm(ctx.astype(BF16), ctx_wo_ref[...])                      # (3,T,D)
        dp_ctx, mem_ctx, med_ctx = yo[0], yo[1], yo[2]

        # ---- gated fusion of the three context streams ([dp|mem|med] layout)
        cat = jnp.concatenate([dp_ctx, mem_ctx, med_ctx], axis=-1)        # (T,3D)
        g = jnp.dot(cat.astype(BF16), gate_w_ref[...],
                    preferred_element_type=jnp.float32) + gate_b_ref[...]
        g0, g1, g2 = g[:, :d], g[:, d:2 * d], g[:, 2 * d:]
        gm = jnp.maximum(jnp.maximum(g0, g1), g2)
        e0, e1, e2 = jnp.exp(g0 - gm), jnp.exp(g1 - gm), jnp.exp(g2 - gm)
        inv = pl.reciprocal(e0 + e1 + e2, approx=True)
        fusion = (e0 * dp_ctx + e1 * mem_ctx + e2 * med_ctx) * inv        # (T,D)

        # ---- top-k soft MoE predictor (gating + experts + load-balance loss)
        logits = jnp.dot(fusion, moe_wg_ref[...],
                         preferred_element_type=jnp.float32)              # (T,E)
        lmax = jnp.max(logits, axis=-1, keepdims=True)
        pe = jnp.exp(logits - lmax)
        probs = pe * pl.reciprocal(jnp.sum(pe, axis=-1, keepdims=True),
                                   approx=True)
        r = probs
        kth = jnp.max(r, axis=-1, keepdims=True)
        for _ in range(experts_k - 1):
            r = jnp.where(r >= kth, -jnp.inf, r)
            kth = jnp.max(r, axis=-1, keepdims=True)
        kmask = (probs >= kth).astype(jnp.float32)
        gated = probs * kmask
        topk_w = gated * pl.reciprocal(jnp.sum(gated, axis=-1, keepdims=True),
                                       approx=True)
        imp = jnp.mean(probs, axis=0, keepdims=True)
        load = jnp.mean(kmask, axis=0, keepdims=True)
        moe_loss_ref[...] = float(n_experts) * jnp.sum(imp * load, axis=-1,
                                                       keepdims=True)

        # all experts in ONE matmul: (T,D)@(D,E*mp); mix via lane slices
        mp = ln_g_ref.shape[-1]
        out_all = jnp.dot(fusion.astype(BF16), moe_we_ref[...],
                          preferred_element_type=jnp.float32) + moe_be_ref[...]
        acc = topk_w[:, 0:1] * out_all[:, 0:mp]
        for e in range(1, n_experts):
            acc = acc + topk_w[:, e:e + 1] * out_all[:, e * mp:(e + 1) * mp]

        # ---- fusion_pred LayerNorm over the real med columns (lane-padded)
        col = jax.lax.broadcasted_iota(jnp.int32, (1, mp), 1)
        cmask = (col < med_size).astype(jnp.float32)
        inv_n = 1.0 / float(med_size)
        mu = jnp.sum(acc * cmask, axis=-1, keepdims=True) * inv_n
        xc = (acc - mu) * cmask
        var = jnp.sum(xc * xc, axis=-1, keepdims=True) * inv_n
        out = (acc - mu) * jax.lax.rsqrt(var + EPS) * ln_g_ref[...] + ln_b_ref[...]
        out_ref[...] = out.astype(out_ref.dtype)

        # ---- DDI side loss (padded rows/cols of ddi_adj are zero -> exact)
        psig = jax.nn.sigmoid(out)
        ap = jnp.dot(psig.astype(BF16), ddi_ref[...],
                     preferred_element_type=jnp.float32)
        tot = jnp.sum(ap * psig, axis=-1, keepdims=True)                  # (T,1)
        ddi_loss_ref[...] = 0.0005 * jnp.sum(tot, axis=0, keepdims=True)  # (1,1)


def decoder_tail(visit, med_hist, mask, e_dp, e_m,
                 mem_wq, mem_wk, mem_wv, mem_wo,
                 ctx_wq, ctx_wk, ctx_wv, ctx_wo,
                 gate_w, gate_b, moe_wg, moe_we, moe_be, ln_g, ln_b, ddi_adj,
                 *, n_heads, n_experts, experts_k, med_size):
    t, d = visit.shape
    n_edges = e_dp.shape[0]
    h = n_heads
    dh = d // h
    mp = ln_g.shape[-1]

    # edge-chunk size: bounded VMEM streaming; pad so the pipeline always engages
    eb_cap = 256 if _VMEM_LIMIT <= 32 * 1024 * 1024 else 512
    eb = min(eb_cap, _round_up(n_edges, 8))
    n_edges_pad = _round_up(n_edges, eb)
    n_chunks = n_edges_pad // eb
    if n_edges_pad != n_edges:
        pad = n_edges_pad - n_edges
        e_dp = jnp.concatenate([e_dp, jnp.zeros((pad, d), e_dp.dtype)], axis=0)
        e_m = jnp.concatenate([e_m, jnp.zeros((pad, d), e_m.dtype)], axis=0)

    def full(a):
        return pl.BlockSpec(a.shape, lambda c: (0,) * a.ndim)

    in_specs = [
        full(visit), full(med_hist), full(mask),
        pl.BlockSpec((eb, d), lambda c: (c, 0)),
        pl.BlockSpec((eb, d), lambda c: (c, 0)),
        full(mem_wq), full(mem_wk), full(mem_wv), full(mem_wo),
        full(ctx_wq), full(ctx_wk), full(ctx_wv), full(ctx_wo),
        full(gate_w), full(gate_b),
        full(moe_wg), full(moe_we), full(moe_be),
        full(ln_g), full(ln_b), full(ddi_adj),
    ]
    out_shape = (jax.ShapeDtypeStruct((t, mp), jnp.float32),
                 jax.ShapeDtypeStruct((1, 1), jnp.float32),
                 jax.ShapeDtypeStruct((1, 1), jnp.float32))
    out_specs = [pl.BlockSpec((t, mp), lambda c: (0, 0)),
                 pl.BlockSpec((1, 1), lambda c: (0, 0)),
                 pl.BlockSpec((1, 1), lambda c: (0, 0))]
    kernel = functools.partial(_tail_kernel, n_heads=h, n_experts=n_experts,
                               experts_k=experts_k, med_size=med_size,
                               n_edges_real=n_edges, n_edges_pad=n_edges_pad)
    return pl.pallas_call(
        kernel,
        grid=(n_chunks,),
        in_specs=in_specs,
        out_specs=out_specs,
        out_shape=out_shape,
        scratch_shapes=[pltpu.VMEM((h, t, 1), jnp.float32),
                        pltpu.VMEM((h, t, 1), jnp.float32),
                        pltpu.VMEM((h, t, dh), jnp.float32),
                        pltpu.VMEM((h, t, dh), BF16)],
        compiler_params=pltpu.CompilerParams(
            dimension_semantics=("arbitrary",),
            vmem_limit_bytes=_VMEM_LIMIT),
    )(visit, med_hist, mask, e_dp, e_m,
      mem_wq, mem_wk, mem_wv, mem_wo, ctx_wq, ctx_wk, ctx_wv, ctx_wo,
      gate_w, gate_b, moe_wg, moe_we, moe_be, ln_g, ln_b, ddi_adj)


# --------------------------------------------------------------------------
# Parameter construction (deterministic, synthetic)
# --------------------------------------------------------------------------
def make_params(key, dim, n_heads, n_experts, n_ehr_edges, voc):
    keys = iter(jax.random.split(key, 64))

    def nrm(shape, scale=0.05):
        return (scale * jax.random.normal(next(keys), shape)).astype(jnp.float32)

    params = {}
    params["X_hat"] = {
        n: jnp.concatenate([nrm((voc[n], dim)), jnp.zeros((1, dim), jnp.float32)], 0)
        for n in NAME_LST
    }
    e_mem_raw = {n: nrm((n_ehr_edges, dim)) for n in NAME_LST}
    params["E_mem"] = {"dp": e_mem_raw["diag"] + e_mem_raw["proc"],
                       "m": e_mem_raw["med"]}
    params["embedding_norm"] = {
        n: {"g": jnp.ones((1, dim), jnp.float32), "b": jnp.zeros((1, dim), jnp.float32)}
        for n in NAME_LST
    }
    params["node2edge"] = {
        n: {"wk": nrm((dim, dim)), "wv": nrm((dim, dim)),
            "q": nrm((1, dim)), "wo": nrm((dim, dim))}
        for n in NAME_LST
    }

    def mha_w():
        return {"wq": nrm((dim, dim)), "wk": nrm((dim, dim)),
                "wv": nrm((dim, dim)), "wo": nrm((dim, dim))}

    params["visit_mem_attn"] = mha_w()
    params["dp_context_attn"] = mha_w()
    params["mem_context_attn"] = mha_w()
    params["med_context_attn"] = mha_w()
    params["gate_control"] = {"w": nrm((3 * dim, 3 * dim)),
                              "b": jnp.zeros((1, 3 * dim), jnp.float32)}
    med = voc["med"]
    params["moe"] = {"wg": nrm((dim, n_experts)),
                     "w_experts": nrm((n_experts, dim, med)),
                     "b_experts": jnp.zeros((n_experts, 1, med), jnp.float32)}
    params["fusion_pred_norm"] = {"g": jnp.ones((1, med), jnp.float32),
                                  "b": jnp.zeros((1, med), jnp.float32)}
    a = (jax.random.uniform(next(keys), (med, med)) > 0.7).astype(jnp.float32)
    params["ddi_adj"] = (a + a.T > 0).astype(jnp.float32) * (1.0 - jnp.eye(med))
    return params


# --------------------------------------------------------------------------
# Forward pass (eval mode)
# --------------------------------------------------------------------------
def hgt_decoder_forward(params, records, masks, true_idx, visit2edge_idx,
                        *, dim, n_heads, n_experts, experts_k):
    del visit2edge_idx                      # only used by the training-mode SSL loss
    d, h = dim, n_heads
    dh = d // h
    bsz, max_visit, max_size = records["med"].shape
    nv = bsz * max_visit

    # ---- weight preparation (pure JAX; algebraic fusions; bf16 at boundary) --
    kq_all, wvo_all, ln_g_all, ln_b_all, emb_all = [], [], [], [], []
    for n in NAME_LST:
        w = params["node2edge"][n]
        wk3 = w["wk"].reshape(d, h, dh)
        q3 = w["q"].reshape(h, dh)
        kq_all.append(jnp.einsum("dhe,he->hd", wk3, q3))                 # (H, D)
        wv3 = jnp.transpose(w["wv"].reshape(d, h, dh), (1, 0, 2))        # (H, D, dh)
        wvo_all.append(jnp.einsum("hde,heo->hdo", wv3, w["wo"].reshape(h, dh, d)))
        ln_g_all.append(params["embedding_norm"][n]["g"])
        ln_b_all.append(params["embedding_norm"][n]["b"])
        emb = jnp.take(params["X_hat"][n].astype(BF16), records[n], axis=0)
        emb_all.append(emb.reshape(nv, max_size, d))
    # TODO(synk): at production vocab sizes, fuse this gather into the Pallas
    # pipeline via scalar prefetch instead of the XLA jnp.take above.
    kq_all = jnp.stack(kq_all, 0).astype(BF16)                           # (3, H, D)
    wvo_all = jnp.stack(wvo_all, 0).astype(BF16)                         # (3, H, D, D)
    ln_g_all = jnp.stack(ln_g_all, 0)                                    # (3, 1, D)
    ln_b_all = jnp.stack(ln_b_all, 0)
    emb_all = jnp.stack(emb_all, 0)                                      # (3, NV, S, D) bf16

    # 1+2. fused embedding-LN + node->edge aggregation (one call, 3 modalities)
    visit_all = node2edge_fused(emb_all, ln_g_all, ln_b_all, kq_all, wvo_all, h)
    visit_rep = (visit_all[0] + visit_all[1])[true_idx]                  # (T, D)
    med_all = visit_all[2]                                               # (NV, D)

    # SSL loss (eval path)
    ssl_loss = jnp.mean(med_all[true_idx])

    # shifted medication history
    med_v = med_all.reshape(bsz, max_visit, d)
    med_hist = jnp.concatenate(
        [jnp.zeros((bsz, 1, d), med_v.dtype), med_v], axis=1)[:, :-1, :]
    med_hist = med_hist.reshape(nv, d)[true_idx]                         # (T, D)

    attn_mask = masks["attn_mask"][true_idx][:, true_idx]                # (T, T)

    mw = params["visit_mem_attn"]
    mem_wq = mw["wq"].astype(BF16)
    mem_wk = mw["wk"].astype(BF16)
    mem_wv = mw["wv"].astype(BF16)
    mem_wo = mw["wo"].astype(BF16)

    ctx_names = ("dp_context_attn", "mem_context_attn", "med_context_attn")
    ctx_wq = jnp.stack([params[n]["wq"] for n in ctx_names], 0).astype(BF16)
    ctx_wk = jnp.stack([params[n]["wk"] for n in ctx_names], 0).astype(BF16)
    ctx_wv = jnp.stack([params[n]["wv"] for n in ctx_names], 0).astype(BF16)
    ctx_wo = jnp.stack([params[n]["wo"] for n in ctx_names], 0).astype(BF16)

    gate_w = params["gate_control"]["w"].astype(BF16)
    gate_b = params["gate_control"]["b"]

    med_size = params["moe"]["w_experts"].shape[-1]
    mp = _round_up(med_size, 128)                                        # lane-dense
    we_pad = jnp.zeros((n_experts, d, mp), jnp.float32).at[:, :, :med_size].set(
        params["moe"]["w_experts"])
    moe_we = jnp.transpose(we_pad, (1, 0, 2)).reshape(d, n_experts * mp).astype(BF16)
    be_pad = jnp.zeros((n_experts, 1, mp), jnp.float32).at[:, :, :med_size].set(
        params["moe"]["b_experts"])
    moe_be = be_pad.reshape(1, n_experts * mp)
    ln_gp = jnp.zeros((1, mp), jnp.float32).at[:, :med_size].set(
        params["fusion_pred_norm"]["g"])
    ln_bp = jnp.zeros((1, mp), jnp.float32).at[:, :med_size].set(
        params["fusion_pred_norm"]["b"])
    ddi_p = jnp.zeros((mp, mp), jnp.float32).at[:med_size, :med_size].set(
        params["ddi_adj"]).astype(BF16)

    e_dp = params["E_mem"]["dp"].astype(BF16)
    e_m = params["E_mem"]["m"].astype(BF16)

    out_pad, moe_loss, ddi = decoder_tail(
        visit_rep, med_hist, attn_mask, e_dp, e_m,
        mem_wq, mem_wk, mem_wv, mem_wo, ctx_wq, ctx_wk, ctx_wv, ctx_wo,
        gate_w, gate_b, params["moe"]["wg"], moe_we, moe_be, ln_gp, ln_bp, ddi_p,
        n_heads=h, n_experts=n_experts, experts_k=experts_k, med_size=med_size)

    output = out_pad[:, :med_size]
    side_loss = {"ddi": ddi[0, 0], "ssl": ssl_loss, "moe": moe_loss[0, 0]}
    return output, side_loss


# --------------------------------------------------------------------------
# Demo
# --------------------------------------------------------------------------
if __name__ == "__main__":
    DIM, N_HEADS = 32, 4
    N_EXPERTS, EXPERTS_K = 4, 2
    N_EHR_EDGES = 16
    VOC = {"diag": 12, "proc": 10, "med": 14}
    BSZ, MAX_VISIT, MAX_SIZE = 2, 4, 8

    root = jax.random.PRNGKey(0)
    pkey, rkey = jax.random.split(root)
    params = make_params(pkey, DIM, N_HEADS, N_EXPERTS, N_EHR_EDGES, VOC)

    rkeys = jax.random.split(rkey, 4)
    records = {
        n: jax.random.randint(k, (BSZ, MAX_VISIT, MAX_SIZE), 0, VOC[n] + 1,
                              dtype=jnp.int32)
        for n, k in zip(NAME_LST, rkeys[:3])
    }

    # causal-within-patient additive attention mask over flattened visits
    flat = BSZ * MAX_VISIT
    pat = jnp.arange(flat) // MAX_VISIT
    pos = jnp.arange(flat) % MAX_VISIT
    allowed = (pat[:, None] == pat[None, :]) & (pos[None, :] <= pos[:, None])
    attn_mask = jnp.where(allowed, 0.0, -1e9).astype(jnp.float32)
    masks = {"attn_mask": attn_mask}

    true_visit_bool = jnp.array([1, 1, 1, 0, 1, 1, 1, 0], dtype=bool)
    true_idx = jnp.array([0, 1, 2, 4, 5, 6], dtype=jnp.int32)
    visit2edge_idx = jax.random.randint(rkeys[3], (int(true_visit_bool.sum()),),
                                        0, N_EHR_EDGES, dtype=jnp.int32)
    assert visit2edge_idx.shape[0] == int(true_visit_bool.sum())

    fwd = jax.jit(functools.partial(hgt_decoder_forward,
                                    dim=DIM, n_heads=N_HEADS,
                                    n_experts=N_EXPERTS, experts_k=EXPERTS_K))
    output, side_loss = fwd(params, records, masks, true_idx, visit2edge_idx)
    jax.block_until_ready(output)
    jax.block_until_ready(side_loss["ddi"])
    jax.block_until_ready(side_loss["moe"])

    assert output.shape == (true_idx.shape[0], VOC["med"])
    assert bool(jnp.isfinite(output).all())
    print("KERNEL_OK")
</pallas_src>

<mosaic_0001>
module attributes {stable_mosaic.version = 11 : i64} {
  func.func @_node2edge_kernel(%arg0: i32, %arg1: i32, %arg2: memref<1x8x8x32xbf16, #tpu.memory_space<vmem>>, %arg3: memref<1x1x32xf32, #tpu.memory_space<vmem>>, %arg4: memref<1x1x32xf32, #tpu.memory_space<vmem>>, %arg5: memref<1x4x32xbf16, #tpu.memory_space<vmem>>, %arg6: memref<1x4x32x32xbf16, #tpu.memory_space<vmem>>, %arg7: memref<1x8x32xf32, #tpu.memory_space<vmem>>) attributes {dimension_semantics = [#tpu.dimension_semantics<parallel>, #tpu.dimension_semantics<parallel>], iteration_bounds = array<i64: 3, 1>, scalar_prefetch = 0 : i64, scratch_operands = 0 : i64, tpu.core_type = #tpu.core_type<tc>, window_params = [{transform_indices = @transform_0, window_bounds = array<i64: 1, 8, 8, 32>}, {transform_indices = @transform_1, window_bounds = array<i64: 1, 1, 32>}, {transform_indices = @transform_2, window_bounds = array<i64: 1, 1, 32>}, {transform_indices = @transform_3, window_bounds = array<i64: 1, 4, 32>}, {transform_indices = @transform_4, window_bounds = array<i64: 1, 4, 32, 32>}, {transform_indices = @transform_5, window_bounds = array<i64: 1, 8, 32>}]} {
    %c0 = arith.constant 0 : index
    %c0_0 = arith.constant 0 : index
    %c0_1 = arith.constant 0 : index
    %c0_2 = arith.constant 0 : index
    %0 = vector.load %arg2[%c0, %c0_0, %c0_1, %c0_2] : memref<1x8x8x32xbf16, #tpu.memory_space<vmem>>, vector<1x8x8x32xbf16>
    %1 = vector.shape_cast %0 : vector<1x8x8x32xbf16> to vector<8x8x32xbf16>
    %2 = arith.extf %1 : vector<8x8x32xbf16> to vector<8x8x32xf32>
    %cst = arith.constant dense<0.000000e+00> : vector<8x8xf32>
    %3 = vector.multi_reduction <add>, %2, %cst [2] : vector<8x8x32xf32> to vector<8x8xf32>
    %4 = vector.shape_cast %3 : vector<8x8xf32> to vector<8x8x1xf32>
    %cst_3 = arith.constant 3.200000e+01 : f32
    %5 = vector.broadcast %cst_3 : f32 to vector<8x8x1xf32>
    %6 = arith.divf %4, %5 : vector<8x8x1xf32>
    %7 = vector.broadcast %6 : vector<8x8x1xf32> to vector<8x8x32xf32>
    %8 = arith.subf %2, %7 : vector<8x8x32xf32>
    %9 = arith.mulf %8, %8 : vector<8x8x32xf32>
    %cst_4 = arith.constant dense<0.000000e+00> : vector<8x8xf32>
    %10 = vector.multi_reduction <add>, %9, %cst_4 [2] : vector<8x8x32xf32> to vector<8x8xf32>
    %11 = vector.shape_cast %10 : vector<8x8xf32> to vector<8x8x1xf32>
    %cst_5 = arith.constant 3.200000e+01 : f32
    %12 = vector.broadcast %cst_5 : f32 to vector<8x8x1xf32>
    %13 = arith.divf %11, %12 : vector<8x8x1xf32>
    %14 = vector.broadcast %6 : vector<8x8x1xf32> to vector<8x8x32xf32>
    %15 = arith.subf %2, %14 : vector<8x8x32xf32>
    %cst_6 = arith.constant 9.99999974E-6 : f32
    %16 = vector.broadcast %cst_6 : f32 to vector<8x8x1xf32>
    %17 = arith.addf %13, %16 : vector<8x8x1xf32>
    %18 = math.rsqrt %17 : vector<8x8x1xf32>
    %19 = vector.broadcast %18 : vector<8x8x1xf32> to vector<8x8x32xf32>
    %20 = arith.mulf %15, %19 : vector<8x8x32xf32>
    %c0_7 = arith.constant 0 : index
    %c0_8 = arith.constant 0 : index
    %c0_9 = arith.constant 0 : index
    %21 = vector.load %arg3[%c0_7, %c0_8, %c0_9] : memref<1x1x32xf32, #tpu.memory_space<vmem>>, vector<1x1x32xf32>
    %22 = vector.shape_cast %21 : vector<1x1x32xf32> to vector<1x32xf32>
    %23 = vector.shape_cast %22 : vector<1x32xf32> to vector<1x1x32xf32>
    %24 = vector.broadcast %23 : vector<1x1x32xf32> to vector<8x8x32xf32>
    %25 = arith.mulf %20, %24 : vector<8x8x32xf32>
    %c0_10 = arith.constant 0 : index
    %c0_11 = arith.constant 0 : index
    %c0_12 = arith.constant 0 : index
    %26 = vector.load %arg4[%c0_10, %c0_11, %c0_12] : memref<1x1x32xf32, #tpu.memory_space<vmem>>, vector<1x1x32xf32>
    %27 = vector.shape_cast %26 : vector<1x1x32xf32> to vector<1x32xf32>
    %28 = vector.shape_cast %27 : vector<1x32xf32> to vector<1x1x32xf32>
    %29 = vector.broadcast %28 : vector<1x1x32xf32> to vector<8x8x32xf32>
    %30 = arith.addf %25, %29 : vector<8x8x32xf32>
    %31 = arith.truncf %30 : vector<8x8x32xf32> to vector<8x8x32xbf16>
    %c0_13 = arith.constant 0 : index
    %c0_14 = arith.constant 0 : index
    %c0_15 = arith.constant 0 : index
    %32 = vector.load %arg5[%c0_13, %c0_14, %c0_15] : memref<1x4x32xbf16, #tpu.memory_space<vmem>>, vector<1x4x32xbf16>
    %33 = vector.shape_cast %32 : vector<1x4x32xbf16> to vector<4x32xbf16>
    %34 = vector.shape_cast %33 : vector<4x32xbf16> to vector<1x4x32xbf16>
    %35 = vector.shape_cast %34 : vector<1x4x32xbf16> to vector<1x4x32xbf16>
    %36 = vector.broadcast %35 : vector<1x4x32xbf16> to vector<8x4x32xbf16>
    %cst_16 = arith.constant dense<0.000000e+00> : vector<8x4x8xf32>
    %37 = tpu.matmul %36, %31, %cst_16 {dimension_numbers = #tpu.dot_dimension_numbers<[2], [2], [1], [1], [0, 0, 0, 1, 1, 1], [0], [0]>} : vector<8x4x32xbf16>, vector<8x8x32xbf16>, vector<8x4x8xf32> -> vector<8x4x8xf32>
    %cst_17 = arith.constant 0.353553385 : f32
    %38 = vector.broadcast %cst_17 : f32 to vector<8x4x8xf32>
    %39 = arith.mulf %37, %38 : vector<8x4x8xf32>
    %cst_18 = arith.constant dense<0xFF800000> : vector<8x4xf32>
    %40 = vector.multi_reduction <maximumf>, %39, %cst_18 [2] : vector<8x4x8xf32> to vector<8x4xf32>
    %41 = vector.shape_cast %40 : vector<8x4xf32> to vector<8x4x1xf32>
    %42 = vector.broadcast %41 : vector<8x4x1xf32> to vector<8x4x8xf32>
    %43 = arith.subf %39, %42 : vector<8x4x8xf32>
    %44 = math.exp %43 : vector<8x4x8xf32>
    %cst_19 = arith.constant dense<0.000000e+00> : vector<8x4xf32>
    %45 = vector.multi_reduction <add>, %44, %cst_19 [2] : vector<8x4x8xf32> to vector<8x4xf32>
    %46 = vector.shape_cast %45 : vector<8x4xf32> to vector<8x4x1xf32>
    %47 = tpu.reciprocal %46 {approx = true} : vector<8x4x1xf32> -> vector<8x4x1xf32>
    %48 = vector.broadcast %47 : vector<8x4x1xf32> to vector<8x4x8xf32>
    %49 = arith.mulf %44, %48 : vector<8x4x8xf32>
    %50 = arith.truncf %49 : vector<8x4x8xf32> to vector<8x4x8xbf16>
    %cst_20 = arith.constant dense<0.000000e+00> : vector<8x4x32xf32>
    %51 = tpu.matmul %50, %31, %cst_20 {dimension_numbers = #tpu.dot_dimension_numbers<[2], [1], [1], [2], [0, 0, 0, 1, 1, 2], [0], [0]>} : vector<8x4x8xbf16>, vector<8x8x32xbf16>, vector<8x4x32xf32> -> vector<8x4x32xf32>
    %c0_21 = arith.constant 0 : index
    %c0_22 = arith.constant 0 : index
    %c0_23 = arith.constant 0 : index
    %c0_24 = arith.constant 0 : index
    %52 = vector.load %arg6[%c0_21, %c0_22, %c0_23, %c0_24] : memref<1x4x32x32xbf16, #tpu.memory_space<vmem>>, vector<1x4x32x32xbf16>
    %53 = vector.shape_cast %52 : vector<1x4x32x32xbf16> to vector<4x32x32xbf16>
    %54 = vector.extract_strided_slice %51 {offsets = [0, 0, 0], sizes = [8, 1, 32], strides = [1, 1, 1]} : vector<8x4x32xf32> to vector<8x1x32xf32>
    %55 = vector.shape_cast %54 : vector<8x1x32xf32> to vector<8x32xf32>
    %56 = arith.truncf %55 : vector<8x32xf32> to vector<8x32xbf16>
    %57 = vector.extract_strided_slice %53 {offsets = [0, 0, 0], sizes = [1, 32, 32], strides = [1, 1, 1]} : vector<4x32x32xbf16> to vector<1x32x32xbf16>
    %58 = vector.shape_cast %57 : vector<1x32x32xbf16> to vector<32x32xbf16>
    %cst_25 = arith.constant dense<0.000000e+00> : vector<8x32xf32>
    %59 = tpu.matmul %56, %58, %cst_25 {dimension_numbers = #tpu.dot_dimension_numbers<[1], [0], [0], [1], [0, 0, 1, 1], [], []>} : vector<8x32xbf16>, vector<32x32xbf16>, vector<8x32xf32> -> vector<8x32xf32>
    %60 = vector.extract_strided_slice %51 {offsets = [0, 1, 0], sizes = [8, 1, 32], strides = [1, 1, 1]} : vector<8x4x32xf32> to vector<8x1x32xf32>
    %61 = vector.shape_cast %60 : vector<8x1x32xf32> to vector<8x32xf32>
    %62 = arith.truncf %61 : vector<8x32xf32> to vector<8x32xbf16>
    %63 = vector.extract_strided_slice %53 {offsets = [1, 0, 0], sizes = [1, 32, 32], strides = [1, 1, 1]} : vector<4x32x32xbf16> to vector<1x32x32xbf16>
    %64 = vector.shape_cast %63 : vector<1x32x32xbf16> to vector<32x32xbf16>
    %cst_26 = arith.constant dense<0.000000e+00> : vector<8x32xf32>
    %65 = tpu.matmul %62, %64, %cst_26 {dimension_numbers = #tpu.dot_dimension_numbers<[1], [0], [0], [1], [0, 0, 1, 1], [], []>} : vector<8x32xbf16>, vector<32x32xbf16>, vector<8x32xf32> -> vector<8x32xf32>
    %66 = arith.addf %59, %65 : vector<8x32xf32>
    %67 = vector.extract_strided_slice %51 {offsets = [0, 2, 0], sizes = [8, 1, 32], strides = [1, 1, 1]} : vector<8x4x32xf32> to vector<8x1x32xf32>
    %68 = vector.shape_cast %67 : vector<8x1x32xf32> to vector<8x32xf32>
    %69 = arith.truncf %68 : vector<8x32xf32> to vector<8x32xbf16>
    %70 = vector.extract_strided_slice %53 {offsets = [2, 0, 0], sizes = [1, 32, 32], strides = [1, 1, 1]} : vector<4x32x32xbf16> to vector<1x32x32xbf16>
    %71 = vector.shape_cast %70 : vector<1x32x32xbf16> to vector<32x32xbf16>
    %cst_27 = arith.constant dense<0.000000e+00> : vector<8x32xf32>
    %72 = tpu.matmul %69, %71, %cst_27 {dimension_numbers = #tpu.dot_dimension_numbers<[1], [0], [0], [1], [0, 0, 1, 1], [], []>} : vector<8x32xbf16>, vector<32x32xbf16>, vector<8x32xf32> -> vector<8x32xf32>
    %73 = arith.addf %66, %72 : vector<8x32xf32>
    %74 = vector.extract_strided_slice %51 {offsets = [0, 3, 0], sizes = [8, 1, 32], strides = [1, 1, 1]} : vector<8x4x32xf32> to vector<8x1x32xf32>
    %75 = vector.shape_cast %74 : vector<8x1x32xf32> to vector<8x32xf32>
    %76 = arith.truncf %75 : vector<8x32xf32> to vector<8x32xbf16>
    %77 = vector.extract_strided_slice %53 {offsets = [3, 0, 0], sizes = [1, 32, 32], strides = [1, 1, 1]} : vector<4x32x32xbf16> to vector<1x32x32xbf16>
    %78 = vector.shape_cast %77 : vector<1x32x32xbf16> to vector<32x32xbf16>
    %cst_28 = arith.constant dense<0.000000e+00> : vector<8x32xf32>
    %79 = tpu.matmul %76, %78, %cst_28 {dimension_numbers = #tpu.dot_dimension_numbers<[1], [0], [0], [1], [0, 0, 1, 1], [], []>} : vector<8x32xbf16>, vector<32x32xbf16>, vector<8x32xf32> -> vector<8x32xf32>
    %80 = arith.addf %73, %79 : vector<8x32xf32>
    %c0_29 = arith.constant 0 : index
    %c0_30 = arith.constant 0 : index
    %c0_31 = arith.constant 0 : index
    %81 = vector.load %arg7[%c0_29, %c0_30, %c0_31] : memref<1x8x32xf32, #tpu.memory_space<vmem>>, vector<1x8x32xf32>
    %82 = vector.shape_cast %81 : vector<1x8x32xf32> to vector<8x32xf32>
    %83 = vector.shape_cast %80 : vector<8x32xf32> to vector<1x8x32xf32>
    tpu.vector_store %arg7[%c0_29, %c0_30, %c0_31], %83 {strides = array<i32>} : memref<1x8x32xf32, #tpu.memory_space<vmem>>, vector<1x8x32xf32>,
    return
  }
  func.func @transform_0(%arg0: i32, %arg1: i32) -> (i32, i32, i32, i32) {
    %c0_i32 = arith.constant 0 : i32
    %c0_i32_0 = arith.constant 0 : i32
    %c0_i32_1 = arith.constant 0 : i32
    return %arg0, %arg1, %c0_i32, %c0_i32_0 : i32, i32, i32, i32
  }
  func.func @transform_1(%arg0: i32, %arg1: i32) -> (i32, i32, i32) {
    %c0_i32 = arith.constant 0 : i32
    %c0_i32_0 = arith.constant 0 : i32
    %c0_i32_1 = arith.constant 0 : i32
    return %arg0, %c0_i32, %c0_i32_0 : i32, i32, i32
  }
  func.func @transform_2(%arg0: i32, %arg1: i32) -> (i32, i32, i32) {
    %c0_i32 = arith.constant 0 : i32
    %c0_i32_0 = arith.constant 0 : i32
    %c0_i32_1 = arith.constant 0 : i32
    return %arg0, %c0_i32, %c0_i32_0 : i32, i32, i32
  }
  func.func @transform_3(%arg0: i32, %arg1: i32) -> (i32, i32, i32) {
    %c0_i32 = arith.constant 0 : i32
    %c0_i32_0 = arith.constant 0 : i32
    %c0_i32_1 = arith.constant 0 : i32
    return %arg0, %c0_i32, %c0_i32_0 : i32, i32, i32
  }
  func.func @transform_4(%arg0: i32, %arg1: i32) -> (i32, i32, i32, i32) {
    %c0_i32 = arith.constant 0 : i32
    %c0_i32_0 = arith.constant 0 : i32
    %c0_i32_1 = arith.constant 0 : i32
    %c0_i32_2 = arith.constant 0 : i32
    return %arg0, %c0_i32, %c0_i32_0, %c0_i32_1 : i32, i32, i32, i32
  }
  func.func @transform_5(%arg0: i32, %arg1: i32) -> (i32, i32, i32) {
    %c0_i32 = arith.constant 0 : i32
    %c0_i32_0 = arith.constant 0 : i32
    return %arg0, %arg1, %c0_i32 : i32, i32, i32
  }
}

module attributes {stable_mosaic.version = 11 : i64} {
  func.func @_tail_kernel(%arg0: i32, %arg1: memref<6x32xf32, #tpu.memory_space<vmem>>, %arg2: memref<6x32xf32, #tpu.memory_space<vmem>>, %arg3: memref<6x6xf32, #tpu.memory_space<vmem>>, %arg4: memref<16x32xbf16, #tpu.memory_space<vmem>>, %arg5: memref<16x32xbf16, #tpu.memory_space<vmem>>, %arg6: memref<32x32xbf16, #tpu.memory_space<vmem>>, %arg7: memref<32x32xbf16, #tpu.memory_space<vmem>>, %arg8: memref<32x32xbf16, #tpu.memory_space<vmem>>, %arg9: memref<32x32xbf16, #tpu.memory_space<vmem>>, %arg10: memref<3x32x32xbf16, #tpu.memory_space<vmem>>, %arg11: memref<3x32x32xbf16, #tpu.memory_space<vmem>>, %arg12: memref<3x32x32xbf16, #tpu.memory_space<vmem>>, %arg13: memref<3x32x32xbf16, #tpu.memory_space<vmem>>, %arg14: memref<96x96xbf16, #tpu.memory_space<vmem>>, %arg15: memref<1x96xf32, #tpu.memory_space<vmem>>, %arg16: memref<32x4xf32, #tpu.memory_space<vmem>>, %arg17: memref<32x512xbf16, #tpu.memory_space<vmem>>, %arg18: memref<1x512xf32, #tpu.memory_space<vmem>>, %arg19: memref<1x128xf32, #tpu.memory_space<vmem>>, %arg20: memref<1x128xf32, #tpu.memory_space<vmem>>, %arg21: memref<128x128xbf16, #tpu.memory_space<vmem>>, %arg22: memref<6x128xf32, #tpu.memory_space<vmem>>, %arg23: memref<1x1xf32, #tpu.memory_space<vmem>>, %arg24: memref<1x1xf32, #tpu.memory_space<vmem>>, %arg25: memref<4x6x1xf32, #tpu.memory_space<vmem>>, %arg26: memref<4x6x1xf32, #tpu.memory_space<vmem>>, %arg27: memref<4x6x8xf32, #tpu.memory_space<vmem>>, %arg28: memref<4x6x8xbf16, #tpu.memory_space<vmem>>) attributes {dimension_semantics = [#tpu.dimension_semantics<arbitrary>], iteration_bounds = array<i64: 1>, scalar_prefetch = 0 : i64, scratch_operands = 4 : i64, tpu.core_type = #tpu.core_type<tc>, window_params = [{pipeline_mode = #tpu.pipeline_mode<synchronous>, transform_indices = @transform_0, window_bounds = array<i64: 6, 32>}, {pipeline_mode = #tpu.pipeline_mode<synchronous>, transform_indices = @transform_1, window_bounds = array<i64: 6, 32>}, {pipeline_mode = #tpu.pipeline_mode<synchronous>, transform_indices = @transform_2, window_bounds = array<i64: 6, 6>}, {transform_indices = @transform_3, window_bounds = array<i64: 16, 32>}, {transform_indices = @transform_4, window_bounds = array<i64: 16, 32>}, {pipeline_mode = #tpu.pipeline_mode<synchronous>, transform_indices = @transform_5, window_bounds = array<i64: 32, 32>}, {pipeline_mode = #tpu.pipeline_mode<synchronous>, transform_indices = @transform_6, window_bounds = array<i64: 32, 32>}, {pipeline_mode = #tpu.pipeline_mode<synchronous>, transform_indices = @transform_7, window_bounds = array<i64: 32, 32>}, {pipeline_mode = #tpu.pipeline_mode<synchronous>, transform_indices = @transform_8, window_bounds = array<i64: 32, 32>}, {pipeline_mode = #tpu.pipeline_mode<synchronous>, transform_indices = @transform_9, window_bounds = array<i64: 3, 32, 32>}, {pipeline_mode = #tpu.pipeline_mode<synchronous>, transform_indices = @transform_10, window_bounds = array<i64: 3, 32, 32>}, {pipeline_mode = #tpu.pipeline_mode<synchronous>, transform_indices = @transform_11, window_bounds = array<i64: 3, 32, 32>}, {pipeline_mode = #tpu.pipeline_mode<synchronous>, transform_indices = @transform_12, window_bounds = array<i64: 3, 32, 32>}, {pipeline_mode = #tpu.pipeline_mode<synchronous>, transform_indices = @transform_13, window_bounds = array<i64: 96, 96>}, {pipeline_mode = #tpu.pipeline_mode<synchronous>, transform_indices = @transform_14, window_bounds = array<i64: 1, 96>}, {pipeline_mode = #tpu.pipeline_mode<synchronous>, transform_indices = @transform_15, window_bounds = array<i64: 32, 4>}, {pipeline_mode = #tpu.pipeline_mode<synchronous>, transform_indices = @transform_16, window_bounds = array<i64: 32, 512>}, {pipeline_mode = #tpu.pipeline_mode<synchronous>, transform_indices = @transform_17, window_bounds = array<i64: 1, 512>}, {pipeline_mode = #tpu.pipeline_mode<synchronous>, transform_indices = @transform_18, window_bounds = array<i64: 1, 128>}, {pipeline_mode = #tpu.pipeline_mode<synchronous>, transform_indices = @transform_19, window_bounds = array<i64: 1, 128>}, {pipeline_mode = #tpu.pipeline_mode<synchronous>, transform_indices = @transform_20, window_bounds = array<i64: 128, 128>}, {pipeline_mode = #tpu.pipeline_mode<synchronous>, transform_indices = @transform_21, window_bounds = array<i64: 6, 128>}, {pipeline_mode = #tpu.pipeline_mode<synchronous>, transform_indices = @transform_22, window_bounds = array<i64: 1, 1>}, {pipeline_mode = #tpu.pipeline_mode<synchronous>, transform_indices = @transform_23, window_bounds = array<i64: 1, 1>}]} {
    %c0_i32 = arith.constant 0 : i32
    %0 = arith.cmpi eq, %arg0, %c0_i32 : i32
    %1 = arith.extui %0 : i1 to i32
    %c0_i32_0 = arith.constant 0 : i32
    %2 = arith.cmpi ne, %1, %c0_i32_0 : i32
    scf.if %2 {
      %cst_37 = arith.constant 0xFF800000 : f32
      %59 = vector.broadcast %cst_37 : f32 to vector<4x6x1xf32>
      %c0_38 = arith.constant 0 : index
      %c0_39 = arith.constant 0 : index
      %c0_40 = arith.constant 0 : index
      %60 = vector.load %arg25[%c0_38, %c0_39, %c0_40] : memref<4x6x1xf32, #tpu.memory_space<vmem>>, vector<4x6x1xf32>
      tpu.vector_store %arg25[%c0_38, %c0_39, %c0_40], %59 {strides = array<i32>} : memref<4x6x1xf32, #tpu.memory_space<vmem>>, vector<4x6x1xf32>,
      %cst_41 = arith.constant 0.000000e+00 : f32
      %61 = vector.broadcast %cst_41 : f32 to vector<4x6x1xf32>
      %c0_42 = arith.constant 0 : index
      %c0_43 = arith.constant 0 : index
      %c0_44 = arith.constant 0 : index
      %62 = vector.load %arg26[%c0_42, %c0_43, %c0_44] : memref<4x6x1xf32, #tpu.memory_space<vmem>>, vector<4x6x1xf32>
      tpu.vector_store %arg26[%c0_42, %c0_43, %c0_44], %61 {strides = array<i32>} : memref<4x6x1xf32, #tpu.memory_space<vmem>>, vector<4x6x1xf32>,
      %cst_45 = arith.constant 0.000000e+00 : f32
      %63 = vector.broadcast %cst_45 : f32 to vector<4x6x8xf32>
      %c0_46 = arith.constant 0 : index
      %c0_47 = arith.constant 0 : index
      %c0_48 = arith.constant 0 : index
      %64 = vector.load %arg27[%c0_46, %c0_47, %c0_48] : memref<4x6x8xf32, #tpu.memory_space<vmem>>, vector<4x6x8xf32>
      tpu.vector_store %arg27[%c0_46, %c0_47, %c0_48], %63 {strides = array<i32>} : memref<4x6x8xf32, #tpu.memory_space<vmem>>, vector<4x6x8xf32>,
      %c0_49 = arith.constant 0 : index
      %c0_50 = arith.constant 0 : index
      %65 = vector.load %arg1[%c0_49, %c0_50] : memref<6x32xf32, #tpu.memory_space<vmem>>, vector<6x32xf32>
      %66 = arith.truncf %65 : vector<6x32xf32> to vector<6x32xbf16>
      %c0_51 = arith.constant 0 : index
      %c0_52 = arith.constant 0 : index
      %67 = vector.load %arg6[%c0_51, %c0_52] : memref<32x32xbf16, #tpu.memory_space<vmem>>, vector<32x32xbf16>
      %cst_53 = arith.constant dense<0.000000e+00> : vector<6x32xf32>
      %68 = tpu.matmul %66, %67, %cst_53 {dimension_numbers = #tpu.dot_dimension_numbers<[1], [0], [0], [1], [0, 0, 1, 1], [], []>} : vector<6x32xbf16>, vector<32x32xbf16>, vector<6x32xf32> -> vector<6x32xf32>
      %69 = arith.truncf %68 : vector<6x32xf32> to vector<6x32xbf16>
      %70 = vector.extract_strided_slice %69 {offsets = [0, 0], sizes = [6, 8], strides = [1, 1]} : vector<6x32xbf16> to vector<6x8xbf16>
      %c0_54 = arith.constant 0 : index
      %c0_55 = arith.constant 0 : index
      %c0_56 = arith.constant 0 : index
      %71 = vector.load %arg28[%c0_54, %c0_55, %c0_56] : memref<4x6x8xbf16, #tpu.memory_space<vmem>>, vector<1x6x8xbf16>
      %72 = vector.shape_cast %71 : vector<1x6x8xbf16> to vector<6x8xbf16>
      %73 = vector.shape_cast %70 : vector<6x8xbf16> to vector<1x6x8xbf16>
      tpu.vector_store %arg28[%c0_54, %c0_55, %c0_56], %73 {strides = array<i32>} : memref<4x6x8xbf16, #tpu.memory_space<vmem>>, vector<1x6x8xbf16>,
      %74 = vector.extract_strided_slice %69 {offsets = [0, 8], sizes = [6, 8], strides = [1, 1]} : vector<6x32xbf16> to vector<6x8xbf16>
      %c1 = arith.constant 1 : index
      %c0_57 = arith.constant 0 : index
      %c0_58 = arith.constant 0 : index
      %75 = vector.load %arg28[%c1, %c0_57, %c0_58] : memref<4x6x8xbf16, #tpu.memory_space<vmem>>, vector<1x6x8xbf16>
      %76 = vector.shape_cast %75 : vector<1x6x8xbf16> to vector<6x8xbf16>
      %77 = vector.shape_cast %74 : vector<6x8xbf16> to vector<1x6x8xbf16>
      tpu.vector_store %arg28[%c1, %c0_57, %c0_58], %77 {strides = array<i32>} : memref<4x6x8xbf16, #tpu.memory_space<vmem>>, vector<1x6x8xbf16>,
      %78 = vector.extract_strided_slice %69 {offsets = [0, 16], sizes = [6, 8], strides = [1, 1]} : vector<6x32xbf16> to vector<6x8xbf16>
      %c2 = arith.constant 2 : index
      %c0_59 = arith.constant 0 : index
      %c0_60 = arith.constant 0 : index
      %79 = vector.load %arg28[%c2, %c0_59, %c0_60] : memref<4x6x8xbf16, #tpu.memory_space<vmem>>, vector<1x6x8xbf16>
      %80 = vector.shape_cast %79 : vector<1x6x8xbf16> to vector<6x8xbf16>
      %81 = vector.shape_cast %78 : vector<6x8xbf16> to vector<1x6x8xbf16>
      tpu.vector_store %arg28[%c2, %c0_59, %c0_60], %81 {strides = array<i32>} : memref<4x6x8xbf16, #tpu.memory_space<vmem>>, vector<1x6x8xbf16>,
      %82 = vector.extract_strided_slice %69 {offsets = [0, 24], sizes = [6, 8], strides = [1, 1]} : vector<6x32xbf16> to vector<6x8xbf16>
      %c3 = arith.constant 3 : index
      %c0_61 = arith.constant 0 : index
      %c0_62 = arith.constant 0 : index
      %83 = vector.load %arg28[%c3, %c0_61, %c0_62] : memref<4x6x8xbf16, #tpu.memory_space<vmem>>, vector<1x6x8xbf16>
      %84 = vector.shape_cast %83 : vector<1x6x8xbf16> to vector<6x8xbf16>
      %85 = vector.shape_cast %82 : vector<6x8xbf16> to vector<1x6x8xbf16>
      tpu.vector_store %arg28[%c3, %c0_61, %c0_62], %85 {strides = array<i32>} : memref<4x6x8xbf16, #tpu.memory_space<vmem>>, vector<1x6x8xbf16>,
    } else {
    }
    %c0 = arith.constant 0 : index
    %c0_1 = arith.constant 0 : index
    %3 = vector.load %arg4[%c0, %c0_1] : memref<16x32xbf16, #tpu.memory_space<vmem>>, vector<16x32xbf16>
    %c0_2 = arith.constant 0 : index
    %c0_3 = arith.constant 0 : index
    %4 = vector.load %arg7[%c0_2, %c0_3] : memref<32x32xbf16, #tpu.memory_space<vmem>>, vector<32x32xbf16>
    %cst = arith.constant dense<0.000000e+00> : vector<16x32xf32>
    %5 = tpu.matmul %3, %4, %cst {dimension_numbers = #tpu.dot_dimension_numbers<[1], [0], [0], [1], [0, 0, 1, 1], [], []>} : vector<16x32xbf16>, vector<32x32xbf16>, vector<16x32xf32> -> vector<16x32xf32>
    %6 = arith.truncf %5 : vector<16x32xf32> to vector<16x32xbf16>
    %c0_4 = arith.constant 0 : index
    %c0_5 = arith.constant 0 : index
    %7 = vector.load %arg5[%c0_4, %c0_5] : memref<16x32xbf16, #tpu.memory_space<vmem>>, vector<16x32xbf16>
    %c0_6 = arith.constant 0 : index
    %c0_7 = arith.constant 0 : index
    %8 = vector.load %arg8[%c0_6, %c0_7] : memref<32x32xbf16, #tpu.memory_space<vmem>>, vector<32x32xbf16>
    %cst_8 = arith.constant dense<0.000000e+00> : vector<16x32xf32>
    %9 = tpu.matmul %7, %8, %cst_8 {dimension_numbers = #tpu.dot_dimension_numbers<[1], [0], [0], [1], [0, 0, 1, 1], [], []>} : vector<16x32xbf16>, vector<32x32xbf16>, vector<16x32xf32> -> vector<16x32xf32>
    %10 = arith.truncf %9 : vector<16x32xf32> to vector<16x32xbf16>
    %11 = vector.extract_strided_slice %6 {offsets = [0, 0], sizes = [16, 8], strides = [1, 1]} : vector<16x32xbf16> to vector<16x8xbf16>
    %12 = vector.extract_strided_slice %6 {offsets = [0, 8], sizes = [16, 8], strides = [1, 1]} : vector<16x32xbf16> to vector<16x8xbf16>
    %13 = vector.extract_strided_slice %6 {offsets = [0, 16], sizes = [16, 8], strides = [1, 1]} : vector<16x32xbf16> to vector<16x8xbf16>
    %14 = vector.extract_strided_slice %6 {offsets = [0, 24], sizes = [16, 8], strides = [1, 1]} : vector<16x32xbf16> to vector<16x8xbf16>
    %15 = vector.shape_cast %11 : vector<16x8xbf16> to vector<1x16x8xbf16>
    %16 = vector.shape_cast %12 : vector<16x8xbf16> to vector<1x16x8xbf16>
    %17 = vector.shape_cast %13 : vector<16x8xbf16> to vector<1x16x8xbf16>
    %18 = vector.shape_cast %14 : vector<16x8xbf16> to vector<1x16x8xbf16>
    %19 = tpu.concatenate %15, %16, %17, %18 in 0 : vector<1x16x8xbf16>, vector<1x16x8xbf16>, vector<1x16x8xbf16>, vector<1x16x8xbf16> -> vector<4x16x8xbf16>
    %20 = vector.extract_strided_slice %10 {offsets = [0, 0], sizes = [16, 8], strides = [1, 1]} : vector<16x32xbf16> to vector<16x8xbf16>
    %21 = vector.extract_strided_slice %10 {offsets = [0, 8], sizes = [16, 8], strides = [1, 1]} : vector<16x32xbf16> to vector<16x8xbf16>
    %22 = vector.extract_strided_slice %10 {offsets = [0, 16], sizes = [16, 8], strides = [1, 1]} : vector<16x32xbf16> to vector<16x8xbf16>
    %23 = vector.extract_strided_slice %10 {offsets = [0, 24], sizes = [16, 8], strides = [1, 1]} : vector<16x32xbf16> to vector<16x8xbf16>
    %24 = vector.shape_cast %20 : vector<16x8xbf16> to vector<1x16x8xbf16>
    %25 = vector.shape_cast %21 : vector<16x8xbf16> to vector<1x16x8xbf16>
    %26 = vector.shape_cast %22 : vector<16x8xbf16> to vector<1x16x8xbf16>
    %27 = vector.shape_cast %23 : vector<16x8xbf16> to vector<1x16x8xbf16>
    %28 = tpu.concatenate %24, %25, %26, %27 in 0 : vector<1x16x8xbf16>, vector<1x16x8xbf16>, vector<1x16x8xbf16>, vector<1x16x8xbf16> -> vector<4x16x8xbf16>
    %c0_9 = arith.constant 0 : index
    %c0_10 = arith.constant 0 : index
    %c0_11 = arith.constant 0 : index
    %29 = vector.load %arg28[%c0_9, %c0_10, %c0_11] : memref<4x6x8xbf16, #tpu.memory_space<vmem>>, vector<4x6x8xbf16>
    %cst_12 = arith.constant dense<0.000000e+00> : vector<4x6x16xf32>
    %30 = tpu.matmul %29, %19, %cst_12 {dimension_numbers = #tpu.dot_dimension_numbers<[2], [2], [1], [1], [0, 0, 0, 1, 1, 1], [0], [0]>} : vector<4x6x8xbf16>, vector<4x16x8xbf16>, vector<4x6x16xf32> -> vector<4x6x16xf32>
    %cst_13 = arith.constant 0.353553385 : f32
    %31 = vector.broadcast %cst_13 : f32 to vector<4x6x16xf32>
    %32 = arith.mulf %30, %31 : vector<4x6x16xf32>
    %c0_14 = arith.constant 0 : index
    %c0_15 = arith.constant 0 : index
    %c0_16 = arith.constant 0 : index
    %33 = vector.load %arg25[%c0_14, %c0_15, %c0_16] : memref<4x6x1xf32, #tpu.memory_space<vmem>>, vector<4x6x1xf32>
    %cst_17 = arith.constant dense<0xFF800000> : vector<4x6xf32>
    %34 = vector.multi_reduction <maximumf>, %32, %cst_17 [2] : vector<4x6x16xf32> to vector<4x6xf32>
    %35 = vector.shape_cast %34 : vector<4x6xf32> to vector<4x6x1xf32>
    %36 = arith.maximumf %33, %35 : vector<4x6x1xf32>
    %37 = arith.subf %33, %36 : vector<4x6x1xf32>
    %38 = math.exp %37 : vector<4x6x1xf32>
    %39 = vector.broadcast %36 : vector<4x6x1xf32> to vector<4x6x16xf32>
    %40 = arith.subf %32, %39 : vector<4x6x16xf32>
    %41 = math.exp %40 : vector<4x6x16xf32>
    %c0_18 = arith.constant 0 : index
    %c0_19 = arith.constant 0 : index
    %c0_20 = arith.constant 0 : index
    %42 = vector.load %arg26[%c0_18, %c0_19, %c0_20] : memref<4x6x1xf32, #tpu.memory_space<vmem>>, vector<4x6x1xf32>
    %43 = arith.mulf %38, %42 : vector<4x6x1xf32>
    %cst_21 = arith.constant dense<0.000000e+00> : vector<4x6xf32>
    %44 = vector.multi_reduction <add>, %41, %cst_21 [2] : vector<4x6x16xf32> to vector<4x6xf32>
    %45 = vector.shape_cast %44 : vector<4x6xf32> to vector<4x6x1xf32>
    %46 = arith.addf %43, %45 : vector<4x6x1xf32>
    %c0_22 = arith.constant 0 : index
    %c0_23 = arith.constant 0 : index
    %c0_24 = arith.constant 0 : index
    %47 = vector.load %arg26[%c0_22, %c0_23, %c0_24] : memref<4x6x1xf32, #tpu.memory_space<vmem>>, vector<4x6x1xf32>
    tpu.vector_store %arg26[%c0_22, %c0_23, %c0_24], %46 {strides = array<i32>} : memref<4x6x1xf32, #tpu.memory_space<vmem>>, vector<4x6x1xf32>,
    %c0_25 = arith.constant 0 : index
    %c0_26 = arith.constant 0 : index
    %c0_27 = arith.constant 0 : index
    %48 = vector.load %arg27[%c0_25, %c0_26, %c0_27] : memref<4x6x8xf32, #tpu.memory_space<vmem>>, vector<4x6x8xf32>
    %49 = vector.broadcast %38 : vector<4x6x1xf32> to vector<4x6x8xf32>
    %50 = arith.mulf %49, %48 : vector<4x6x8xf32>
    %51 = arith.truncf %41 : vector<4x6x16xf32> to vector<4x6x16xbf16>
    %cst_28 = arith.constant dense<0.000000e+00> : vector<4x6x8xf32>
    %52 = tpu.matmul %51, %28, %cst_28 {dimension_numbers = #tpu.dot_dimension_numbers<[2], [1], [1], [2], [0, 0, 0, 1, 1, 2], [0], [0]>} : vector<4x6x16xbf16>, vector<4x16x8xbf16>, vector<4x6x8xf32> -> vector<4x6x8xf32>
    %53 = arith.addf %50, %52 : vector<4x6x8xf32>
    %c0_29 = arith.constant 0 : index
    %c0_30 = arith.constant 0 : index
    %c0_31 = arith.constant 0 : index
    %54 = vector.load %arg27[%c0_29, %c0_30, %c0_31] : memref<4x6x8xf32, #tpu.memory_space<vmem>>, vector<4x6x8xf32>
    tpu.vector_store %arg27[%c0_29, %c0_30, %c0_31], %53 {strides = array<i32>} : memref<4x6x8xf32, #tpu.memory_space<vmem>>, vector<4x6x8xf32>,
    %c0_32 = arith.constant 0 : index
    %c0_33 = arith.constant 0 : index
    %c0_34 = arith.constant 0 : index
    %55 = vector.load %arg25[%c0_32, %c0_33, %c0_34] : memref<4x6x1xf32, #tpu.memory_space<vmem>>, vector<4x6x1xf32>
    tpu.vector_store %arg25[%c0_32, %c0_33, %c0_34], %36 {strides = array<i32>} : memref<4x6x1xf32, #tpu.memory_space<vmem>>, vector<4x6x1xf32>,
    %c0_i32_35 = arith.constant 0 : i32
    %56 = arith.cmpi eq, %arg0, %c0_i32_35 : i32
    %57 = arith.extui %56 : i1 to i32
    %c0_i32_36 = arith.constant 0 : i32
    %58 = arith.cmpi ne, %57, %c0_i32_36 : i32
    scf.if %58 {
      %c0_37 = arith.constant 0 : index
      %c0_38 = arith.constant 0 : index
      %c0_39 = arith.constant 0 : index
      %59 = vector.load %arg26[%c0_37, %c0_38, %c0_39] : memref<4x6x1xf32, #tpu.memory_space<vmem>>, vector<4x6x1xf32>
      %60 = tpu.reciprocal %59 {approx = true} : vector<4x6x1xf32> -> vector<4x6x1xf32>
      %c0_40 = arith.constant 0 : index
      %c0_41 = arith.constant 0 : index
      %c0_42 = arith.constant 0 : index
      %61 = vector.load %arg27[%c0_40, %c0_41, %c0_42] : memref<4x6x8xf32, #tpu.memory_space<vmem>>, vector<4x6x8xf32>
      %62 = vector.broadcast %60 : vector<4x6x1xf32> to vector<4x6x8xf32>
      %63 = arith.mulf %61, %62 : vector<4x6x8xf32>
      %64 = vector.extract_strided_slice %63 {offsets = [0, 0, 0], sizes = [1, 6, 8], strides = [1, 1, 1]} : vector<4x6x8xf32> to vector<1x6x8xf32>
      %65 = vector.shape_cast %64 : vector<1x6x8xf32> to vector<6x8xf32>
      %66 = vector.extract_strided_slice %63 {offsets = [1, 0, 0], sizes = [1, 6, 8], strides = [1, 1, 1]} : vector<4x6x8xf32> to vector<1x6x8xf32>
      %67 = vector.shape_cast %66 : vector<1x6x8xf32> to vector<6x8xf32>
      %68 = vector.extract_strided_slice %63 {offsets = [2, 0, 0], sizes = [1, 6, 8], strides = [1, 1, 1]} : vector<4x6x8xf32> to vector<1x6x8xf32>
      %69 = vector.shape_cast %68 : vector<1x6x8xf32> to vector<6x8xf32>
      %70 = vector.extract_strided_slice %63 {offsets = [3, 0, 0], sizes = [1, 6, 8], strides = [1, 1, 1]} : vector<4x6x8xf32> to vector<1x6x8xf32>
      %71 = vector.shape_cast %70 : vector<1x6x8xf32> to vector<6x8xf32>
      %72 = tpu.concatenate %65, %67, %69, %71 in 1 : vector<6x8xf32>, vector<6x8xf32>, vector<6x8xf32>, vector<6x8xf32> -> vector<6x32xf32>
      %73 = arith.truncf %72 : vector<6x32xf32> to vector<6x32xbf16>
      %c0_43 = arith.constant 0 : index
      %c0_44 = arith.constant 0 : index
      %74 = vector.load %arg9[%c0_43, %c0_44] : memref<32x32xbf16, #tpu.memory_space<vmem>>, vector<32x32xbf16>
      %cst_45 = arith.constant dense<0.000000e+00> : vector<6x32xf32>
      %75 = tpu.matmul %73, %74, %cst_45 {dimension_numbers = #tpu.dot_dimension_numbers<[1], [0], [0], [1], [0, 0, 1, 1], [], []>} : vector<6x32xbf16>, vector<32x32xbf16>, vector<6x32xf32> -> vector<6x32xf32>
      %c0_46 = arith.constant 0 : index
      %c0_47 = arith.constant 0 : index
      %76 = vector.load %arg1[%c0_46, %c0_47] : memref<6x32xf32, #tpu.memory_space<vmem>>, vector<6x32xf32>
      %c0_48 = arith.constant 0 : index
      %c0_49 = arith.constant 0 : index
      %77 = vector.load %arg2[%c0_48, %c0_49] : memref<6x32xf32, #tpu.memory_space<vmem>>, vector<6x32xf32>
      %c0_50 = arith.constant 0 : index
      %c0_51 = arith.constant 0 : index
      %78 = vector.load %arg3[%c0_50, %c0_51] : memref<6x6xf32, #tpu.memory_space<vmem>>, vector<6x6xf32>
      %79 = vector.shape_cast %76 : vector<6x32xf32> to vector<1x6x32xf32>
      %80 = vector.shape_cast %75 : vector<6x32xf32> to vector<1x6x32xf32>
      %81 = vector.shape_cast %77 : vector<6x32xf32> to vector<1x6x32xf32>
      %82 = tpu.concatenate %79, %80, %81 in 0 : vector<1x6x32xf32>, vector<1x6x32xf32>, vector<1x6x32xf32> -> vector<3x6x32xf32>
      %83 = arith.truncf %82 : vector<3x6x32xf32> to vector<3x6x32xbf16>
      %c0_52 = arith.constant 0 : index
      %c0_53 = arith.constant 0 : index
      %c0_54 = arith.constant 0 : index
      %84 = vector.load %arg10[%c0_52, %c0_53, %c0_54] : memref<3x32x32xbf16, #tpu.memory_space<vmem>>, vector<3x32x32xbf16>
      %cst_55 = arith.constant dense<0.000000e+00> : vector<3x6x32xf32>
      %85 = tpu.matmul %83, %84, %cst_55 {dimension_numbers = #tpu.dot_dimension_numbers<[2], [1], [1], [2], [0, 0, 0, 1, 1, 2], [0], [0]>} : vector<3x6x32xbf16>, vector<3x32x32xbf16>, vector<3x6x32xf32> -> vector<3x6x32xf32>
      %c0_56 = arith.constant 0 : index
      %c0_57 = arith.constant 0 : index
      %c0_58 = arith.constant 0 : index
      %86 = vector.load %arg11[%c0_56, %c0_57, %c0_58] : memref<3x32x32xbf16, #tpu.memory_space<vmem>>, vector<3x32x32xbf16>
      %cst_59 = arith.constant dense<0.000000e+00> : vector<3x6x32xf32>
      %87 = tpu.matmul %83, %86, %cst_59 {dimension_numbers = #tpu.dot_dimension_numbers<[2], [1], [1], [2], [0, 0, 0, 1, 1, 2], [0], [0]>} : vector<3x6x32xbf16>, vector<3x32x32xbf16>, vector<3x6x32xf32> -> vector<3x6x32xf32>
      %c0_60 = arith.constant 0 : index
      %c0_61 = arith.constant 0 : index
      %c0_62 = arith.constant 0 : index
      %88 = vector.load %arg12[%c0_60, %c0_61, %c0_62] : memref<3x32x32xbf16, #tpu.memory_space<vmem>>, vector<3x32x32xbf16>
      %cst_63 = arith.constant dense<0.000000e+00> : vector<3x6x32xf32>
      %89 = tpu.matmul %83, %88, %cst_63 {dimension_numbers = #tpu.dot_dimension_numbers<[2], [1], [1], [2], [0, 0, 0, 1, 1, 2], [0], [0]>} : vector<3x6x32xbf16>, vector<3x32x32xbf16>, vector<3x6x32xf32> -> vector<3x6x32xf32>
      %90 = arith.truncf %85 : vector<3x6x32xf32> to vector<3x6x32xbf16>
      %91 = arith.truncf %87 : vector<3x6x32xf32> to vector<3x6x32xbf16>
      %92 = arith.truncf %89 : vector<3x6x32xf32> to vector<3x6x32xbf16>
      %93 = vector.extract_strided_slice %90 {offsets = [0, 0, 0], sizes = [3, 6, 8], strides = [1, 1, 1]} : vector<3x6x32xbf16> to vector<3x6x8xbf16>
      %94 = vector.extract_strided_slice %91 {offsets = [0, 0, 0], sizes = [3, 6, 8], strides = [1, 1, 1]} : vector<3x6x32xbf16> to vector<3x6x8xbf16>
      %cst_64 = arith.constant dense<0.000000e+00> : vector<3x6x6xf32>
      %95 = tpu.matmul %93, %94, %cst_64 {dimension_numbers = #tpu.dot_dimension_numbers<[2], [2], [1], [1], [0, 0, 0, 1, 1, 1], [0], [0]>} : vector<3x6x8xbf16>, vector<3x6x8xbf16>, vector<3x6x6xf32> -> vector<3x6x6xf32>
      %cst_65 = arith.constant 0.353553385 : f32
      %96 = vector.broadcast %cst_65 : f32 to vector<3x6x6xf32>
      %97 = arith.mulf %95, %96 : vector<3x6x6xf32>
      %98 = vector.shape_cast %78 : vector<6x6xf32> to vector<1x6x6xf32>
      %99 = vector.broadcast %98 : vector<1x6x6xf32> to vector<3x6x6xf32>
      %100 = arith.addf %97, %99 : vector<3x6x6xf32>
      %cst_66 = arith.constant dense<0xFF800000> : vector<3x6xf32>
      %101 = vector.multi_reduction <maximumf>, %100, %cst_66 [2] : vector<3x6x6xf32> to vector<3x6xf32>
      %102 = vector.shape_cast %101 : vector<3x6xf32> to vector<3x6x1xf32>
      %103 = vector.broadcast %102 : vector<3x6x1xf32> to vector<3x6x6xf32>
      %104 = arith.subf %100, %103 : vector<3x6x6xf32>
      %105 = math.exp %104 : vector<3x6x6xf32>
      %cst_67 = arith.constant dense<0.000000e+00> : vector<3x6xf32>
      %106 = vector.multi_reduction <add>, %105, %cst_67 [2] : vector<3x6x6xf32> to vector<3x6xf32>
      %107 = vector.shape_cast %106 : vector<3x6xf32> to vector<3x6x1xf32>
      %108 = tpu.reciprocal %107 {approx = true} : vector<3x6x1xf32> -> vector<3x6x1xf32>
      %109 = vector.broadcast %108 : vector<3x6x1xf32> to vector<3x6x6xf32>
      %110 = arith.mulf %105, %109 : vector<3x6x6xf32>
      %111 = arith.truncf %110 : vector<3x6x6xf32> to vector<3x6x6xbf16>
      %112 = vector.extract_strided_slice %92 {offsets = [0, 0, 0], sizes = [3, 6, 8], strides = [1, 1, 1]} : vector<3x6x32xbf16> to vector<3x6x8xbf16>
      %cst_68 = arith.constant dense<0.000000e+00> : vector<3x6x8xf32>
      %113 = tpu.matmul %111, %112, %cst_68 {dimension_numbers = #tpu.dot_dimension_numbers<[2], [1], [1], [2], [0, 0, 0, 1, 1, 2], [0], [0]>} : vector<3x6x6xbf16>, vector<3x6x8xbf16>, vector<3x6x8xf32> -> vector<3x6x8xf32>
      %114 = vector.extract_strided_slice %90 {offsets = [0, 0, 8], sizes = [3, 6, 8], strides = [1, 1, 1]} : vector<3x6x32xbf16> to vector<3x6x8xbf16>
      %115 = vector.extract_strided_slice %91 {offsets = [0, 0, 8], sizes = [3, 6, 8], strides = [1, 1, 1]} : vector<3x6x32xbf16> to vector<3x6x8xbf16>
      %cst_69 = arith.constant dense<0.000000e+00> : vector<3x6x6xf32>
      %116 = tpu.matmul %114, %115, %cst_69 {dimension_numbers = #tpu.dot_dimension_numbers<[2], [2], [1], [1], [0, 0, 0, 1, 1, 1], [0], [0]>} : vector<3x6x8xbf16>, vector<3x6x8xbf16>, vector<3x6x6xf32> -> vector<3x6x6xf32>
      %cst_70 = arith.constant 0.353553385 : f32
      %117 = vector.broadcast %cst_70 : f32 to vector<3x6x6xf32>
      %118 = arith.mulf %116, %117 : vector<3x6x6xf32>
      %119 = vector.shape_cast %78 : vector<6x6xf32> to vector<1x6x6xf32>
      %120 = vector.broadcast %119 : vector<1x6x6xf32> to vector<3x6x6xf32>
      %121 = arith.addf %118, %120 : vector<3x6x6xf32>
      %cst_71 = arith.constant dense<0xFF800000> : vector<3x6xf32>
      %122 = vector.multi_reduction <maximumf>, %121, %cst_71 [2] : vector<3x6x6xf32> to vector<3x6xf32>
      %123 = vector.shape_cast %122 : vector<3x6xf32> to vector<3x6x1xf32>
      %124 = vector.broadcast %123 : vector<3x6x1xf32> to vector<3x6x6xf32>
      %125 = arith.subf %121, %124 : vector<3x6x6xf32>
      %126 = math.exp %125 : vector<3x6x6xf32>
      %cst_72 = arith.constant dense<0.000000e+00> : vector<3x6xf32>
      %127 = vector.multi_reduction <add>, %126, %cst_72 [2] : vector<3x6x6xf32> to vector<3x6xf32>
      %128 = vector.shape_cast %127 : vector<3x6xf32> to vector<3x6x1xf32>
      %129 = tpu.reciprocal %128 {approx = true} : vector<3x6x1xf32> -> vector<3x6x1xf32>
      %130 = vector.broadcast %129 : vector<3x6x1xf32> to vector<3x6x6xf32>
      %131 = arith.mulf %126, %130 : vector<3x6x6xf32>
      %132 = arith.truncf %131 : vector<3x6x6xf32> to vector<3x6x6xbf16>
      %133 = vector.extract_strided_slice %92 {offsets = [0, 0, 8], sizes = [3, 6, 8], strides = [1, 1, 1]} : vector<3x6x32xbf16> to vector<3x6x8xbf16>
      %cst_73 = arith.constant dense<0.000000e+00> : vector<3x6x8xf32>
      %134 = tpu.matmul %132, %133, %cst_73 {dimension_numbers = #tpu.dot_dimension_numbers<[2], [1], [1], [2], [0, 0, 0, 1, 1, 2], [0], [0]>} : vector<3x6x6xbf16>, vector<3x6x8xbf16>, vector<3x6x8xf32> -> vector<3x6x8xf32>
      %135 = vector.extract_strided_slice %90 {offsets = [0, 0, 16], sizes = [3, 6, 8], strides = [1, 1, 1]} : vector<3x6x32xbf16> to vector<3x6x8xbf16>
      %136 = vector.extract_strided_slice %91 {offsets = [0, 0, 16], sizes = [3, 6, 8], strides = [1, 1, 1]} : vector<3x6x32xbf16> to vector<3x6x8xbf16>
      %cst_74 = arith.constant dense<0.000000e+00> : vector<3x6x6xf32>
      %137 = tpu.matmul %135, %136, %cst_74 {dimension_numbers = #tpu.dot_dimension_numbers<[2], [2], [1], [1], [0, 0, 0, 1, 1, 1], [0], [0]>} : vector<3x6x8xbf16>, vector<3x6x8xbf16>, vector<3x6x6xf32> -> vector<3x6x6xf32>
      %cst_75 = arith.constant 0.353553385 : f32
      %138 = vector.broadcast %cst_75 : f32 to vector<3x6x6xf32>
      %139 = arith.mulf %137, %138 : vector<3x6x6xf32>
      %140 = vector.shape_cast %78 : vector<6x6xf32> to vector<1x6x6xf32>
      %141 = vector.broadcast %140 : vector<1x6x6xf32> to vector<3x6x6xf32>
      %142 = arith.addf %139, %141 : vector<3x6x6xf32>
      %cst_76 = arith.constant dense<0xFF800000> : vector<3x6xf32>
      %143 = vector.multi_reduction <maximumf>, %142, %cst_76 [2] : vector<3x6x6xf32> to vector<3x6xf32>
      %144 = vector.shape_cast %143 : vector<3x6xf32> to vector<3x6x1xf32>
      %145 = vector.broadcast %144 : vector<3x6x1xf32> to vector<3x6x6xf32>
      %146 = arith.subf %142, %145 : vector<3x6x6xf32>
      %147 = math.exp %146 : vector<3x6x6xf32>
      %cst_77 = arith.constant dense<0.000000e+00> : vector<3x6xf32>
      %148 = vector.multi_reduction <add>, %147, %cst_77 [2] : vector<3x6x6xf32> to vector<3x6xf32>
      %149 = vector.shape_cast %148 : vector<3x6xf32> to vector<3x6x1xf32>
      %150 = tpu.reciprocal %149 {approx = true} : vector<3x6x1xf32> -> vector<3x6x1xf32>
      %151 = vector.broadcast %150 : vector<3x6x1xf32> to vector<3x6x6xf32>
      %152 = arith.mulf %147, %151 : vector<3x6x6xf32>
      %153 = arith.truncf %152 : vector<3x6x6xf32> to vector<3x6x6xbf16>
      %154 = vector.extract_strided_slice %92 {offsets = [0, 0, 16], sizes = [3, 6, 8], strides = [1, 1, 1]} : vector<3x6x32xbf16> to vector<3x6x8xbf16>
      %cst_78 = arith.constant dense<0.000000e+00> : vector<3x6x8xf32>
      %155 = tpu.matmul %153, %154, %cst_78 {dimension_numbers = #tpu.dot_dimension_numbers<[2], [1], [1], [2], [0, 0, 0, 1, 1, 2], [0], [0]>} : vector<3x6x6xbf16>, vector<3x6x8xbf16>, vector<3x6x8xf32> -> vector<3x6x8xf32>
      %156 = vector.extract_strided_slice %90 {offsets = [0, 0, 24], sizes = [3, 6, 8], strides = [1, 1, 1]} : vector<3x6x32xbf16> to vector<3x6x8xbf16>
      %157 = vector.extract_strided_slice %91 {offsets = [0, 0, 24], sizes = [3, 6, 8], strides = [1, 1, 1]} : vector<3x6x32xbf16> to vector<3x6x8xbf16>
      %cst_79 = arith.constant dense<0.000000e+00> : vector<3x6x6xf32>
      %158 = tpu.matmul %156, %157, %cst_79 {dimension_numbers = #tpu.dot_dimension_numbers<[2], [2], [1], [1], [0, 0, 0, 1, 1, 1], [0], [0]>} : vector<3x6x8xbf16>, vector<3x6x8xbf16>, vector<3x6x6xf32> -> vector<3x6x6xf32>
      %cst_80 = arith.constant 0.353553385 : f32
      %159 = vector.broadcast %cst_80 : f32 to vector<3x6x6xf32>
      %160 = arith.mulf %158, %159 : vector<3x6x6xf32>
      %161 = vector.shape_cast %78 : vector<6x6xf32> to vector<1x6x6xf32>
      %162 = vector.broadcast %161 : vector<1x6x6xf32> to vector<3x6x6xf32>
      %163 = arith.addf %160, %162 : vector<3x6x6xf32>
      %cst_81 = arith.constant dense<0xFF800000> : vector<3x6xf32>
      %164 = vector.multi_reduction <maximumf>, %163, %cst_81 [2] : vector<3x6x6xf32> to vector<3x6xf32>
      %165 = vector.shape_cast %164 : vector<3x6xf32> to vector<3x6x1xf32>
      %166 = vector.broadcast %165 : vector<3x6x1xf32> to vector<3x6x6xf32>
      %167 = arith.subf %163, %166 : vector<3x6x6xf32>
      %168 = math.exp %167 : vector<3x6x6xf32>
      %cst_82 = arith.constant dense<0.000000e+00> : vector<3x6xf32>
      %169 = vector.multi_reduction <add>, %168, %cst_82 [2] : vector<3x6x6xf32> to vector<3x6xf32>
      %170 = vector.shape_cast %169 : vector<3x6xf32> to vector<3x6x1xf32>
      %171 = tpu.reciprocal %170 {approx = true} : vector<3x6x1xf32> -> vector<3x6x1xf32>
      %172 = vector.broadcast %171 : vector<3x6x1xf32> to vector<3x6x6xf32>
      %173 = arith.mulf %168, %172 : vector<3x6x6xf32>
      %174 = arith.truncf %173 : vector<3x6x6xf32> to vector<3x6x6xbf16>
      %175 = vector.extract_strided_slice %92 {offsets = [0, 0, 24], sizes = [3, 6, 8], strides = [1, 1, 1]} : vector<3x6x32xbf16> to vector<3x6x8xbf16>
      %cst_83 = arith.constant dense<0.000000e+00> : vector<3x6x8xf32>
      %176 = tpu.matmul %174, %175, %cst_83 {dimension_numbers = #tpu.dot_dimension_numbers<[2], [1], [1], [2], [0, 0, 0, 1, 1, 2], [0], [0]>} : vector<3x6x6xbf16>, vector<3x6x8xbf16>, vector<3x6x8xf32> -> vector<3x6x8xf32>
      %177 = tpu.concatenate %113, %134, %155, %176 in 2 : vector<3x6x8xf32>, vector<3x6x8xf32>, vector<3x6x8xf32>, vector<3x6x8xf32> -> vector<3x6x32xf32>
      %178 = arith.truncf %177 : vector<3x6x32xf32> to vector<3x6x32xbf16>
      %c0_84 = arith.constant 0 : index
      %c0_85 = arith.constant 0 : index
      %c0_86 = arith.constant 0 : index
      %179 = vector.load %arg13[%c0_84, %c0_85, %c0_86] : memref<3x32x32xbf16, #tpu.memory_space<vmem>>, vector<3x32x32xbf16>
      %cst_87 = arith.constant dense<0.000000e+00> : vector<3x6x32xf32>
      %180 = tpu.matmul %178, %179, %cst_87 {dimension_numbers = #tpu.dot_dimension_numbers<[2], [1], [1], [2], [0, 0, 0, 1, 1, 2], [0], [0]>} : vector<3x6x32xbf16>, vector<3x32x32xbf16>, vector<3x6x32xf32> -> vector<3x6x32xf32>
      %181 = vector.extract_strided_slice %180 {offsets = [0, 0, 0], sizes = [1, 6, 32], strides = [1, 1, 1]} : vector<3x6x32xf32> to vector<1x6x32xf32>
      %182 = vector.shape_cast %181 : vector<1x6x32xf32> to vector<6x32xf32>
      %183 = vector.extract_strided_slice %180 {offsets = [1, 0, 0], sizes = [1, 6, 32], strides = [1, 1, 1]} : vector<3x6x32xf32> to vector<1x6x32xf32>
      %184 = vector.shape_cast %183 : vector<1x6x32xf32> to vector<6x32xf32>
      %185 = vector.extract_strided_slice %180 {offsets = [2, 0, 0], sizes = [1, 6, 32], strides = [1, 1, 1]} : vector<3x6x32xf32> to vector<1x6x32xf32>
      %186 = vector.shape_cast %185 : vector<1x6x32xf32> to vector<6x32xf32>
      %187 = tpu.concatenate %182, %184, %186 in 1 : vector<6x32xf32>, vector<6x32xf32>, vector<6x32xf32> -> vector<6x96xf32>
      %188 = arith.truncf %187 : vector<6x96xf32> to vector<6x96xbf16>
      %c0_88 = arith.constant 0 : index
      %c0_89 = arith.constant 0 : index
      %189 = vector.load %arg14[%c0_88, %c0_89] : memref<96x96xbf16, #tpu.memory_space<vmem>>, vector<96x96xbf16>
      %cst_90 = arith.constant dense<0.000000e+00> : vector<6x96xf32>
      %190 = tpu.matmul %188, %189, %cst_90 {dimension_numbers = #tpu.dot_dimension_numbers<[1], [0], [0], [1], [0, 0, 1, 1], [], []>} : vector<6x96xbf16>, vector<96x96xbf16>, vector<6x96xf32> -> vector<6x96xf32>
      %c0_91 = arith.constant 0 : index
      %c0_92 = arith.constant 0 : index
      %191 = vector.load %arg15[%c0_91, %c0_92] : memref<1x96xf32, #tpu.memory_space<vmem>>, vector<1x96xf32>
      %192 = vector.broadcast %191 : vector<1x96xf32> to vector<6x96xf32>
      %193 = arith.addf %190, %192 : vector<6x96xf32>
      %194 = vector.extract_strided_slice %193 {offsets = [0, 0], sizes = [6, 32], strides = [1, 1]} : vector<6x96xf32> to vector<6x32xf32>
      %195 = vector.extract_strided_slice %193 {offsets = [0, 32], sizes = [6, 32], strides = [1, 1]} : vector<6x96xf32> to vector<6x32xf32>
      %196 = vector.extract_strided_slice %193 {offsets = [0, 64], sizes = [6, 32], strides = [1, 1]} : vector<6x96xf32> to vector<6x32xf32>
      %197 = arith.maximumf %194, %195 : vector<6x32xf32>
      %198 = arith.maximumf %197, %196 : vector<6x32xf32>
      %199 = arith.subf %194, %198 : vector<6x32xf32>
      %200 = math.exp %199 : vector<6x32xf32>
      %201 = arith.subf %195, %198 : vector<6x32xf32>
      %202 = math.exp %201 : vector<6x32xf32>
      %203 = arith.subf %196, %198 : vector<6x32xf32>
      %204 = math.exp %203 : vector<6x32xf32>
      %205 = arith.addf %200, %202 : vector<6x32xf32>
      %206 = arith.addf %205, %204 : vector<6x32xf32>
      %207 = tpu.reciprocal %206 {approx = true} : vector<6x32xf32> -> vector<6x32xf32>
      %208 = arith.mulf %200, %182 : vector<6x32xf32>
      %209 = arith.mulf %202, %184 : vector<6x32xf32>
      %210 = arith.addf %208, %209 : vector<6x32xf32>
      %211 = arith.mulf %204, %186 : vector<6x32xf32>
      %212 = arith.addf %210, %211 : vector<6x32xf32>
      %213 = arith.mulf %212, %207 : vector<6x32xf32>
      %c0_93 = arith.constant 0 : index
      %c0_94 = arith.constant 0 : index
      %214 = vector.load %arg16[%c0_93, %c0_94] : memref<32x4xf32, #tpu.memory_space<vmem>>, vector<32x4xf32>
      %cst_95 = arith.constant dense<0.000000e+00> : vector<6x4xf32>
      %215 = tpu.matmul %213, %214, %cst_95 {dimension_numbers = #tpu.dot_dimension_numbers<[1], [0], [0], [1], [0, 0, 1, 1], [], []>} : vector<6x32xf32>, vector<32x4xf32>, vector<6x4xf32> -> vector<6x4xf32>
      %cst_96 = arith.constant dense<0xFF800000> : vector<6xf32>
      %216 = vector.multi_reduction <maximumf>, %215, %cst_96 [1] : vector<6x4xf32> to vector<6xf32>
      %217 = vector.shape_cast %216 : vector<6xf32> to vector<6x1xf32>
      %218 = vector.broadcast %217 : vector<6x1xf32> to vector<6x4xf32>
      %219 = arith.subf %215, %218 : vector<6x4xf32>
      %220 = math.exp %219 : vector<6x4xf32>
      %cst_97 = arith.constant dense<0.000000e+00> : vector<6xf32>
      %221 = vector.multi_reduction <add>, %220, %cst_97 [1] : vector<6x4xf32> to vector<6xf32>
      %222 = vector.shape_cast %221 : vector<6xf32> to vector<6x1xf32>
      %223 = tpu.reciprocal %222 {approx = true} : vector<6x1xf32> -> vector<6x1xf32>
      %224 = vector.broadcast %223 : vector<6x1xf32> to vector<6x4xf32>
      %225 = arith.mulf %220, %224 : vector<6x4xf32>
      %cst_98 = arith.constant dense<0xFF800000> : vector<6xf32>
      %226 = vector.multi_reduction <maximumf>, %225, %cst_98 [1] : vector<6x4xf32> to vector<6xf32>
      %227 = vector.shape_cast %226 : vector<6xf32> to vector<6x1xf32>
      %228 = vector.broadcast %227 : vector<6x1xf32> to vector<6x4xf32>
      %229 = arith.cmpf oge, %225, %228 : vector<6x4xf32>
      %cst_99 = arith.constant 0xFF800000 : f32
      %230 = vector.broadcast %cst_99 : f32 to vector<6x4xf32>
      %231 = arith.select %229, %230, %225 : vector<6x4xi1>, vector<6x4xf32>
      %cst_100 = arith.constant dense<0xFF800000> : vector<6xf32>
      %232 = vector.multi_reduction <maximumf>, %231, %cst_100 [1] : vector<6x4xf32> to vector<6xf32>
      %233 = vector.shape_cast %232 : vector<6xf32> to vector<6x1xf32>
      %234 = vector.broadcast %233 : vector<6x1xf32> to vector<6x4xf32>
      %235 = arith.cmpf oge, %225, %234 : vector<6x4xf32>
      %236 = arith.extui %235 : vector<6x4xi1> to vector<6x4xi32>
      %237 = arith.sitofp %236 : vector<6x4xi32> to vector<6x4xf32>
      %238 = arith.mulf %225, %237 : vector<6x4xf32>
      %cst_101 = arith.constant dense<0.000000e+00> : vector<6xf32>
      %239 = vector.multi_reduction <add>, %238, %cst_101 [1] : vector<6x4xf32> to vector<6xf32>
      %240 = vector.shape_cast %239 : vector<6xf32> to vector<6x1xf32>
      %241 = tpu.reciprocal %240 {approx = true} : vector<6x1xf32> -> vector<6x1xf32>
      %242 = vector.broadcast %241 : vector<6x1xf32> to vector<6x4xf32>
      %243 = arith.mulf %238, %242 : vector<6x4xf32>
      %cst_102 = arith.constant dense<0.000000e+00> : vector<4xf32>
      %244 = vector.multi_reduction <add>, %225, %cst_102 [0] : vector<6x4xf32> to vector<4xf32>
      %245 = vector.shape_cast %244 : vector<4xf32> to vector<1x4xf32>
      %cst_103 = arith.constant 6.000000e+00 : f32
      %246 = vector.broadcast %cst_103 : f32 to vector<1x4xf32>
      %247 = arith.divf %245, %246 : vector<1x4xf32>
      %cst_104 = arith.constant dense<0.000000e+00> : vector<4xf32>
      %248 = vector.multi_reduction <add>, %237, %cst_104 [0] : vector<6x4xf32> to vector<4xf32>
      %249 = vector.shape_cast %248 : vector<4xf32> to vector<1x4xf32>
      %cst_105 = arith.constant 6.000000e+00 : f32
      %250 = vector.broadcast %cst_105 : f32 to vector<1x4xf32>
      %251 = arith.divf %249, %250 : vector<1x4xf32>
      %252 = arith.mulf %247, %251 : vector<1x4xf32>
      %cst_106 = arith.constant dense<0.000000e+00> : vector<1xf32>
      %253 = vector.multi_reduction <add>, %252, %cst_106 [1] : vector<1x4xf32> to vector<1xf32>
      %254 = vector.shape_cast %253 : vector<1xf32> to vector<1x1xf32>
      %cst_107 = arith.constant 4.000000e+00 : f32
      %255 = vector.broadcast %cst_107 : f32 to vector<1x1xf32>
      %256 = arith.mulf %255, %254 : vector<1x1xf32>
      %c0_108 = arith.constant 0 : index
      %c0_109 = arith.constant 0 : index
      %257 = vector.load %arg23[%c0_108, %c0_109] : memref<1x1xf32, #tpu.memory_space<vmem>>, vector<1x1xf32>
      tpu.vector_store %arg23[%c0_108, %c0_109], %256 {strides = array<i32>} : memref<1x1xf32, #tpu.memory_space<vmem>>, vector<1x1xf32>,
      %258 = arith.truncf %213 : vector<6x32xf32> to vector<6x32xbf16>
      %c0_110 = arith.constant 0 : index
      %c0_111 = arith.constant 0 : index
      %259 = vector.load %arg17[%c0_110, %c0_111] : memref<32x512xbf16, #tpu.memory_space<vmem>>, vector<32x512xbf16>
      %cst_112 = arith.constant dense<0.000000e+00> : vector<6x512xf32>
      %260 = tpu.matmul %258, %259, %cst_112 {dimension_numbers = #tpu.dot_dimension_numbers<[1], [0], [0], [1], [0, 0, 1, 1], [], []>} : vector<6x32xbf16>, vector<32x512xbf16>, vector<6x512xf32> -> vector<6x512xf32>
      %c0_113 = arith.constant 0 : index
      %c0_114 = arith.constant 0 : index
      %261 = vector.load %arg18[%c0_113, %c0_114] : memref<1x512xf32, #tpu.memory_space<vmem>>, vector<1x512xf32>
      %262 = vector.broadcast %261 : vector<1x512xf32> to vector<6x512xf32>
      %263 = arith.addf %260, %262 : vector<6x512xf32>
      %264 = vector.extract_strided_slice %243 {offsets = [0, 0], sizes = [6, 1], strides = [1, 1]} : vector<6x4xf32> to vector<6x1xf32>
      %265 = vector.extract_strided_slice %263 {offsets = [0, 0], sizes = [6, 128], strides = [1, 1]} : vector<6x512xf32> to vector<6x128xf32>
      %266 = vector.broadcast %264 : vector<6x1xf32> to vector<6x128xf32>
      %267 = arith.mulf %266, %265 : vector<6x128xf32>
      %268 = vector.extract_strided_slice %243 {offsets = [0, 1], sizes = [6, 1], strides = [1, 1]} : vector<6x4xf32> to vector<6x1xf32>
      %269 = vector.extract_strided_slice %263 {offsets = [0, 128], sizes = [6, 128], strides = [1, 1]} : vector<6x512xf32> to vector<6x128xf32>
      %270 = vector.broadcast %268 : vector<6x1xf32> to vector<6x128xf32>
      %271 = arith.mulf %270, %269 : vector<6x128xf32>
      %272 = arith.addf %267, %271 : vector<6x128xf32>
      %273 = vector.extract_strided_slice %243 {offsets = [0, 2], sizes = [6, 1], strides = [1, 1]} : vector<6x4xf32> to vector<6x1xf32>
      %274 = vector.extract_strided_slice %263 {offsets = [0, 256], sizes = [6, 128], strides = [1, 1]} : vector<6x512xf32> to vector<6x128xf32>
      %275 = vector.broadcast %273 : vector<6x1xf32> to vector<6x128xf32>
      %276 = arith.mulf %275, %274 : vector<6x128xf32>
      %277 = arith.addf %272, %276 : vector<6x128xf32>
      %278 = vector.extract_strided_slice %243 {offsets = [0, 3], sizes = [6, 1], strides = [1, 1]} : vector<6x4xf32> to vector<6x1xf32>
      %279 = vector.extract_strided_slice %263 {offsets = [0, 384], sizes = [6, 128], strides = [1, 1]} : vector<6x512xf32> to vector<6x128xf32>
      %280 = vector.broadcast %278 : vector<6x1xf32> to vector<6x128xf32>
      %281 = arith.mulf %280, %279 : vector<6x128xf32>
      %282 = arith.addf %277, %281 : vector<6x128xf32>
      %283 = tpu.iota {dimensions = array<i32: 1>} : vector<1x128xi32>
      %c14_i32 = arith.constant 14 : i32
      %284 = vector.broadcast %c14_i32 : i32 to vector<1x128xi32>
      %285 = arith.cmpi slt, %283, %284 : vector<1x128xi32>
      %286 = arith.extui %285 : vector<1x128xi1> to vector<1x128xi32>
      %287 = arith.sitofp %286 : vector<1x128xi32> to vector<1x128xf32>
      %288 = vector.broadcast %287 : vector<1x128xf32> to vector<6x128xf32>
      %289 = arith.mulf %282, %288 : vector<6x128xf32>
      %cst_115 = arith.constant dense<0.000000e+00> : vector<6xf32>
      %290 = vector.multi_reduction <add>, %289, %cst_115 [1] : vector<6x128xf32> to vector<6xf32>
      %291 = vector.shape_cast %290 : vector<6xf32> to vector<6x1xf32>
      %cst_116 = arith.constant 0.0714285746 : f32
      %292 = vector.broadcast %cst_116 : f32 to vector<6x1xf32>
      %293 = arith.mulf %291, %292 : vector<6x1xf32>
      %294 = vector.broadcast %293 : vector<6x1xf32> to vector<6x128xf32>
      %295 = arith.subf %282, %294 : vector<6x128xf32>
      %296 = vector.broadcast %287 : vector<1x128xf32> to vector<6x128xf32>
      %297 = arith.mulf %295, %296 : vector<6x128xf32>
      %298 = arith.mulf %297, %297 : vector<6x128xf32>
      %cst_117 = arith.constant dense<0.000000e+00> : vector<6xf32>
      %299 = vector.multi_reduction <add>, %298, %cst_117 [1] : vector<6x128xf32> to vector<6xf32>
      %300 = vector.shape_cast %299 : vector<6xf32> to vector<6x1xf32>
      %cst_118 = arith.constant 0.0714285746 : f32
      %301 = vector.broadcast %cst_118 : f32 to vector<6x1xf32>
      %302 = arith.mulf %300, %301 : vector<6x1xf32>
      %303 = vector.broadcast %293 : vector<6x1xf32> to vector<6x128xf32>
      %304 = arith.subf %282, %303 : vector<6x128xf32>
      %cst_119 = arith.constant 9.99999974E-6 : f32
      %305 = vector.broadcast %cst_119 : f32 to vector<6x1xf32>
      %306 = arith.addf %302, %305 : vector<6x1xf32>
      %307 = math.rsqrt %306 : vector<6x1xf32>
      %308 = vector.broadcast %307 : vector<6x1xf32> to vector<6x128xf32>
      %309 = arith.mulf %304, %308 : vector<6x128xf32>
      %c0_120 = arith.constant 0 : index
      %c0_121 = arith.constant 0 : index
      %310 = vector.load %arg19[%c0_120, %c0_121] : memref<1x128xf32, #tpu.memory_space<vmem>>, vector<1x128xf32>
      %311 = vector.broadcast %310 : vector<1x128xf32> to vector<6x128xf32>
      %312 = arith.mulf %309, %311 : vector<6x128xf32>
      %c0_122 = arith.constant 0 : index
      %c0_123 = arith.constant 0 : index
      %313 = vector.load %arg20[%c0_122, %c0_123] : memref<1x128xf32, #tpu.memory_space<vmem>>, vector<1x128xf32>
      %314 = vector.broadcast %313 : vector<1x128xf32> to vector<6x128xf32>
      %315 = arith.addf %312, %314 : vector<6x128xf32>
      %c0_124 = arith.constant 0 : index
      %c0_125 = arith.constant 0 : index
      %316 = vector.load %arg22[%c0_124, %c0_125] : memref<6x128xf32, #tpu.memory_space<vmem>>, vector<6x128xf32>
      tpu.vector_store %arg22[%c0_124, %c0_125], %315 {strides = array<i32>} : memref<6x128xf32, #tpu.memory_space<vmem>>, vector<6x128xf32>,
      %317 = arith.negf %315 : vector<6x128xf32>
      %318 = math.exp %317 : vector<6x128xf32>
      %cst_126 = arith.constant 1.000000e+00 : f32
      %319 = vector.broadcast %cst_126 : f32 to vector<6x128xf32>
      %320 = arith.addf %319, %318 : vector<6x128xf32>
      %321 = arith.divf %319, %320 : vector<6x128xf32>
      %322 = arith.truncf %321 : vector<6x128xf32> to vector<6x128xbf16>
      %c0_127 = arith.constant 0 : index
      %c0_128 = arith.constant 0 : index
      %323 = vector.load %arg21[%c0_127, %c0_128] : memref<128x128xbf16, #tpu.memory_space<vmem>>, vector<128x128xbf16>
      %cst_129 = arith.constant dense<0.000000e+00> : vector<6x128xf32>
      %324 = tpu.matmul %322, %323, %cst_129 {dimension_numbers = #tpu.dot_dimension_numbers<[1], [0], [0], [1], [0, 0, 1, 1], [], []>} : vector<6x128xbf16>, vector<128x128xbf16>, vector<6x128xf32> -> vector<6x128xf32>
      %325 = arith.mulf %324, %321 : vector<6x128xf32>
      %cst_130 = arith.constant dense<0.000000e+00> : vector<6xf32>
      %326 = vector.multi_reduction <add>, %325, %cst_130 [1] : vector<6x128xf32> to vector<6xf32>
      %327 = vector.shape_cast %326 : vector<6xf32> to vector<6x1xf32>
      %cst_131 = arith.constant dense<0.000000e+00> : vector<1xf32>
      %328 = vector.multi_reduction <add>, %327, %cst_131 [0] : vector<6x1xf32> to vector<1xf32>
      %329 = vector.shape_cast %328 : vector<1xf32> to vector<1x1xf32>
      %cst_132 = arith.constant 5.000000e-04 : f32
      %330 = vector.broadcast %cst_132 : f32 to vector<1x1xf32>
      %331 = arith.mulf %330, %329 : vector<1x1xf32>
      %c0_133 = arith.constant 0 : index
      %c0_134 = arith.constant 0 : index
      %332 = vector.load %arg24[%c0_133, %c0_134] : memref<1x1xf32, #tpu.memory_space<vmem>>, vector<1x1xf32>
      tpu.vector_store %arg24[%c0_133, %c0_134], %331 {strides = array<i32>} : memref<1x1xf32, #tpu.memory_space<vmem>>, vector<1x1xf32>,
    } else {
    }
    return
  }
  func.func @transform_0(%arg0: i32) -> (i32, i32) {
    %c0_i32 = arith.constant 0 : i32
    %c0_i32_0 = arith.constant 0 : i32
    %c0_i32_1 = arith.constant 0 : i32
    return %c0_i32, %c0_i32_0 : i32, i32
  }
  func.func @transform_1(%arg0: i32) -> (i32, i32) {
    %c0_i32 = arith.constant 0 : i32
    %c0_i32_0 = arith.constant 0 : i32
    %c0_i32_1 = arith.constant 0 : i32
    return %c0_i32, %c0_i32_0 : i32, i32
  }
  func.func @transform_2(%arg0: i32) -> (i32, i32) {
    %c0_i32 = arith.constant 0 : i32
    %c0_i32_0 = arith.constant 0 : i32
    %c0_i32_1 = arith.constant 0 : i32
    return %c0_i32, %c0_i32_0 : i32, i32
  }
  func.func @transform_3(%arg0: i32) -> (i32, i32) {
    %c0_i32 = arith.constant 0 : i32
    %c0_i32_0 = arith.constant 0 : i32
    return %arg0, %c0_i32 : i32, i32
  }
  func.func @transform_4(%arg0: i32) -> (i32, i32) {
    %c0_i32 = arith.constant 0 : i32
    %c0_i32_0 = arith.constant 0 : i32
    return %arg0, %c0_i32 : i32, i32
  }
  func.func @transform_5(%arg0: i32) -> (i32, i32) {
    %c0_i32 = arith.constant 0 : i32
    %c0_i32_0 = arith.constant 0 : i32
    %c0_i32_1 = arith.constant 0 : i32
    return %c0_i32, %c0_i32_0 : i32, i32
  }
  func.func @transform_6(%arg0: i32) -> (i32, i32) {
    %c0_i32 = arith.constant 0 : i32
    %c0_i32_0 = arith.constant 0 : i32
    %c0_i32_1 = arith.constant 0 : i32
    return %c0_i32, %c0_i32_0 : i32, i32
  }
  func.func @transform_7(%arg0: i32) -> (i32, i32) {
    %c0_i32 = arith.constant 0 : i32
    %c0_i32_0 = arith.constant 0 : i32
    %c0_i32_1 = arith.constant 0 : i32
    return %c0_i32, %c0_i32_0 : i32, i32
  }
  func.func @transform_8(%arg0: i32) -> (i32, i32) {
    %c0_i32 = arith.constant 0 : i32
    %c0_i32_0 = arith.constant 0 : i32
    %c0_i32_1 = arith.constant 0 : i32
    return %c0_i32, %c0_i32_0 : i32, i32
  }
  func.func @transform_9(%arg0: i32) -> (i32, i32, i32) {
    %c0_i32 = arith.constant 0 : i32
    %c0_i32_0 = arith.constant 0 : i32
    %c0_i32_1 = arith.constant 0 : i32
    %c0_i32_2 = arith.constant 0 : i32
    return %c0_i32, %c0_i32_0, %c0_i32_1 : i32, i32, i32
  }
  func.func @transform_10(%arg0: i32) -> (i32, i32, i32) {
    %c0_i32 = arith.constant 0 : i32
    %c0_i32_0 = arith.constant 0 : i32
    %c0_i32_1 = arith.constant 0 : i32
    %c0_i32_2 = arith.constant 0 : i32
    return %c0_i32, %c0_i32_0, %c0_i32_1 : i32, i32, i32
  }
  func.func @transform_11(%arg0: i32) -> (i32, i32, i32) {
    %c0_i32 = arith.constant 0 : i32
    %c0_i32_0 = arith.constant 0 : i32
    %c0_i32_1 = arith.constant 0 : i32
    %c0_i32_2 = arith.constant 0 : i32
    return %c0_i32, %c0_i32_0, %c0_i32_1 : i32, i32, i32
  }
  func.func @transform_12(%arg0: i32) -> (i32, i32, i32) {
    %c0_i32 = arith.constant 0 : i32
    %c0_i32_0 = arith.constant 0 : i32
    %c0_i32_1 = arith.constant 0 : i32
    %c0_i32_2 = arith.constant 0 : i32
    return %c0_i32, %c0_i32_0, %c0_i32_1 : i32, i32, i32
  }
  func.func @transform_13(%arg0: i32) -> (i32, i32) {
    %c0_i32 = arith.constant 0 : i32
    %c0_i32_0 = arith.constant 0 : i32
    %c0_i32_1 = arith.constant 0 : i32
    return %c0_i32, %c0_i32_0 : i32, i32
  }
  func.func @transform_14(%arg0: i32) -> (i32, i32) {
    %c0_i32 = arith.constant 0 : i32
    %c0_i32_0 = arith.constant 0 : i32
    %c0_i32_1 = arith.constant 0 : i32
    return %c0_i32, %c0_i32_0 : i32, i32
  }
  func.func @transform_15(%arg0: i32) -> (i32, i32) {
    %c0_i32 = arith.constant 0 : i32
    %c0_i32_0 = arith.constant 0 : i32
    %c0_i32_1 = arith.constant 0 : i32
    return %c0_i32, %c0_i32_0 : i32, i32
  }
  func.func @transform_16(%arg0: i32) -> (i32, i32) {
    %c0_i32 = arith.constant 0 : i32
    %c0_i32_0 = arith.constant 0 : i32
    %c0_i32_1 = arith.constant 0 : i32
    return %c0_i32, %c0_i32_0 : i32, i32
  }
  func.func @transform_17(%arg0: i32) -> (i32, i32) {
    %c0_i32 = arith.constant 0 : i32
    %c0_i32_0 = arith.constant 0 : i32
    %c0_i32_1 = arith.constant 0 : i32
    return %c0_i32, %c0_i32_0 : i32, i32
  }
  func.func @transform_18(%arg0: i32) -> (i32, i32) {
    %c0_i32 = arith.constant 0 : i32
    %c0_i32_0 = arith.constant 0 : i32
    %c0_i32_1 = arith.constant 0 : i32
    return %c0_i32, %c0_i32_0 : i32, i32
  }
  func.func @transform_19(%arg0: i32) -> (i32, i32) {
    %c0_i32 = arith.constant 0 : i32
    %c0_i32_0 = arith.constant 0 : i32
    %c0_i32_1 = arith.constant 0 : i32
    return %c0_i32, %c0_i32_0 : i32, i32
  }
  func.func @transform_20(%arg0: i32) -> (i32, i32) {
    %c0_i32 = arith.constant 0 : i32
    %c0_i32_0 = arith.constant 0 : i32
    %c0_i32_1 = arith.constant 0 : i32
    return %c0_i32, %c0_i32_0 : i32, i32
  }
  func.func @transform_21(%arg0: i32) -> (i32, i32) {
    %c0_i32 = arith.constant 0 : i32
    %c0_i32_0 = arith.constant 0 : i32
    %c0_i32_1 = arith.constant 0 : i32
    return %c0_i32, %c0_i32_0 : i32, i32
  }
  func.func @transform_22(%arg0: i32) -> (i32, i32) {
    %c0_i32 = arith.constant 0 : i32
    %c0_i32_0 = arith.constant 0 : i32
    %c0_i32_1 = arith.constant 0 : i32
    return %c0_i32, %c0_i32_0 : i32, i32
  }
  func.func @transform_23(%arg0: i32) -> (i32, i32) {
    %c0_i32 = arith.constant 0 : i32
    %c0_i32_0 = arith.constant 0 : i32
    %c0_i32_1 = arith.constant 0 : i32
    return %c0_i32, %c0_i32_0 : i32, i32
  }
}

</mosaic_0001>

<bundles_post_ra>
// kernel: hgt_decoder_forward.2
= control target key start
LH: loop header
LB: loop body
LE: loop exit
PB: predicated region body
PF: predicated region fallthrough
CT: control target
= control target key end

     0   :  { %s1507_s18 = smov 0   ;;  %s1509_s19 = smov 0   ;;  %s1840_s0 = inlined_call_operand.vmem [shape: bf16[3,8,8,32], index: 0, kind: input, shape index: {}]   ;;  %s1841_s1 = inlined_call_operand.vmem [shape: f32[3,1,32], index: 1, kind: input, shape index: {}]   ;;  %s1842_s2 = inlined_call_operand.vmem [shape: f32[3,1,32], index: 2, kind: input, shape index: {}]   ;;  %s1843_s3 = inlined_call_operand.vmem [shape: bf16[3,4,32], index: 3, kind: input, shape index: {}]   ;;  %s1844_s4 = inlined_call_operand.vmem [shape: bf16[3,4,32,32], index: 4, kind: input, shape index: {}]   ;;  %s1845_s5 = inlined_call_operand.vmem [shape: f32[3,8,32], index: 5, kind: output, shape index: {}]  }
   0x1   :  { %s1511_s20 = smov 0  }
   0x2 LB: > { %s27_s21 = sadd.s32 1, %s1470_s19  ;;  %p1285_p0 = scmp.ge.s32.totalorder %s1474_s20, 1  ;;  %s1474_s20 = sphi %s1511_s20, %s15_s20   ;;  %s1470_s19 = sphi %s1509_s19, %s1855_s19   ;;  %s1466_s18 = sphi %s1507_s18, %s1854_s18  }
   0x3   : > { %p29_p1 = scmp.ge.s32.totalorder %s27_s21, 3  ;;  %p243_p2 = scmp.lt.s32.totalorder %s1474_s20, 4 }
   0x5   : > { %s1857_s21 = smov (%p29_p1, %s27_s21), 0  ;;  %p244_p3 = pnand %p1285_p0, %p243_p2 }
   0x6   : > { %p293_p4 = scmp.lt.s32.totalorder (!%p244_p3), %s1466_s18, 2 }
   0x7   : > { %247 = sbr.rel (%p244_p3) target bundleno = 993 (0x3e1), region = 40 }
   0xc   : > { %s1859_s18 = smov (!%p293_p4, %s1466_s18), 2  ;;  %vm341_vm0 = vcmask 261120   ;;  %v1476_v20 = vmov 32.0  }
   0xd   : > { %s1346_s22 = sshll.u32 %s1859_s18, 5  ;;  %1402 = vrcp.f32 %v1476_v20  ;;  %s304_s28 = scalar_lea.vmem %s1841_s1, %s1859_s18 }
   0xe   : > { %s300_s25 = scalar_lea.vmem %s1840_s0, %s1346_s22  ;;  %s307_s6 = scalar_lea.vmem %s1842_s2, %s1859_s18 }
   0xf   : > { %v1374_v0 = vld [vmem:[%s300_s25 + $0x18] sm:$0xff]   ;;  %v1372_v1 = vld [vmem:[%s300_s25 + $0x8] sm:$0xff]   ;;  %v1357_v2 = vld [vmem:[%s300_s25] sm:$0xff]   ;;  %s1288_s11 = sshll.u32 %s1859_s18, 1  ;;  %s1347_s15 = sshll.u32 %s1859_s18, 6 }
  0x10   : > { %v1370_v3 = vunpack.c.l.bf16 %v1374_v0  ;;  %v1362_v4 = vunpack.c.l.bf16 %v1372_v1  ;;  %v1358_v5 = vunpack.c.l.bf16 %v1357_v2  ;;  %v1371_v9 = vunpack.c.h.bf16 %v1374_v0  ;;  %v1373_v15 = vld [vmem:[%s300_s25 + $0x10] sm:$0xff]   ;;  %s311_s14 = scalar_lea.vmem %s1843_s3, %s1288_s11  ;;  %s316_s22 = scalar_lea.vmem %s1844_s4, %s1347_s15 }
  0x11   : > { %v1363_v10 = vunpack.c.h.bf16 %v1372_v1  ;;  %v1359_v11 = vunpack.c.h.bf16 %v1357_v2  ;;  %v1366_v16 = vunpack.c.l.bf16 %v1373_v15  ;;  %v1367_v17 = vunpack.c.h.bf16 %v1373_v15  ;;  %s1291_s23 = sshll.u32 %s1859_s18, 3 }
  0x12   : > { %v360_v6 = vsel %vm341_vm0, %v1370_v3, 0.0  ;;  %v348_v7 = vsel %vm341_vm0, %v1362_v4, 0.0  ;;  %v342_v8 = vsel %vm341_vm0, %v1358_v5, 0.0  ;;  %v363_v12 = vsel %vm341_vm0, %v1371_v9, 0.0  ;;  %s323_s26 = scalar_lea.vmem %s1845_s5, %s1291_s23 }
  0x13   : > { %361 = vadd.xlane.f32.xlu2 %v360_v6  ;;  %349 = vadd.xlane.f32.xlu0 %v348_v7  ;;  %v351_v13 = vsel %vm341_vm0, %v1363_v10, 0.0  ;;  %v345_v14 = vsel %vm341_vm0, %v1359_v11, 0.0  ;;  %v354_v18 = vsel %vm341_vm0, %v1366_v16, 0.0  ;;  %v357_v19 = vsel %vm341_vm0, %v1367_v17, 0.0  ;;  %v1403_v21 = vpop.eup %1402 }
  0x14   : > { %343 = vadd.xlane.f32.xlu1 %v342_v8  ;;  %v367_v22 = vmul.f32 32.0, %v1403_v21  ;;  %vm371_vm1 = vweird.f32 %v1403_v21 }
  0x16   : > { %v368_v23 = vsub.f32 1.0, %v367_v22 }
  0x18   : > { %v369_v24 = vmul.f32 %v1403_v21, %v368_v23 }
  0x1a   : > { %v370_v25 = vadd.f32 %v1403_v21, %v369_v24 }
  0x1b   : > { %364 = vadd.xlane.f32.xlu2 %v363_v12  ;;  %352 = vadd.xlane.f32.xlu0 %v351_v13 }
  0x1c   : > { %346 = vadd.xlane.f32.xlu1 %v345_v14  ;;  %v1539_v26 = vsel %vm371_vm1, %v1403_v21, %v370_v25 }
  0x23   : > { %355 = vadd.xlane.f32.xlu0 %v354_v18 }
  0x24   : > { %358 = vadd.xlane.f32.xlu1 %v357_v19 }
  0x86   : > { %v362_v27 = vpop.xlane.xlu2 %361  ;;  %v350_v28 = vpop.xlane.xlu0 %349 }
  0x87   : > { %v375_v29 = vmul.f32 %v1539_v26, %v350_v28  ;;  %v344_v30 = vpop.xlane.xlu1 %343  ;;  %v379_v40 = vmul.f32 %v1539_v26, %v362_v27 }
  0x88   : > { %v373_v31 = vmul.f32 %v1539_v26, %v344_v30 }
  0x89   : > { %v1543_v32 = vsub.f32 %v1362_v4, %v375_v29  ;;  %v1563_v48 = vsub.f32 %v1370_v3, %v379_v40 }
  0x8a   : > { %v1545_v33 = vsub.f32 %v1358_v5, %v373_v31 }
  0x8b   : > { %v391_v34 = vmul.f32 %v1543_v32, %v1543_v32  ;;  %v395_v57 = vmul.f32 %v1563_v48, %v1563_v48 }
  0x8c   : > { %v389_v35 = vmul.f32 %v1545_v33, %v1545_v33 }
  0x8d   : > { %v403_v36 = vsel %vm341_vm0, %v391_v34, 0.0  ;;  %v415_v61 = vsel %vm341_vm0, %v395_v57, 0.0 }
  0x8e   : > { %v365_v37 = vpop.xlane.xlu2 %364  ;;  %404 = vadd.xlane.f32.xlu2 %v403_v36  ;;  %v353_v38 = vpop.xlane.xlu0 %352  ;;  %v397_v39 = vsel %vm341_vm0, %v389_v35, 0.0 }
  0x8f   : > { %v380_v41 = vmul.f32 %v1539_v26, %v365_v37  ;;  %v376_v42 = vmul.f32 %v1539_v26, %v353_v38  ;;  %398 = vadd.xlane.f32.xlu1 %v397_v39  ;;  %v347_v43 = vpop.xlane.xlu1 %346 }
  0x90   : > { %v374_v44 = vmul.f32 %v1539_v26, %v347_v43 }
  0x91   : > { %v1557_v45 = vsub.f32 %v1371_v9, %v380_v41  ;;  %v1559_v46 = vsub.f32 %v1363_v10, %v376_v42 }
  0x92   : > { %v1561_v47 = vsub.f32 %v1359_v11, %v374_v44 }
  0x93   : > { %v392_v49 = vmul.f32 %v1559_v46, %v1559_v46  ;;  %v396_v50 = vmul.f32 %v1557_v45, %v1557_v45 }
  0x94   : > { %v390_v51 = vmul.f32 %v1561_v47, %v1561_v47 }
  0x95   : > { %v406_v52 = vsel %vm341_vm0, %v392_v49, 0.0  ;;  %v418_v53 = vsel %vm341_vm0, %v396_v50, 0.0  ;;  %v1638_v50 = vld [vmem:[%s304_s28] ss:$0 sm:$0xff] }
  0x96   : > { %407 = vadd.xlane.f32.xlu0 %v406_v52  ;;  %v356_v54 = vpop.xlane.xlu0 %355  ;;  %v400_v55 = vsel %vm341_vm0, %v390_v51, 0.0 }
  0x97   : > { %v377_v56 = vmul.f32 %v1539_v26, %v356_v54  ;;  %419 = vadd.xlane.f32.xlu1 %v418_v53  ;;  %401 = vadd.xlane.f32.xlu2 %v400_v55  ;;  %v359_v58 = vpop.xlane.xlu1 %358 }
  0x98   : > { %v378_v59 = vmul.f32 %v1539_v26, %v359_v58 }
  0x99   : > { %v1578_v60 = vsub.f32 %v1366_v16, %v377_v56 }
  0x9a   : > { %v1587_v63 = vsub.f32 %v1367_v17, %v378_v59 }
  0x9b   : > { %v393_v62 = vmul.f32 %v1578_v60, %v1578_v60 }
  0x9c   : > { %v394_v1 = vmul.f32 %v1587_v63, %v1587_v63 }
  0x9d   : > { %v409_v0 = vsel %vm341_vm0, %v393_v62, 0.0 }
  0x9e   : > { %416 = vadd.xlane.f32.xlu0 %v415_v61  ;;  %v412_v2 = vsel %vm341_vm0, %v394_v1, 0.0  ;;  %v1652_v61 = vld [vmem:[%s307_s6] ss:$0 sm:$0xff] }
  0x9f   : > { %410 = vadd.xlane.f32.xlu2 %v409_v0 }
  0xa6   : > { %413 = vadd.xlane.f32.xlu0 %v412_v2 }
 0x101   : > { %v405_v3 = vpop.xlane.xlu2 %404 }
 0x102   : > { %v423_v4 = vmul.f32 %v405_v3, %v1539_v26  ;;  %v399_v5 = vpop.xlane.xlu1 %398 }
 0x103   : > { %v421_v6 = vmul.f32 %v399_v5, %v1539_v26 }
 0x104   : > { %v431_v7 = vadd.f32 1e-05, %v423_v4 }
 0x105   : > { %v429_v8 = vadd.f32 1e-05, %v421_v6 }
 0x106   : > { %1404 = vrsqrt.f32 %v431_v7  ;;  %vm463_vm5 = vweird.f32 %v431_v7 }
 0x107   : > { %1406 = vrsqrt.f32 %v429_v8  ;;  %vm443_vm2 = vweird.f32 %v429_v8 }
 0x109   : > { %v408_v9 = vpop.xlane.xlu0 %407 }
 0x10a   : > { %v424_v10 = vmul.f32 %v408_v9, %v1539_v26  ;;  %v402_v11 = vpop.xlane.xlu2 %401  ;;  %v420_v12 = vpop.xlane.xlu1 %419 }
 0x10b   : > { %v422_v13 = vmul.f32 %v402_v11, %v1539_v26  ;;  %v428_v14 = vmul.f32 %v420_v12, %v1539_v26 }
 0x10c   : > { %v1405_v15 = vpop.eup %1404  ;;  %v1602_v16 = vadd.f32 1e-05, %v424_v10 }
 0x10d   : > { %v1407_v17 = vpop.eup %1406  ;;  %v458_v18 = vmul.f32 %v1405_v15, %v431_v7  ;;  %v1604_v19 = vadd.f32 1e-05, %v422_v13  ;;  %v1606_v20 = vadd.f32 1e-05, %v428_v14  ;;  %vm464_vm4 = vweird.f32 %v1405_v15 }
 0x10e   : > { %v438_v21 = vmul.f32 %v1407_v17, %v429_v8  ;;  %1408 = vrsqrt.f32 %v1602_v16  ;;  %vm444_vm3 = vweird.f32 %v1407_v17  ;;  %vm473_vm7 = vweird.f32 %v1602_v16  ;;  %vm465_vm9 = vmor %vm463_vm5, %vm464_vm4 }
 0x10f   : > { %v459_v22 = vmul.f32 %v1405_v15, %v458_v18  ;;  %1410 = vrsqrt.f32 %v1604_v19  ;;  %vm445_vm6 = vmor %vm443_vm2, %vm444_vm3  ;;  %vm453_vm8 = vweird.f32 %v1604_v19  ;;  %vm513_vm10 = vweird.f32 %v1606_v20 }
 0x110   : > { %v439_v23 = vmul.f32 %v1407_v17, %v438_v21  ;;  %1412 = vrsqrt.f32 %v1606_v20 }
 0x111   : > { %v460_v24 = vmul.f32 0.5, %v459_v22  ;;  %v417_v25 = vpop.xlane.xlu0 %416 }
 0x112   : > { %v440_v27 = vmul.f32 0.5, %v439_v23  ;;  %v427_v28 = vmul.f32 %v417_v25, %v1539_v26  ;;  %v411_v29 = vpop.xlane.xlu2 %410 }
 0x113   : > { %v461_v30 = vsub.f32 1.5, %v460_v24  ;;  %v425_v31 = vmul.f32 %v411_v29, %v1539_v26 }
 0x114   : > { %v1613_v34 = vpop.eup %1408  ;;  %v441_v35 = vsub.f32 1.5, %v440_v27  ;;  %v1615_v36 = vadd.f32 1e-05, %v427_v28 }
 0x115   : > { %v1617_v37 = vpop.eup %1410  ;;  %v462_v38 = vmul.f32 %v1405_v15, %v461_v30  ;;  %v468_v39 = vmul.f32 %v1613_v34, %v1602_v16  ;;  %v1621_v40 = vadd.f32 1e-05, %v425_v31  ;;  %vm474_vm11 = vweird.f32 %v1613_v34 }
 0x116   : > { %v1623_v41 = vpop.eup %1412  ;;  %v442_v42 = vmul.f32 %v1407_v17, %v441_v35  ;;  %v448_v43 = vmul.f32 %v1617_v37, %v1604_v19  ;;  %1414 = vrsqrt.f32 %v1615_v36  ;;  %vm454_vm12 = vweird.f32 %v1617_v37  ;;  %vm1666_vm14 = vmor %vm473_vm7, %vm474_vm11 }
 0x117   : > { %v469_v44 = vmul.f32 %v1613_v34, %v468_v39  ;;  %v508_v49 = vmul.f32 %v1623_v41, %v1606_v20  ;;  %1416 = vrsqrt.f32 %v1621_v40  ;;  %v466_v57 = vsel %vm465_vm9, %v1405_v15, %v462_v38  ;;  %vm1674_vm15 = vmor %vm453_vm8, %vm454_vm12 }
 0x118   : > { %v449_v51 = vmul.f32 %v1617_v37, %v448_v43  ;;  %v446_v52 = vsel %vm445_vm6, %v1407_v17, %v442_v42  ;;  %v519_v62 = vmul.f32 %v466_v57, %v1543_v32  ;;  %vm514_vm13 = vweird.f32 %v1623_v41 }
 0x119   : > { %v470_v53 = vmul.f32 0.5, %v469_v44  ;;  %v509_v54 = vmul.f32 %v1623_v41, %v508_v49  ;;  %v414_v55 = vpop.xlane.xlu0 %413  ;;  %v517_v56 = vmul.f32 %v446_v52, %v1545_v33  ;;  %vm483_vm1 = vweird.f32 %v1621_v40  ;;  %vm1684_vm2 = vmor %vm513_vm10, %vm514_vm13  ;;  %v557_v44 = vld [vmem:[%s311_s14] sm:$0x3] }
 0x11a   : > { %v450_v58 = vmul.f32 0.5, %v449_v51  ;;  %v426_v59 = vmul.f32 %v414_v55, %v1539_v26  ;;  %v531_v26 = vmul.f32 %v1638_v50, %v519_v62  ;;  %vm503_vm5 = vweird.f32 %v1615_v36 }
 0x11b   : > { %v471_v0 = vsub.f32 1.5, %v470_v53  ;;  %v510_v1 = vmul.f32 0.5, %v509_v54  ;;  %v529_v33 = vmul.f32 %v1638_v50, %v517_v56  ;;  %vm798_vm11 = vcmask 1043456  }
 0x11c   : > { %v1415_v2 = vpop.eup %1414  ;;  %v451_v3 = vsub.f32 1.5, %v450_v58  ;;  %v1658_v4 = vadd.f32 1e-05, %v426_v59  ;;  %v543_v17 = vadd.f32 %v1652_v61, %v531_v26  ;;  %vm697_vm12 = vcmask 60416  }
 0x11d   : > { %v472_v5 = vmul.f32 %v1613_v34, %v471_v0  ;;  %v511_v6 = vsub.f32 1.5, %v510_v1  ;;  %v498_v7 = vmul.f32 %v1415_v2, %v1615_v36  ;;  %v1417_v8 = vpop.eup %1416  ;;  %v541_v11 = vadd.f32 %v1652_v61, %v529_v33 }
 0x11e   : > { %v452_v9 = vmul.f32 %v1617_v37, %v451_v3  ;;  %1418 = vrsqrt.f32 %v1658_v4  ;;  %vm504_vm3 = vweird.f32 %v1415_v2  ;;  %v478_v15 = vmul.f32 %v1417_v8, %v1621_v40 }
 0x11f   : > { %v512_v12 = vmul.f32 %v1623_v41, %v511_v6  ;;  %v499_v14 = vmul.f32 %v1415_v2, %v498_v7  ;;  %v1689_v16 = vpack.c.bf16 %v541_v11, %v541_v11  ;;  %v476_v19 = vsel %vm1666_vm14, %v1613_v34, %v472_v5  ;;  %vm505_vm6 = vmor %vm503_vm5, %vm504_vm3 }
 0x120   : > { %v456_v18 = vsel %vm1674_vm15, %v1617_v37, %v452_v9  ;;  %v479_v21 = vmul.f32 %v1417_v8, %v478_v15  ;;  %v520_v23 = vmul.f32 %v476_v19, %v1559_v46  ;;  %vm484_vm4 = vweird.f32 %v1417_v8 }
 0x121   : > { %v500_v20 = vmul.f32 0.5, %v499_v14  ;;  %v518_v22 = vmul.f32 %v456_v18, %v1561_v47  ;;  %v562_v24 = vsel %vm341_vm0, %v1689_v16, 0  ;;  %v1703_v25 = vpack.c.bf16 %v543_v17, %v543_v17  ;;  %vm1722_vm7 = vmor %vm483_vm1, %vm484_vm4 }
 0x122   : > { %v516_v27 = vsel %vm1684_vm2, %v1623_v41, %v512_v12  ;;  %v480_v29 = vmul.f32 0.5, %v479_v21  ;;  %571 = vmatpush.bf16.xpose.msra.mxu0 %v562_v24  ;;  %v532_v31 = vmul.f32 %v1638_v50, %v520_v23  ;;  %vm493_vm8 = vweird.f32 %v1658_v4 }
 0x123   : > { %v501_v28 = vsub.f32 1.5, %v500_v20  ;;  %v530_v30 = vmul.f32 %v1638_v50, %v518_v22  ;;  %v594_v46 = vsel %vm341_vm0, %v1703_v25, 0  ;;  %v524_v34 = vmul.f32 %v516_v27, %v1557_v45 }
 0x124   : > { %v1419_v47 = vpop.eup %1418  ;;  %v481_v37 = vsub.f32 1.5, %v480_v29  ;;  %603 = vmatpush.bf16.xpose.msra.mxu2 %v594_v46  ;;  %v544_v41 = vadd.f32 %v1652_v61, %v532_v31  ;;  %v799_v9 = vsel %vm798_vm11, %v1689_v16, 0  ;;  %vm794_vm13 = vcmask 64512  }
 0x125   : > { %v502_v35 = vmul.f32 %v1415_v2, %v501_v28  ;;  %v488_v38 = vmul.f32 %v1419_v47, %v1658_v4  ;;  %v542_v39 = vadd.f32 %v1652_v61, %v530_v30  ;;  %v536_v45 = vmul.f32 %v1638_v50, %v524_v34 }
 0x126   : > { %v482_v42 = vmul.f32 %v1417_v8, %v481_v37  ;;  %v552_v52 = vpack.c.bf16 %v544_v41, %v544_v41  ;;  %vm494_vm9 = vweird.f32 %v1419_v47  ;;  %vm981_vm14 = vcmask 1041409  }
 0x127   : > { %v489_v43 = vmul.f32 %v1419_v47, %v488_v38  ;;  %v506_v49 = vsel %vm505_vm6, %v1415_v2, %v502_v35  ;;  %v550_v51 = vpack.c.bf16 %v542_v39, %v542_v39  ;;  %v548_v53 = vadd.f32 %v1652_v61, %v536_v45  ;;  %vm495_vm10 = vmor %vm493_vm8, %vm494_vm9 }
 0x128   : > { %v523_v40 = vmul.f32 %v506_v49, %v1563_v48  ;;  %v486_v55 = vsel %vm1722_vm7, %v1417_v8, %v482_v42  ;;  %v610_v57 = vsel %vm341_vm0, %v552_v52, 0  ;;  %v853_v8 = vsel %vm798_vm11, %v552_v52, 0 }
 0x129   : > { %v490_v54 = vmul.f32 0.5, %v489_v43  ;;  %1292 = vmatmul.msk.bf16.vlgmr.msra.gmra.mxu0 %vm341_vm0, %v557_v44  ;;  %v578_v56 = vsel %vm341_vm0, %v550_v51, 0  ;;  %v556_v58 = vpack.c.bf16 %v548_v53, %v548_v53  ;;  %v521_v59 = vmul.f32 %v486_v55, %v1578_v60  ;;  %619 = vmatpush.bf16.xpose.msra.mxu3 %v610_v57 }
 0x12a   : > { %587 = vmatpush.bf16.xpose.msra.mxu1 %v578_v56  ;;  %v535_v48 = vmul.f32 %v1638_v50, %v523_v40  ;;  %vm984_vm15 = vcmask 1042434   ;;  %vm987_vm1 = vcmask 1043459   ;;  %vm990_vm2 = vcmask 1044484  }
 0x12b   : > { %v491_v62 = vsub.f32 1.5, %v490_v54  ;;  %1294 = vmatmul.msk.bf16.vlgmr.msra.gmra.mxu2 %vm341_vm0, %v557_v44  ;;  %v674_v0 = vsel %vm341_vm0, %v556_v58, 0  ;;  %v533_v1 = vmul.f32 %v1638_v50, %v521_v59  ;;  %vm993_vm3 = vcmask 1045509  }
 0x12c   : > { %v547_v2 = vadd.f32 %v1652_v61, %v535_v48  ;;  %vm996_vm4 = vcmask 1046534   ;;  %vm999_vm5 = vcmask 1047559  }
 0x12d   : > { %v492_v33 = vmul.f32 %v1419_v47, %v491_v62  ;;  %v545_v60 = vadd.f32 %v1652_v61, %v533_v1 }
 0x12e   : > { %v555_v3 = vpack.c.bf16 %v547_v2, %v547_v2 }
 0x12f   : > { %v496_v4 = vsel %vm495_vm10, %v1419_v47, %v492_v33  ;;  %v553_v26 = vpack.c.bf16 %v545_v60, %v545_v60 }
 0x130   : > { %v522_v5 = vmul.f32 %v496_v4, %v1587_v63  ;;  %v658_v32 = vsel %vm341_vm0, %v555_v3, 0  ;;  %1295 = vmatmul.msk.bf16.vlgmr.msra.gmra.mxu3 %vm341_vm0, %v557_v44  ;;  %v835_v63 = vsel %vm798_vm11, %v1703_v25, 0  ;;  %v907_v14 = vsel %vm798_vm11, %v555_v3, 0 }
 0x131   : > { %683 = vmatpush.bf16.xpose.msrb.mxu3 %v674_v0  ;;  %1293 = vmatmul.msk.bf16.vlgmr.msra.gmra.mxu1 %vm341_vm0, %v557_v44  ;;  %v626_v6 = vsel %vm341_vm0, %v553_v26, 0  ;;  %v871_v13 = vsel %vm798_vm11, %v553_v26, 0 }
 0x132   : > { %v534_v7 = vmul.f32 %v1638_v50, %v522_v5  ;;  %635 = vmatpush.bf16.xpose.msrb.mxu0 %v626_v6  ;;  %667 = vmatpush.bf16.xpose.msrb.mxu2 %v658_v32  ;;  %v817_v50 = vsel %vm798_vm11, %v550_v51, 0 }
 0x134   : > { %v546_v10 = vadd.f32 %v1652_v61, %v534_v7  ;;  %v925_v61 = vsel %vm798_vm11, %v556_v58, 0 }
 0x136   : > { %v554_v11 = vpack.c.bf16 %v546_v10, %v546_v10 }
 0x138   : > { %v642_v12 = vsel %vm341_vm0, %v554_v11, 0  ;;  %v889_v15 = vsel %vm798_vm11, %v554_v11, 0 }
 0x139   : > { %862 = vmatpush.bf16.msra.mxu3 %v853_v8  ;;  %651 = vmatpush.bf16.xpose.msrb.mxu1 %v642_v12 }
 0x13a   : > { %808 = vmatpush.bf16.msra.mxu0 %v799_v9  ;;  %844 = vmatpush.bf16.msra.mxu2 %v835_v63 }
 0x13b   : > { %1296 = vmatmul.msk.bf16.vlgmr.msrb.gmra.mxu0 %vm341_vm0, %v557_v44  ;;  %1298 = vmatmul.msk.bf16.vlgmr.msrb.gmra.mxu2 %vm341_vm0, %v557_v44 }
 0x13e   : > { %880 = vmatpush.bf16.msrb.mxu0 %v871_v13  ;;  %916 = vmatpush.bf16.msrb.mxu2 %v907_v14 }
 0x140   : > { %1299 = vmatmul.msk.bf16.vlgmr.msrb.gmra.mxu3 %vm341_vm0, %v557_v44 }
 0x141   : > { %826 = vmatpush.bf16.msra.mxu1 %v817_v50  ;;  %934 = vmatpush.bf16.msrb.mxu3 %v925_v61 }
 0x142   : > { %1297 = vmatmul.msk.bf16.vlgmr.msrb.gmra.mxu1 %vm341_vm0, %v557_v44 }
 0x145   : > { %898 = vmatpush.bf16.msrb.mxu1 %v889_v15 }
 0x1a6   : > { %v573_v16 = vpop.f32.mrf.mxu0 }
 0x1a7   : > { %v689_v17 = vmul.f32 0.35355338, %v573_v16 }
 0x1a9   : > { %v698_v18 = vsel %vm697_vm12, %v689_v17, -inf }
 0x1aa   : > { %699 = vmax.xlane.f32.xlu0 %v698_v18 }
 0x1ae   : > { %v605_v19 = vpop.f32.mrf.mxu2  ;;  %v575_v20 = vpop.f32.mrf.mxu0 }
 0x1af   : > { %v691_v21 = vmul.f32 0.35355338, %v605_v19  ;;  %v589_v22 = vpop.f32.mrf.mxu1 }
 0x1b0   : > { %v690_v24 = vmul.f32 0.35355338, %v589_v22 }
 0x1b1   : > { %v704_v23 = vsel %vm697_vm12, %v691_v21, -inf }
 0x1b2   : > { %705 = vmax.xlane.f32.xlu1 %v704_v23  ;;  %v701_v31 = vsel %vm697_vm12, %v690_v24, -inf }
 0x1b3   : > { %v621_v25 = vpop.f32.mrf.mxu3 }
 0x1b4   : > { %v692_v27 = vmul.f32 0.35355338, %v621_v25 }
 0x1b6   : > { %v607_v28 = vpop.f32.mrf.mxu2  ;;  %v707_v30 = vsel %vm697_vm12, %v692_v27, -inf }
 0x1b7   : > { %v591_v47 = vpop.f32.mrf.mxu1  ;;  %708 = vmax.xlane.f32.xlu2 %v707_v30 }
 0x1b8   : > { %v637_v29 = vpop.f32.mrf.mxu0 }
 0x1b9   : > { %v693_v46 = vmul.f32 0.35355338, %v637_v29 }
 0x1ba   : > { %702 = vmax.xlane.f32.xlu1 %v701_v31 }
 0x1bb   : > { %v623_v34 = vpop.f32.mrf.mxu3  ;;  %v710_v36 = vsel %vm697_vm12, %v693_v46, -inf }
 0x1be   : > { %v669_v35 = vpop.f32.mrf.mxu2 }
 0x1bf   : > { %v695_v38 = vmul.f32 0.35355338, %v669_v35  ;;  %v653_v39 = vpop.f32.mrf.mxu1 }
 0x1c0   : > { %v639_v37 = vpop.f32.mrf.mxu0  ;;  %v694_v45 = vmul.f32 0.35355338, %v653_v39 }
 0x1c1   : > { %v716_v41 = vsel %vm697_vm12, %v695_v38, -inf }
 0x1c2   : > { %717 = vmax.xlane.f32.xlu2 %v716_v41  ;;  %711 = vmax.xlane.f32.xlu1 %v710_v36  ;;  %v713_v49 = vsel %vm697_vm12, %v694_v45, -inf }
 0x1c3   : > { %v685_v42 = vpop.f32.mrf.mxu3 }
 0x1c4   : > { %v696_v43 = vmul.f32 0.35355338, %v685_v42 }
 0x1c6   : > { %v671_v44 = vpop.f32.mrf.mxu2  ;;  %v719_v51 = vsel %vm697_vm12, %v696_v43, -inf }
 0x1c7   : > { %v655_v52 = vpop.f32.mrf.mxu1  ;;  %720 = vmax.xlane.f32.xlu0 %v719_v51 }
 0x1ca   : > { %714 = vmax.xlane.f32.xlu2 %v713_v49 }
 0x1cb   : > { %v687_v53 = vpop.f32.mrf.mxu3 }
 0x21d   : > { %v700_v40 = vpop.xlane.xlu0 %699 }
 0x21e   : > { %v722_v54 = vsub.f32 %v689_v17, %v700_v40 }
 0x220   : > { %v730_v55 = vmul.f32 1.442695, %v722_v54 }
 0x222   : > { %1420 = vpow2.f32 %v730_v55 }
 0x225   : > { %v706_v56 = vpop.xlane.xlu1 %705 }
 0x226   : > { %v724_v57 = vsub.f32 %v691_v21, %v706_v56 }
 0x228   : > { %v1421_v58 = vpop.eup %1420  ;;  %v734_v59 = vmul.f32 1.442695, %v724_v57 }
 0x229   : > { %v746_v62 = vsel %vm697_vm12, %v1421_v58, 0.0 }
 0x22a   : > { %1422 = vpow2.f32 %v734_v59  ;;  %747 = vadd.xlane.f32.xlu2 %v746_v62  ;;  %v709_v48 = vpop.xlane.xlu2 %708 }
 0x22b   : > { %v725_v0 = vsub.f32 %v692_v27, %v709_v48 }
 0x22d   : > { %v703_v1 = vpop.xlane.xlu1 %702  ;;  %v736_v33 = vmul.f32 1.442695, %v725_v0 }
 0x22e   : > { %v723_v2 = vsub.f32 %v690_v24, %v703_v1  ;;  %v1353_v1 = vld [vmem:[%s316_s22 + $0x28] sm:$0xff] }
 0x22f   : > { %1424 = vpow2.f32 %v736_v33  ;;  %v1355_v33 = vld [vmem:[%s316_s22 + $0x38] sm:$0xff] }
 0x230   : > { %v1423_v60 = vpop.eup %1422  ;;  %v732_v3 = vmul.f32 1.442695, %v723_v2  ;;  %v1351_v2 = vld [vmem:[%s316_s22 + $0x18] sm:$0xff] }
 0x231   : > { %v752_v4 = vsel %vm697_vm12, %v1423_v60, 0.0 }
 0x232   : > { %1426 = vpow2.f32 %v732_v3  ;;  %753 = vadd.xlane.f32.xlu0 %v752_v4  ;;  %v1352_v3 = vld [vmem:[%s316_s22 + $0x20] sm:$0xff]  ;;  %v1354_v4 = vld [vmem:[%s316_s22 + $0x30] sm:$0xff] }
 0x235   : > { %v718_v26 = vpop.xlane.xlu2 %717  ;;  %v712_v5 = vpop.xlane.xlu1 %711 }
 0x236   : > { %v1425_v32 = vpop.eup %1424  ;;  %v728_v6 = vsub.f32 %v695_v38, %v718_v26  ;;  %v726_v7 = vsub.f32 %v693_v46, %v712_v5  ;;  %v1350_v26 = vld [vmem:[%s316_s22 + $0x10] sm:$0xff]  ;;  %v1348_v5 = vld [vmem:[%s316_s22] sm:$0xff] }
 0x237   : > { %v755_v8 = vsel %vm697_vm12, %v1425_v32, 0.0 }
 0x238   : > { %v1427_v9 = vpop.eup %1426  ;;  %v742_v63 = vmul.f32 1.442695, %v728_v6  ;;  %v738_v10 = vmul.f32 1.442695, %v726_v7  ;;  %756 = vadd.xlane.f32.xlu1 %v755_v8 }
 0x239   : > { %v749_v11 = vsel %vm697_vm12, %v1427_v9, 0.0 }
 0x23a   : > { %1428 = vpow2.f32 %v742_v63  ;;  %750 = vadd.xlane.f32.xlu0 %v749_v11  ;;  %v721_v12 = vpop.xlane.xlu0 %720 }
 0x23b   : > { %1430 = vpow2.f32 %v738_v10  ;;  %v729_v50 = vsub.f32 %v696_v43, %v721_v12 }
 0x23d   : > { %v715_v13 = vpop.xlane.xlu2 %714  ;;  %v744_v61 = vmul.f32 1.442695, %v729_v50 }
 0x23e   : > { %v727_v14 = vsub.f32 %v694_v45, %v715_v13 }
 0x23f   : > { %1432 = vpow2.f32 %v744_v61 }
 0x240   : > { %v1429_v15 = vpop.eup %1428  ;;  %v740_v16 = vmul.f32 1.442695, %v727_v14 }
 0x241   : > { %v1431_v17 = vpop.eup %1430  ;;  %v764_v18 = vsel %vm697_vm12, %v1429_v15, 0.0 }
 0x242   : > { %1434 = vpow2.f32 %v740_v16  ;;  %765 = vadd.xlane.f32.xlu1 %v764_v18  ;;  %v758_v19 = vsel %vm697_vm12, %v1431_v17, 0.0 }
 0x243   : > { %759 = vadd.xlane.f32.xlu0 %v758_v19 }
 0x245   : > { %v1433_v20 = vpop.eup %1432 }
 0x246   : > { %v767_v21 = vsel %vm697_vm12, %v1433_v20, 0.0 }
 0x247   : > { %768 = vadd.xlane.f32.xlu2 %v767_v21 }
 0x248   : > { %v1435_v22 = vpop.eup %1434 }
 0x249   : > { %v761_v23 = vsel %vm697_vm12, %v1435_v22, 0.0 }
 0x24a   : > { %762 = vadd.xlane.f32.xlu1 %v761_v23 }
 0x29d   : > { %v748_v24 = vpop.xlane.xlu2 %747 }
 0x29e   : > { %1436 = vrcp.f32 %v748_v24 }
 0x2a4   : > { %v1437_v25 = vpop.eup %1436 }
 0x2a5   : > { %v778_v27 = vmul.f32 %v1437_v25, %v1421_v58  ;;  %v754_v28 = vpop.xlane.xlu0 %753 }
 0x2a6   : > { %1438 = vrcp.f32 %v754_v28 }
 0x2a7   : > { %v786_v29 = vpack.c.bf16 %v778_v27, %v778_v27 }
 0x2a9   : > { %1300 = vmatmul.msk.bf16.vlgmr.msra.gmra.mxu0 %vm794_vm13, %v786_v29 }
 0x2aa   : > { %1023 = vmatpush.bf16.msra.mxu0 %v1351_v2 }
 0x2ab   : > { %v757_v30 = vpop.xlane.xlu1 %756 }
 0x2ac   : > { %v1439_v31 = vpop.eup %1438  ;;  %1440 = vrcp.f32 %v757_v30 }
 0x2ad   : > { %v780_v47 = vmul.f32 %v1439_v31, %v1423_v60  ;;  %v751_v46 = vpop.xlane.xlu0 %750  ;;  %v1349_v60 = vld [vmem:[%s316_s22 + $0x8] sm:$0xff] }
 0x2ae   : > { %1442 = vrcp.f32 %v751_v46  ;;  %1024 = vmatpush.bf16.msra.mxu0 %v1350_v26 }
 0x2af   : > { %v788_v34 = vpack.c.bf16 %v780_v47, %v780_v47 }
 0x2b1   : > { %1302 = vmatmul.msk.bf16.vlgmr.msra.gmra.mxu2 %vm794_vm13, %v788_v34 }
 0x2b2   : > { %v1441_v35 = vpop.eup %1440  ;;  %1109 = vmatpush.bf16.msra.mxu2 %v1353_v1 }
 0x2b3   : > { %v781_v37 = vmul.f32 %v1441_v35, %v1425_v32 }
 0x2b4   : > { %v1443_v38 = vpop.eup %1442 }
 0x2b5   : > { %v779_v36 = vmul.f32 %v1443_v38, %v1427_v9  ;;  %v789_v39 = vpack.c.bf16 %v781_v37, %v781_v37  ;;  %v766_v41 = vpop.xlane.xlu1 %765 }
 0x2b6   : > { %v760_v45 = vpop.xlane.xlu0 %759  ;;  %1444 = vrcp.f32 %v766_v41  ;;  %1110 = vmatpush.bf16.msra.mxu2 %v1352_v3 }
 0x2b7   : > { %v787_v42 = vpack.c.bf16 %v779_v36, %v779_v36  ;;  %1446 = vrcp.f32 %v760_v45  ;;  %1303 = vmatmul.msk.bf16.vlgmr.msra.gmra.mxu3 %vm794_vm13, %v789_v39 }
 0x2b8   : > { %1153 = vmatpush.bf16.msra.mxu3 %v1355_v33 }
 0x2b9   : > { %1301 = vmatmul.msk.bf16.vlgmr.msra.gmra.mxu1 %vm794_vm13, %v787_v42 }
 0x2ba   : > { %v769_v43 = vpop.xlane.xlu2 %768  ;;  %1066 = vmatpush.bf16.msra.mxu1 %v1349_v60 }
 0x2bb   : > { %1448 = vrcp.f32 %v769_v43 }
 0x2bc   : > { %v1445_v44 = vpop.eup %1444  ;;  %1154 = vmatpush.bf16.msra.mxu3 %v1354_v4 }
 0x2bd   : > { %v1447_v49 = vpop.eup %1446  ;;  %v784_v51 = vmul.f32 %v1445_v44, %v1429_v15  ;;  %v763_v52 = vpop.xlane.xlu1 %762 }
 0x2be   : > { %v782_v53 = vmul.f32 %v1447_v49, %v1431_v17  ;;  %1450 = vrcp.f32 %v763_v52  ;;  %1067 = vmatpush.bf16.msra.mxu1 %v1348_v5 }
 0x2bf   : > { %v792_v40 = vpack.c.bf16 %v784_v51, %v784_v51 }
 0x2c0   : > { %v790_v54 = vpack.c.bf16 %v782_v53, %v782_v53 }
 0x2c1   : > { %1306 = vmatmul.msk.bf16.vlgmr.msrb.gmra.mxu2 %vm794_vm13, %v792_v40  ;;  %v1449_v55 = vpop.eup %1448 }
 0x2c2   : > { %1304 = vmatmul.msk.bf16.vlgmr.msrb.gmra.mxu0 %vm794_vm13, %v790_v54  ;;  %v785_v56 = vmul.f32 %v1449_v55, %v1433_v20 }
 0x2c4   : > { %v1451_v57 = vpop.eup %1450  ;;  %v793_v58 = vpack.c.bf16 %v785_v56, %v785_v56 }
 0x2c5   : > { %v783_v59 = vmul.f32 %v1451_v57, %v1435_v22 }
 0x2c7   : > { %v791_v62 = vpack.c.bf16 %v783_v59, %v783_v59  ;;  %1307 = vmatmul.msk.bf16.vlgmr.msrb.gmra.mxu3 %vm794_vm13, %v793_v58 }
 0x2c9   : > { %1305 = vmatmul.msk.bf16.vlgmr.msrb.gmra.mxu1 %vm794_vm13, %v791_v62 }
 0x326   : > { %v810_v48 = vpop.f32.mrf.mxu0 }
 0x327   : > { %v956_v8 = vpack.c.bf16 %v810_v48, %v810_v48 }
 0x329   : > { %v972_v50 = vunpack.c.l.b16 %v956_v8 }
 0x32b   : > { %v980_v18 = vrot.slane %v972_v50, 1  ;;  %v1073_v20 = vrot.slane %v972_v50, 2  ;;  %v1117_v29 = vrot.slane %v972_v50, 3 }
 0x32e   : > { %v812_v0 = vpop.f32.mrf.mxu0 }
 0x334   : > { %v846_v32 = vpop.f32.mrf.mxu2 }
 0x335   : > { %v958_v9 = vpack.c.bf16 %v846_v32, %v846_v32 }
 0x336   : > { %v828_v6 = vpop.f32.mrf.mxu1 }
 0x337   : > { %v957_v7 = vpack.c.bf16 %v828_v6, %v828_v6  ;;  %v974_v13 = vunpack.c.l.b16 %v958_v9 }
 0x339   : > { %v973_v10 = vunpack.c.l.b16 %v957_v7  ;;  %v983_v21 = vrot.slane %v974_v13, 7  ;;  %v1032_v30 = vrot.slane %v974_v13, 6  ;;  %v1120_v46 = vrot.slane %v974_v13, 1 }
 0x33a   : > { %v864_v63 = vpop.f32.mrf.mxu3 }
 0x33b   : > { %v959_v12 = vpack.c.bf16 %v864_v63, %v864_v63  ;;  %v1030_v61 = vrot.slane %v973_v10, 7  ;;  %v1074_v17 = vrot.slane %v973_v10, 1  ;;  %v1118_v22 = vrot.slane %v973_v10, 2 }
 0x33c   : > { %v848_v11 = vpop.f32.mrf.mxu2  ;;  %v982_v24 = vsel %vm981_vm14, %v973_v10, %v980_v18 }
 0x33d   : > { %v975_v15 = vunpack.c.l.b16 %v959_v12  ;;  %v1031_v25 = vsel %vm981_vm14, %v1030_v61, %v972_v50  ;;  %v1075_v31 = vsel %vm981_vm14, %v1074_v17, %v1073_v20  ;;  %v985_v37 = vsel %vm984_vm15, %v983_v21, %v982_v24 }
 0x33e   : > { %v830_v14 = vpop.f32.mrf.mxu1  ;;  %v1033_v38 = vsel %vm984_vm15, %v1032_v30, %v1031_v25  ;;  %v1119_v36 = vsel %vm981_vm14, %v1118_v22, %v1117_v29  ;;  %v1076_v42 = vsel %vm984_vm15, %v974_v13, %v1075_v31 }
 0x33f   : > { %v882_v16 = vpop.f32.mrf.mxu0  ;;  %v986_v27 = vrot.slane %v975_v15, 6  ;;  %v1034_v34 = vrot.slane %v975_v15, 5  ;;  %v1077_v35 = vrot.slane %v975_v15, 7  ;;  %v1121_v56 = vsel %vm984_vm15, %v1120_v46, %v1119_v36 }
 0x340   : > { %v960_v19 = vpack.c.bf16 %v882_v16, %v882_v16  ;;  %v1122_v58 = vsel %vm987_vm1, %v975_v15, %v1121_v56 }
 0x341   : > { %v988_v45 = vsel %vm987_vm1, %v986_v27, %v985_v37  ;;  %v1035_v54 = vsel %vm987_vm1, %v1034_v34, %v1033_v38  ;;  %v1078_v55 = vsel %vm987_vm1, %v1077_v35, %v1076_v42 }
 0x342   : > { %v866_v23 = vpop.f32.mrf.mxu3  ;;  %v976_v28 = vunpack.c.l.b16 %v960_v19 }
 0x344   : > { %v918_v47 = vpop.f32.mrf.mxu2  ;;  %v989_v43 = vrot.slane %v976_v28, 5  ;;  %v1036_v44 = vrot.slane %v976_v28, 4  ;;  %v1079_v51 = vrot.slane %v976_v28, 6  ;;  %v1123_v52 = vrot.slane %v976_v28, 7 }
 0x345   : > { %v962_v39 = vpack.c.bf16 %v918_v47, %v918_v47 }
 0x346   : > { %v900_v41 = vpop.f32.mrf.mxu1  ;;  %v991_v59 = vsel %vm990_vm2, %v989_v43, %v988_v45  ;;  %v1037_v0 = vsel %vm990_vm2, %v1036_v44, %v1035_v54  ;;  %v1080_v1 = vsel %vm990_vm2, %v1079_v51, %v1078_v55  ;;  %v1124_v33 = vsel %vm990_vm2, %v1123_v52, %v1122_v58 }
 0x347   : > { %v884_v49 = vpop.f32.mrf.mxu0  ;;  %v978_v53 = vunpack.c.l.b16 %v962_v39  ;;  %v961_v40 = vpack.c.bf16 %v900_v41, %v900_v41 }
 0x349   : > { %v977_v62 = vunpack.c.l.b16 %v961_v40  ;;  %v995_v2 = vrot.slane %v978_v53, 3  ;;  %v1040_v32 = vrot.slane %v978_v53, 2  ;;  %v1083_v6 = vrot.slane %v978_v53, 4 }
 0x34a   : > { %v936_v57 = vpop.f32.mrf.mxu3  ;;  %v1127_v7 = vrot.slane %v978_v53, 5 }
 0x34b   : > { %v963_v48 = vpack.c.bf16 %v936_v57, %v936_v57  ;;  %v992_v3 = vrot.slane %v977_v62, 4  ;;  %v1038_v4 = vrot.slane %v977_v62, 3  ;;  %v1081_v26 = vrot.slane %v977_v62, 5 }
 0x34c   : > { %v920_v60 = vpop.f32.mrf.mxu2  ;;  %v1125_v5 = vrot.slane %v977_v62, 6 }
 0x34d   : > { %v979_v8 = vunpack.c.l.b16 %v963_v48  ;;  %v994_v63 = vsel %vm993_vm3, %v992_v3, %v991_v59  ;;  %v1039_v10 = vsel %vm993_vm3, %v1038_v4, %v1037_v0  ;;  %v1082_v11 = vsel %vm993_vm3, %v1081_v26, %v1080_v1 }
 0x34e   : > { %v902_v9 = vpop.f32.mrf.mxu1  ;;  %v1126_v12 = vsel %vm993_vm3, %v1125_v5, %v1124_v33  ;;  %v997_v15 = vsel %vm996_vm4, %v995_v2, %v994_v63  ;;  %v1041_v16 = vsel %vm996_vm4, %v1040_v32, %v1039_v10  ;;  %v1084_v17 = vsel %vm996_vm4, %v1083_v6, %v1082_v11 }
 0x34f   : > { %v998_v50 = vrot.slane %v979_v8, 2  ;;  %v1042_v13 = vrot.slane %v979_v8, 1  ;;  %v1085_v14 = vrot.slane %v979_v8, 3  ;;  %v1129_v61 = vrot.slane %v979_v8, 4 }
 0x350   : > { %v1128_v18 = vsel %vm996_vm4, %v1127_v7, %v1126_v12 }
 0x351   : > { %v1000_v20 = vsel %vm999_vm5, %v998_v50, %v997_v15  ;;  %v1043_v21 = vsel %vm999_vm5, %v1042_v13, %v1041_v16  ;;  %v1086_v22 = vsel %vm999_vm5, %v1085_v14, %v1084_v17  ;;  %v1130_v23 = vsel %vm999_vm5, %v1129_v61, %v1128_v18 }
 0x352   : > { %v938_v19 = vpop.f32.mrf.mxu3  ;;  %v1001_v24 = vpack.c.b16 %v1000_v20, %v1000_v20  ;;  %v1044_v25 = vpack.c.b16 %v1043_v21, %v1043_v21  ;;  %v1087_v27 = vpack.c.b16 %v1086_v22, %v1086_v22  ;;  %v1131_v28 = vpack.c.b16 %v1130_v23, %v1130_v23 }
 0x354   : > { %1316 = vmatmul.msk.bf16.vlgmr.msra.gmra.mxu0 %vm341_vm0, %v1001_v24  ;;  %1325 = vmatmul.msk.bf16.vlgmr.msra.gmra.mxu1 %vm341_vm0, %v1044_v25 }
 0x355   : > { %1334 = vmatmul.msk.bf16.vlgmr.msra.gmra.mxu2 %vm341_vm0, %v1087_v27  ;;  %1343 = vmatmul.msk.bf16.vlgmr.msra.gmra.mxu3 %vm341_vm0, %v1131_v28 }
 0x3d1   : > { %v1026_v29 = vpop.f32.mrf.mxu0  ;;  %v1069_v30 = vpop.f32.mrf.mxu1 }
 0x3d2   : > { %v1070_v31 = vadd.f32 %v1069_v30, %v1026_v29 }
 0x3d8   : > { %v1112_v47 = vpop.f32.mrf.mxu2  ;;  %v1156_v46 = vpop.f32.mrf.mxu3 }
 0x3d9   : > { %v1116_v34 = vadd.f32 %v1112_v47, %v1070_v31  ;;  %v1028_v35 = vpop.f32.mrf.mxu0  ;;  %v1071_v37 = vpop.f32.mrf.mxu1 }
 0x3db   : > { %v1160_v38 = vadd.f32 %v1156_v46, %v1116_v34 }
 0x3dd   : > { %1161 = vst.msk [vmem:[%s323_s26] sm:$0xff] %vm341_vm0, %v1160_v38 }
 0x3e0   : > { %v1114_v36 = vpop.f32.mrf.mxu2  ;;  %v1158_v39 = vpop.f32.mrf.mxu3 }
 0x3e1 PF: > { %s15_s20 = sadd.s32 1, %s1474_s20   ;;  %s1854_s18 = smov %s1470_s19 }
 0x3e2   : > { %p12_p5 = scmp.ge.s32.totalorder %s15_s20, 5   ;;  %s1855_s19 = smov %s1857_s21 }
 0x3e4   :  { %14 = sbr.rel (!%p12_p5) target bundleno = 2 (0x2), region = 82 }

// kernel: hgt_decoder_forward.3
= control target key start
LH: loop header
LB: loop body
LE: loop exit
PB: predicated region body
PF: predicated region fallthrough
CT: control target
= control target key end

     0   :  { %s3668_s0 = inlined_call_operand.vmem [shape: f32[6,32], index: 0, kind: input, shape index: {}]   ;;  %s3669_s1 = inlined_call_operand.vmem [shape: f32[6,32], index: 1, kind: input, shape index: {}]   ;;  %s3670_s2 = inlined_call_operand.vmem [shape: f32[6,6], index: 2, kind: input, shape index: {}]   ;;  %s3671_s3 = inlined_call_operand.vmem [shape: bf16[16,32], index: 3, kind: input, shape index: {}]   ;;  %s3672_s4 = inlined_call_operand.vmem [shape: bf16[16,32], index: 4, kind: input, shape index: {}]   ;;  %s3673_s5 = inlined_call_operand.vmem [shape: bf16[32,32], index: 5, kind: input, shape index: {}]   ;;  %s3674_s6 = inlined_call_operand.vmem [shape: bf16[32,32], index: 6, kind: input, shape index: {}]   ;;  %s3675_s7 = inlined_call_operand.vmem [shape: bf16[32,32], index: 7, kind: input, shape index: {}]   ;;  %s3676_s8 = inlined_call_operand.vmem [shape: bf16[32,32], index: 8, kind: input, shape index: {}]   ;;  %s3677_s9 = inlined_call_operand.vmem [shape: bf16[3,32,32], index: 9, kind: input, shape index: {}]   ;;  %s3678_s10 = inlined_call_operand.vmem [shape: bf16[3,32,32], index: 10, kind: input, shape index: {}]   ;;  %s3679_s11 = inlined_call_operand.vmem [shape: bf16[3,32,32], index: 11, kind: input, shape index: {}]   ;;  %s3680_s12 = inlined_call_operand.vmem [shape: bf16[3,32,32], index: 12, kind: input, shape index: {}]   ;;  %s3681_s13 = inlined_call_operand.vmem [shape: bf16[96,96], index: 13, kind: input, shape index: {}]   ;;  %s3682_s14 = inlined_call_operand.vmem [shape: f32[1,96], index: 14, kind: input, shape index: {}]   ;;  %s3683_s15 = inlined_call_operand.vmem [shape: f32[32,4], index: 15, kind: input, shape index: {}]   ;;  %s3684_s16 = inlined_call_operand.vmem [shape: bf16[32,512], index: 16, kind: input, shape index: {}]   ;;  %s3685_s17 = inlined_call_operand.vmem [shape: f32[1,512], index: 17, kind: input, shape index: {}]   ;;  %s3686_s18 = inlined_call_operand.vmem [shape: f32[1,128], index: 18, kind: input, shape index: {}]   ;;  %s3687_s19 = inlined_call_operand.vmem [shape: f32[1,128], index: 19, kind: input, shape index: {}]   ;;  %s3688_s20 = inlined_call_operand.vmem [shape: bf16[128,128], index: 20, kind: input, shape index: {}]   ;;  %s3689_s21 = inlined_call_operand.hbm [shape: f32[6,128], index: 21, kind: output, shape index: {0}]   ;;  %s3690_s22 = inlined_call_operand.hbm [shape: f32[1,1], index: 22, kind: output, shape index: {1}]   ;;  %s3691_s23 = inlined_call_operand.hbm [shape: f32[1,1], index: 23, kind: output, shape index: {2}]  }
   0x1   :  { %3700 = sst [smem:[#allocation13_spill]] %s3668_s0 }
   0x2   :  { %3701 = sst [smem:[#allocation14_spill]] %s3669_s1 }
   0x3   :  { %3702 = sst [smem:[#allocation15_spill]] %s3670_s2 }
   0x4   :  { %3703 = sst [smem:[#allocation16_spill]] %s3671_s3 }
   0x5   :  { %3704 = sst [smem:[#allocation17_spill]] %s3672_s4 }
   0x6   :  { %3705 = sst [smem:[#allocation18_spill]] %s3673_s5 }
   0x7   :  { %3706 = sst [smem:[#allocation19_spill]] %s3674_s6 }
   0x8   :  { %3707 = sst [smem:[#allocation20_spill]] %s3675_s7 }
   0x9   :  { %29 = vsyncpa [#allocation7], 0  ;;  %s3708_s24 = sld [smem:[#allocation18_spill]] }
   0xa   :  { %s3709_s1 = sld [smem:[#allocation19_spill]] }
   0xb   :  { %s3710_s29 = sld [smem:[#allocation13_spill]] }
   0xf   :  { %v2637_v0 = vld [vmem:[%s3708_s24 + $0x8] sm:$0xff]  ;;  %v2636_v2 = vld [vmem:[%s3708_s24] sm:$0xff] }
  0x10   :  { %v2640_v1 = vld [vmem:[%s3709_s1 + $0x8] sm:$0xff]  ;;  %v2639_v3 = vld [vmem:[%s3709_s1] sm:$0xff]  ;;  %120 = vmatpush.bf16.msra.mxu0 %v2637_v0 }
  0x11   :  { %v92_v4 = vld [vmem:[%s3710_s29] sm:$0x3f]  ;;  %179 = vmatpush.bf16.msra.mxu1 %v2640_v1 }
  0x12   :  { %30 = vsyncpa [#allocation9], 0  ;;  %v93_v5 = vpack.c.bf16 %v92_v4, %v92_v4  ;;  %s3711_s4 = sld [smem:[#allocation16_spill]]  ;;  %vm110_vm0 = vcmask 261120   ;;  %vm128_vm1 = vcmask 59392   ;;  %s2906_s30 = smov 112  }
  0x13   :  { %s2907_s24 = smov 104   ;;  %s2908_s25 = smov 120   ;;  %vm266_vm2 = vcmask 64512   ;;  %vm360_vm3 = vcmask 128000   ;;  %vm78_vm4 = vcmask 5120   ;;  %v2909_v56 = vmov -inf  }
  0x14   :  { %121 = vmatpush.bf16.msra.mxu0 %v2636_v2  ;;  %s3712_s26 = sld [smem:[#allocation20_spill]]  ;;  %79 = vst.msk [vmem:[#allocation2] sm:$0x3f] %vm78_vm4, %v2909_v56  ;;  %v2910_v58 = vmov 0.0   ;;  %vm486_vm5 = vcmask 130048   ;;  %vm87_vm6 = vcmask 62464  }
  0x15   :  { %180 = vmatpush.bf16.msra.mxu1 %v2639_v3  ;;  %s3713_s28 = sld [smem:[#allocation17_spill]]  ;;  %80 = vst.msk [vmem:[#allocation2 + $0x8] sm:$0x3f] %vm78_vm4, %v2909_v56  ;;  %s3696_s3 = smov 24   ;;  %vm629_vm7 = vcmask 195584   ;;  %vm1053_vm8 = vcmask 1042432  }
  0x16   :  { %81 = vst.msk [vmem:[#allocation2 + $0x10] sm:$0x3f] %vm78_vm4, %v2909_v56  ;;  %s3698_s0 = smov 16   ;;  %vm1012_vm9 = vcmask 46080   ;;  %vm1049_vm10 = vcmask 48128   ;;  %s2916_s7 = smov 64  }
  0x17   :  { %2363 = vmatmul.msk.bf16.vlgmr.msra.gmra.mxu0 %vm110_vm0, %v93_v5  ;;  %82 = vst.msk [vmem:[#allocation2 + $0x18] sm:$0x3f] %vm78_vm4, %v2909_v56  ;;  %vm1810_vm11 = vcmask 523264   ;;  %vm1865_vm12 = vcmask 785408   ;;  %vm1959_vm13 = vcmask 29696   ;;  %s2923_s1 = smov [#allocation6]  }
  0x18   :  { %v2638_v6 = vld [vmem:[%s3711_s4] sm:$0xff]  ;;  %85 = vst.msk [vmem:[#allocation3 + $0x10] sm:$0x3f] %vm78_vm4, %v2910_v58  ;;  %s2914_s4 = smov 8  }
  0x19   :  { %2376 = vmatmul.msk.bf16.vlgmr.msra.gmra.mxu1 %vm110_vm0, %v2638_v6  ;;  %83 = vst.msk [vmem:[#allocation3] sm:$0x3f] %vm78_vm4, %v2910_v58 }
  0x1a   :  { %v2643_v19 = vld [vmem:[%s3712_s26 + $0x8] sm:$0xff]  ;;  %v2642_v20 = vld [vmem:[%s3712_s26] sm:$0xff]  ;;  %84 = vst.msk [vmem:[#allocation3 + $0x8] sm:$0x3f] %vm78_vm4, %v2910_v58 }
  0x1b   :  { %221 = vmatpush.bf16.msra.mxu2 %v2643_v19  ;;  %v2641_v21 = vld [vmem:[%s3713_s28] sm:$0xff]  ;;  %86 = vst.msk [vmem:[#allocation3 + $0x18] sm:$0x3f] %vm78_vm4, %v2910_v58 }
  0x1c   :  { %v3112_v59 = vld [vmem:[#allocation2] sm:$0x3f]  ;;  %89 = vst.msk [vmem:[#allocation4 + $0x8] sm:$0x3f] %vm87_vm6, %v2910_v58 }
  0x1d   :  { %88 = vst.msk [vmem:[#allocation4] sm:$0x3f] %vm87_vm6, %v2910_v58 }
  0x1e   :  { %90 = vst.msk [vmem:[#allocation4 + $0x10] sm:$0x3f] %vm87_vm6, %v2910_v58 }
  0x1f   :  { %222 = vmatpush.bf16.msra.mxu2 %v2642_v20  ;;  %91 = vst.msk [vmem:[#allocation4 + $0x18] sm:$0x3f] %vm87_vm6, %v2910_v58 }
  0x22   :  { %2389 = vmatmul.msk.bf16.vlgmr.msra.gmra.mxu2 %vm110_vm0, %v2641_v21 }
  0x94   :  { %v123_v7 = vpop.f32.mrf.mxu0 }
  0x95   :  { %v127_v9 = vpack.c.bf16 %v123_v7, %v123_v7 }
  0x96   :  { %v182_v8 = vpop.f32.mrf.mxu1 }
  0x97   :  { %v187_v10 = vpack.c.bf16 %v182_v8, %v182_v8  ;;  %129 = vst.msk [vmem:[#allocation5] sm:$0x7] %vm128_vm1, %v127_v9  ;;  %141 = vrot.lane.b32.xlu1 %v127_v9, %s2907_s24 }
  0x99   :  { %237 = vrot.lane.b32.xlu2 %v187_v10, %s2906_s30  ;;  %241 = vrot.lane.b32.xlu0 %v187_v10, %s2907_s24  ;;  %v263_v14 = vunpack.c.l.b16 %v187_v10 }
  0x9c   :  { %v125_v11 = vpop.f32.mrf.mxu0 }
  0x9d   :  { %v357_v11 = vld [vmem:[#allocation2 + $0x8] sm:$0x3f] }
  0x9e   :  { %v184_v12 = vpop.f32.mrf.mxu1  ;;  %v259_v18 = vld [vmem:[#allocation5] sm:$0x7] }
  0x9f   :  { %v188_v13 = vpack.c.bf16 %v184_v12, %v184_v12  ;;  %233 = vrot.lane.b32.xlu1 %v187_v10, %s2908_s25  ;;  %v2911_v10 = vmov 0   ;;  %v3122_v12 = vld [vmem:[#allocation2 + $0x18] sm:$0x3f] }
  0xa0   :  { %2712 = vset.pattern.permute.xlu1 %v2911_v10  ;;  %2711 = vset.pattern.permute.xlu0 %v2911_v10 }
  0xa1   :  { %235 = vrot.lane.b32.xlu2 %v188_v13, %s2908_s25  ;;  %243 = vrot.lane.b32.xlu0 %v188_v13, %s2907_s24  ;;  %v264_v15 = vunpack.c.l.b16 %v188_v13 }
  0xa2   :  { %2713 = vset.pattern.permute.xlu2 %v2911_v10 }
  0xa3   :  { %v265_v16 = vpack.c.b16 %v264_v15, %v263_v14 }
  0xa5   :  { %v271_v17 = vsel %vm266_vm2, %v265_v16, 0  ;;  %v224_v50 = vpop.f32.mrf.mxu2  ;;  %v3124_v16 = vld [vmem:[#allocation2 + $0x10] sm:$0x3f] }
  0xa6   :  { %280 = vmatpush.bf16.xpose.msrb.mxu0 %v271_v17  ;;  %v229_v51 = vpack.c.bf16 %v224_v50, %v224_v50 }
  0xa7   :  { %131 = vrot.lane.b32.xlu1 %v127_v9, %s2908_s25 }
  0xa8   :  { %v482_v54 = vunpack.c.l.b16 %v229_v51 }
  0xa9   :  { %239 = vrot.lane.b32.xlu0 %v188_v13, %s2906_s30  ;;  %136 = vrot.lane.b32.xlu2 %v127_v9, %s2906_s30 }
  0xad   :  { %2390 = vmatmul.msk.bf16.vlgmr.msrb.gmra.mxu0 %vm266_vm2, %v259_v18  ;;  %v226_v52 = vpop.f32.mrf.mxu2 }
  0xae   :  { %v230_v53 = vpack.c.bf16 %v226_v52, %v226_v52 }
  0xb0   :  { %v483_v55 = vunpack.c.l.b16 %v230_v53 }
  0xb2   :  { %v484_v57 = vpack.c.b16 %v483_v55, %v482_v54 }
  0xb4   :  { %497 = vmatpush.bf16.msra.mxu3 %v484_v57 }
  0xf3   :  { %v238_v22 = vpop.permute.xlu2 %237 }
  0xf4   :  { %v308_v38 = vunpack.c.l.b16 %v238_v22 }
  0xfb   :  { %v236_v23 = vpop.permute.xlu2 %235 }
  0xfc   :  { %v287_v31 = vunpack.c.l.b16 %v236_v23 }
 0x103   :  { %v137_v24 = vpop.permute.xlu2 %136 }
 0x104   :  { %140 = vst.msk [vmem:[#allocation5 + $0x8] sm:$0x7] %vm128_vm1, %v137_v24 }
 0x109   :  { %v142_v26 = vpop.permute.xlu1 %141 }
 0x10a   :  { %145 = vst.msk [vmem:[#allocation5 + $0xc] sm:$0x7] %vm128_vm1, %v142_v26 }
 0x10b   :  { %v242_v25 = vpop.permute.xlu0 %241  ;;  %v261_v45 = vld [vmem:[#allocation5 + $0x8] sm:$0x7] }
 0x10c   :  { %v330_v28 = vunpack.c.l.b16 %v242_v25 }
 0x111   :  { %v234_v30 = vpop.permute.xlu1 %233  ;;  %v262_v42 = vld [vmem:[#allocation5 + $0xc] sm:$0x7] }
 0x112   :  { %v286_v32 = vunpack.c.l.b16 %v234_v30 }
 0x113   :  { %v244_v27 = vpop.permute.xlu0 %243 }
 0x114   :  { %v331_v29 = vunpack.c.l.b16 %v244_v27  ;;  %v288_v34 = vpack.c.b16 %v287_v31, %v286_v32 }
 0x116   :  { %v332_v33 = vpack.c.b16 %v331_v29, %v330_v28  ;;  %v293_v36 = vsel %vm266_vm2, %v288_v34, 0 }
 0x117   :  { %302 = vmatpush.bf16.xpose.msra.mxu0 %v293_v36 }
 0x118   :  { %v337_v35 = vsel %vm266_vm2, %v332_v33, 0 }
 0x119   :  { %346 = vmatpush.bf16.xpose.msrb.mxu2 %v337_v35  ;;  %v132_v40 = vpop.permute.xlu1 %131 }
 0x11a   :  { %135 = vst.msk [vmem:[#allocation5 + $0x4] sm:$0x7] %vm128_vm1, %v132_v40 }
 0x11b   :  { %v240_v37 = vpop.permute.xlu0 %239 }
 0x11c   :  { %v309_v39 = vunpack.c.l.b16 %v240_v37 }
 0x11e   :  { %v310_v41 = vpack.c.b16 %v309_v39, %v308_v38 }
 0x120   :  { %2393 = vmatmul.msk.bf16.vlgmr.msrb.gmra.mxu2 %vm266_vm2, %v262_v42  ;;  %v315_v43 = vsel %vm266_vm2, %v310_v41, 0 }
 0x121   :  { %324 = vmatpush.bf16.xpose.msrb.mxu1 %v315_v43  ;;  %v260_v44 = vld [vmem:[#allocation5 + $0x4] sm:$0x7] }
 0x122   :  { %2391 = vmatmul.msk.bf16.vlgmr.msra.gmra.mxu0 %vm266_vm2, %v260_v44 }
 0x128   :  { %2392 = vmatmul.msk.bf16.vlgmr.msrb.gmra.mxu1 %vm266_vm2, %v261_v45 }
 0x12a   :  { %v282_v46 = vpop.f32.mrf.mxu0 }
 0x12b   :  { %v3096_v47 = vmul.f32 0.35355338, %v282_v46 }
 0x12d   :  { %v361_v48 = vsel %vm360_vm3, %v3096_v47, -inf }
 0x12e   :  { %362 = vmax.xlane.f32.xlu2 %v361_v48 }
 0x132   :  { %v284_v49 = vpop.f32.mrf.mxu0 }
 0x19f   :  { %v304_v62 = vpop.f32.mrf.mxu0 }
 0x1a0   :  { %v353_v63 = vmul.f32 0.35355338, %v304_v62 }
 0x1a1   :  { %v363_v60 = vpop.xlane.xlu2 %362 }
 0x1a2   :  { %v3115_v61 = vmax.f32 %v3112_v59, %v363_v60  ;;  %v364_v3 = vsel %vm360_vm3, %v353_v63, -inf }
 0x1a3   :  { %v348_v0 = vpop.f32.mrf.mxu2  ;;  %365 = vmax.xlane.f32.xlu1 %v364_v3 }
 0x1a4   :  { %572 = vst.msk [vmem:[#allocation2] sm:$0x3f] %vm78_vm4, %v3115_v61  ;;  %v355_v1 = vmul.f32 0.35355338, %v348_v0 }
 0x1a5   :  { %v326_v2 = vpop.f32.mrf.mxu1 }
 0x1a6   :  { %v354_v4 = vmul.f32 0.35355338, %v326_v2  ;;  %v370_v5 = vsel %vm360_vm3, %v355_v1, -inf }
 0x1a7   :  { %371 = vmax.xlane.f32.xlu0 %v370_v5  ;;  %v306_v7 = vpop.f32.mrf.mxu0 }
 0x1a8   :  { %v367_v6 = vsel %vm360_vm3, %v354_v4, -inf  ;;  %v423_v7 = vld [vmem:[#allocation3 + $0x10] sm:$0x3f] }
 0x1a9   :  { %368 = vmax.xlane.f32.xlu2 %v367_v6 }
 0x1ab   :  { %v350_v8 = vpop.f32.mrf.mxu2 }
 0x1ad   :  { %v328_v9 = vpop.f32.mrf.mxu1 }
 0x216   :  { %v366_v13 = vpop.xlane.xlu1 %365 }
 0x217   :  { %v374_v14 = vmax.f32 %v357_v11, %v366_v13 }
 0x219   :  { %v378_v18 = vsub.f32 %v357_v11, %v374_v14  ;;  %573 = vst.msk [vmem:[#allocation2 + $0x8] sm:$0x3f] %vm78_vm4, %v374_v14  ;;  %396 = vperm.xlu1 %2712, %v374_v14  }
 0x21a   :  { %v372_v15 = vpop.xlane.xlu0 %371 }
 0x21b   :  { %v3127_v17 = vmax.f32 %v3122_v12, %v372_v15  ;;  %v383_v38 = vmul.f32 1.442695, %v378_v18  ;;  %v422_v15 = vld [vmem:[#allocation3 + $0x8] sm:$0x3f] }
 0x21c   :  { %v369_v19 = vpop.xlane.xlu2 %368 }
 0x21d   :  { %v380_v20 = vsub.f32 %v3122_v12, %v3127_v17  ;;  %575 = vst.msk [vmem:[#allocation2 + $0x18] sm:$0x3f] %vm78_vm4, %v3127_v17  ;;  %v3135_v21 = vmax.f32 %v3124_v16, %v369_v19  ;;  %406 = vperm.xlu0 %2711, %v3127_v17   ;;  %v377_v12 = vsub.f32 %v3112_v59, %v3115_v61 }
 0x21f   :  { %v379_v22 = vsub.f32 %v3124_v16, %v3135_v21  ;;  %574 = vst.msk [vmem:[#allocation2 + $0x10] sm:$0x3f] %vm78_vm4, %v3135_v21  ;;  %401 = vperm.xlu2 %2713, %v3135_v21   ;;  %v387_v3 = vmul.f32 1.442695, %v380_v20  ;;  %v381_v13 = vmul.f32 1.442695, %v377_v12 }
 0x220   :  { %v424_v16 = vld [vmem:[#allocation3 + $0x18] sm:$0x3f] }
 0x221   :  { %255 = vrot.lane.b32.xlu1 %v229_v51, %s2907_s24 }
 0x225   :  { %251 = vrot.lane.b32.xlu0 %v229_v51, %s2906_s30 }
 0x227   :  { %257 = vrot.lane.b32.xlu2 %v230_v53, %s2907_s24 }
 0x229   :  { %247 = vrot.lane.b32.xlu1 %v229_v51, %s2908_s25 }
 0x22f   :  { %249 = vrot.lane.b32.xlu2 %v230_v53, %s2908_s25 }
 0x231   :  { %253 = vrot.lane.b32.xlu1 %v230_v53, %s2906_s30 }
 0x237   :  { %391 = vperm.xlu2 %2713, %v3115_v61  }
 0x279   :  { %v402_v23 = vpop.permute.xlu2 %401 }
 0x27a   :  { %v411_v24 = vsub.f32 %v354_v4, %v402_v23 }
 0x27c   :  { %v417_v25 = vmul.f32 1.442695, %v411_v24  ;;  %v421_v24 = vld [vmem:[#allocation3] sm:$0x3f] }
 0x27e   :  { %2736 = vpow2.f32 %v417_v25 }
 0x281   :  { %v258_v26 = vpop.permute.xlu2 %257 }
 0x282   :  { %v544_v41 = vunpack.c.l.b16 %v258_v26 }
 0x284   :  { %v2737_v27 = vpop.eup %2736 }
 0x285   :  { %v435_v28 = vsel %vm360_vm3, %v2737_v27, 0.0  ;;  %v480_v4 = vpack.c.bf16 %v2737_v27, %v2737_v27 }
 0x286   :  { %436 = vadd.xlane.f32.xlu1 %v435_v28 }
 0x289   :  { %v250_v29 = vpop.permute.xlu2 %249 }
 0x28a   :  { %v504_v53 = vunpack.c.l.b16 %v250_v29  ;;  %v451_v29 = vld [vmem:[#allocation4 + $0x8] sm:$0x3f] }
 0x28b   :  { %v397_v30 = vpop.permute.xlu1 %396 }
 0x28c   :  { %v410_v31 = vsub.f32 %v353_v63, %v397_v30 }
 0x28e   :  { %v415_v34 = vmul.f32 1.442695, %v410_v31 }
 0x28f   :  { %v407_v32 = vpop.permute.xlu0 %406 }
 0x290   :  { %v412_v33 = vsub.f32 %v355_v1, %v407_v32  ;;  %2738 = vpow2.f32 %v415_v34  ;;  %v385_v1 = vmul.f32 1.442695, %v379_v22 }
 0x291   :  { %v392_v35 = vpop.permute.xlu2 %391 }
 0x292   :  { %v419_v36 = vmul.f32 1.442695, %v412_v33  ;;  %v409_v37 = vsub.f32 %v3096_v47, %v392_v35 }
 0x293   :  { %v256_v40 = vpop.permute.xlu1 %255 }
 0x294   :  { %2740 = vpow2.f32 %v419_v36  ;;  %v413_v39 = vmul.f32 1.442695, %v409_v37  ;;  %v543_v42 = vunpack.c.l.b16 %v256_v40 }
 0x296   :  { %2742 = vpow2.f32 %v413_v39  ;;  %v2739_v43 = vpop.eup %2738  ;;  %v545_v44 = vpack.c.b16 %v544_v41, %v543_v42  ;;  %v452_v39 = vld [vmem:[#allocation4 + $0x10] sm:$0x3f]  ;;  %v453_v41 = vld [vmem:[#allocation4 + $0x18] sm:$0x3f] }
 0x297   :  { %2744 = vpow2.f32 %v383_v38  ;;  %v432_v46 = vsel %vm360_vm3, %v2739_v43, 0.0  ;;  %v479_v57 = vpack.c.bf16 %v2739_v43, %v2739_v43  ;;  %v252_v60 = vpop.permute.xlu0 %251 }
 0x298   :  { %433 = vadd.xlane.f32.xlu0 %v432_v46  ;;  %557 = vmatpush.bf16.msra.mxu2 %v545_v44  ;;  %v523_v63 = vunpack.c.l.b16 %v252_v60  ;;  %2746 = vpow2.f32 %v385_v1 }
 0x299   :  { %2748 = vpow2.f32 %v387_v3 }
 0x29a   :  { %v2741_v45 = vpop.eup %2740 }
 0x29b   :  { %v481_v48 = vpack.c.bf16 %v2741_v45, %v2741_v45  ;;  %v438_v49 = vsel %vm360_vm3, %v2741_v45, 0.0  ;;  %v248_v52 = vpop.permute.xlu1 %247 }
 0x29c   :  { %v2743_v47 = vpop.eup %2742  ;;  %439 = vadd.xlane.f32.xlu2 %v438_v49  ;;  %v503_v54 = vunpack.c.l.b16 %v248_v52 }
 0x29d   :  { %v478_v50 = vpack.c.bf16 %v2743_v47, %v2743_v47  ;;  %v2745_v51 = vpop.eup %2744  ;;  %2397 = vmatmul.msk.bf16.vlgmr.msra.gmra.mxu2 %vm486_vm5, %v481_v48  ;;  %v429_v56 = vsel %vm360_vm3, %v2743_v47, 0.0  ;;  %vm2012_vm3 = vcmask 31744  }
 0x29e   :  { %v505_v55 = vpack.c.b16 %v504_v53, %v503_v54  ;;  %v2747_v5 = vpop.eup %2746  ;;  %v426_v17 = vmul.f32 %v2745_v51, %v422_v15 }
 0x29f   :  { %461 = vperm.xlu1 %2712, %v2745_v51   ;;  %2394 = vmatmul.msk.bf16.vlgmr.msra.gmra.mxu3 %vm486_vm5, %v478_v50  ;;  %v2749_v6 = vpop.eup %2748  ;;  %v427_v8 = vmul.f32 %v2747_v5, %v423_v7  ;;  %v2652_v7 = vld [vmem:[%s3678_s10] sm:$0xff] }
 0x2a0   :  { %517 = vmatpush.bf16.msrb.mxu0 %v505_v55  ;;  %430 = vadd.xlane.f32.xlu0 %v429_v56  ;;  %v428_v19 = vmul.f32 %v2749_v6, %v424_v16 }
 0x2a3   :  { %2395 = vmatmul.msk.bf16.vlgmr.msrb.gmra.mxu0 %vm486_vm5, %v479_v57  ;;  %v254_v62 = vpop.permute.xlu1 %253 }
 0x2a4   :  { %v524_v0 = vunpack.c.l.b16 %v254_v62 }
 0x2a6   :  { %v525_v2 = vpack.c.b16 %v524_v0, %v523_v63  ;;  %v450_v0 = vld [vmem:[#allocation4] sm:$0x3f] }
 0x2a8   :  { %537 = vmatpush.bf16.msra.mxu1 %v525_v2 }
 0x2ab   :  { %2396 = vmatmul.msk.bf16.vlgmr.msra.gmra.mxu1 %vm486_vm5, %v480_v4  ;;  %v2645_v4 = vld [vmem:[%s3676_s8 + $0x8] sm:$0xff] }
 0x2ac   :  { %657 = vmatpush.bf16.msrb.mxu3 %v2645_v4 }
 0x2b4   :  { %466 = vperm.xlu2 %2713, %v2747_v5   ;;  %471 = vperm.xlu0 %2711, %v2749_v6   ;;  %v2644_v5 = vld [vmem:[%s3676_s8] sm:$0xff]  ;;  %v2653_v6 = vld [vmem:[%s3678_s10 + $0x8] sm:$0xff]  ;;  %s3714_s8 = sld [smem:[#allocation14_spill]] }
 0x2b5   :  { %658 = vmatpush.bf16.msrb.mxu3 %v2644_v5 }
 0x2b9   :  { %796 = vmatpush.bf16.msra.mxu3 %v2653_v6 }
 0x2bd   :  { %797 = vmatpush.bf16.msra.mxu3 %v2652_v7 }
 0x2f9   :  { %v437_v9 = vpop.xlane.xlu1 %436 }
 0x2fa   :  { %v443_v10 = vadd.f32 %v437_v9, %v427_v8  ;;  %v2647_v8 = vld [vmem:[%s3677_s9 + $0x8] sm:$0xff]  ;;  %v2649_v9 = vld [vmem:[%s3677_s9 + $0x18] sm:$0xff] }
 0x2fb   :  { %703 = vmatpush.bf16.msra.mxu0 %v2647_v8  ;;  %731 = vmatpush.bf16.msrb.mxu1 %v2649_v9  ;;  %v2663_v8 = vld [vmem:[%s3679_s11 + $0x28] sm:$0xff] }
 0x2fc   :  { %448 = vst.msk [vmem:[#allocation3 + $0x10] sm:$0x3f] %vm78_vm4, %v443_v10  ;;  %v2646_v10 = vld [vmem:[%s3677_s9] sm:$0xff] }
 0x2ff   :  { %704 = vmatpush.bf16.msra.mxu0 %v2646_v10 }
 0x303   :  { %v581_v11 = vld [vmem:[#allocation3 + $0x10] sm:$0x3f] }
 0x304   :  { %2750 = vrcp.f32 %v581_v11  ;;  %v2655_v11 = vld [vmem:[%s3678_s10 + $0x18] sm:$0xff] }
 0x305   :  { %2752 = vpow2.f32 %v381_v13  ;;  %v664_v13 = vld [vmem:[%s3710_s29] sm:$0x3f]  ;;  %821 = vmatpush.bf16.msrb.mxu0 %v2655_v11 }
 0x306   :  { %v667_v15 = vpack.c.bf16 %v664_v13, %v664_v13  ;;  %v2662_v13 = vld [vmem:[%s3679_s11 + $0x20] sm:$0xff] }
 0x308   :  { %2415 = vmatmul.msk.bf16.vlgmr.msra.gmra.mxu0 %vm110_vm0, %v667_v15 }
 0x30a   :  { %v2751_v14 = vpop.eup %2750 }
 0x30b   :  { %603 = vperm.xlu0 %2711, %v2751_v14   ;;  %v434_v18 = vpop.xlane.xlu0 %433  ;;  %v2753_v23 = vpop.eup %2752 }
 0x30c   :  { %v442_v20 = vadd.f32 %v434_v18, %v426_v17  ;;  %v425_v59 = vmul.f32 %v2753_v23, %v421_v24 }
 0x30e   :  { %447 = vst.msk [vmem:[#allocation3 + $0x8] sm:$0x3f] %vm78_vm4, %v442_v20 }
 0x30f   :  { %v440_v21 = vpop.xlane.xlu2 %439 }
 0x310   :  { %v444_v22 = vadd.f32 %v440_v21, %v428_v19 }
 0x311   :  { %v462_v30 = vpop.permute.xlu1 %461 }
 0x312   :  { %449 = vst.msk [vmem:[#allocation3 + $0x18] sm:$0x3f] %vm78_vm4, %v444_v22  ;;  %v475_v34 = vmul.f32 %v462_v30, %v451_v29  ;;  %v2650_v29 = vld [vmem:[%s3677_s9 + $0x20] sm:$0xff] }
 0x313   :  { %v431_v61 = vpop.xlane.xlu0 %430  ;;  %v665_v30 = vld [vmem:[%s3714_s8] sm:$0x3f]  ;;  %s2315_s8 = sshll.u32 %s3689_s21, 4  ;;  %s2316_s8 = int_to_ptr.hbm [resolvable:$true] %s2315_s8 }
 0x314   :  { %v441_v25 = vadd.f32 %v431_v61, %v425_v59  ;;  %v2648_v59 = vld [vmem:[%s3677_s9 + $0x10] sm:$0xff] }
 0x315   :  { %v580_v26 = vld [vmem:[#allocation3 + $0x8] sm:$0x3f]  ;;  %v2654_v61 = vld [vmem:[%s3678_s10 + $0x10] sm:$0xff]  ;;  %732 = vmatpush.bf16.msrb.mxu1 %v2648_v59 }
 0x316   :  { %446 = vst.msk [vmem:[#allocation3] sm:$0x3f] %vm78_vm4, %v441_v25  ;;  %2754 = vrcp.f32 %v580_v26  ;;  %v2660_v25 = vld [vmem:[%s3679_s11 + $0x10] sm:$0xff]  ;;  %822 = vmatpush.bf16.msrb.mxu0 %v2654_v61  ;;  %v2657_v26 = vld [vmem:[%s3678_s10 + $0x28] sm:$0xff]  ;;  %vm2017_vm4 = vcmask 0  }
 0x317   :  { %v467_v40 = vpop.permute.xlu2 %466 }
 0x318   :  { %v476_v44 = vmul.f32 %v467_v40, %v452_v39  ;;  %v2659_v39 = vld [vmem:[%s3679_s11 + $0x8] sm:$0xff]  ;;  %v2658_v40 = vld [vmem:[%s3679_s11] sm:$0xff] }
 0x319   :  { %v582_v27 = vld [vmem:[#allocation3 + $0x18] sm:$0x3f]  ;;  %846 = vmatpush.bf16.msra.mxu1 %v2657_v26 }
 0x31a   :  { %2756 = vrcp.f32 %v582_v27  ;;  %v2651_v27 = vld [vmem:[%s3677_s9 + $0x28] sm:$0xff]  ;;  %933 = vmatpush.bf16.msra.mxu0 %v2663_v8 }
 0x31b   :  { %759 = vmatpush.bf16.msrb.mxu2 %v2651_v27 }
 0x31c   :  { %v2755_v28 = vpop.eup %2754 }
 0x31d   :  { %598 = vperm.xlu1 %2712, %v2755_v28   ;;  %v579_v32 = vld [vmem:[#allocation3] sm:$0x3f] }
 0x31e   :  { %2758 = vrcp.f32 %v579_v32  ;;  %v2656_v28 = vld [vmem:[%s3678_s10 + $0x20] sm:$0xff]  ;;  %934 = vmatpush.bf16.msra.mxu0 %v2662_v13 }
 0x31f   :  { %847 = vmatpush.bf16.msra.mxu1 %v2656_v28  ;;  %760 = vmatpush.bf16.msrb.mxu2 %v2650_v29 }
 0x320   :  { %v2757_v31 = vpop.eup %2756  ;;  %v559_v33 = vpop.f32.mrf.mxu2 }
 0x321   :  { %608 = vperm.xlu2 %2713, %v2757_v31   ;;  %v519_v36 = vpop.f32.mrf.mxu0  ;;  %v3246_v31 = vpack.c.bf16 %v665_v30, %v665_v30 }
 0x322   :  { %v499_v35 = vpop.f32.mrf.mxu3  ;;  %v564_v37 = vadd.f32 %v519_v36, %v475_v34 }
 0x323   :  { %2433 = vmatmul.msk.bf16.vlgmr.msrb.gmra.mxu2 %vm110_vm0, %v3246_v31 }
 0x324   :  { %569 = vst.msk [vmem:[#allocation4 + $0x8] sm:$0x3f] %vm87_vm6, %v564_v37  ;;  %v2759_v38 = vpop.eup %2758  ;;  %883 = vmatpush.bf16.msra.mxu2 %v2659_v39 }
 0x325   :  { %456 = vperm.xlu1 %2712, %v2753_v23   ;;  %593 = vperm.xlu0 %2711, %v2759_v38   ;;  %v2661_v23 = vld [vmem:[%s3679_s11 + $0x18] sm:$0xff]  ;;  %s3716_s11 = smov 16  }
 0x326   :  { %v472_v43 = vpop.permute.xlu0 %471 }
 0x327   :  { %v477_v45 = vmul.f32 %v472_v43, %v453_v41 }
 0x328   :  { %v561_v42 = vpop.f32.mrf.mxu2  ;;  %v539_v49 = vpop.f32.mrf.mxu1  ;;  %884 = vmatpush.bf16.msra.mxu2 %v2658_v40 }
 0x329   :  { %v521_v48 = vpop.f32.mrf.mxu0  ;;  %v566_v47 = vadd.f32 %v559_v33, %v477_v45  ;;  %v565_v50 = vadd.f32 %v539_v49, %v476_v44 }
 0x32a   :  { %v501_v46 = vpop.f32.mrf.mxu3 }
 0x32b   :  { %571 = vst.msk [vmem:[#allocation4 + $0x18] sm:$0x3f] %vm87_vm6, %v566_v47  ;;  %v588_v60 = vld [vmem:[#allocation4 + $0x8] sm:$0x3f] }
 0x32c   :  { %570 = vst.msk [vmem:[#allocation4 + $0x10] sm:$0x3f] %vm87_vm6, %v565_v50 }
 0x330   :  { %v541_v51 = vpop.f32.mrf.mxu1 }
 0x332   :  { %v590_v52 = vld [vmem:[#allocation4 + $0x18] sm:$0x3f] }
 0x333   :  { %v589_v56 = vld [vmem:[#allocation4 + $0x10] sm:$0x3f]  ;;  %2469 = vmatmul.msk.bf16.vlgmr.msra.gmra.mxu2 %vm110_vm0, %v667_v15 }
 0x37b   :  { %v609_v53 = vpop.permute.xlu2 %608 }
 0x37c   :  { %v614_v54 = vmul.f32 %v609_v53, %v590_v52 }
 0x37d   :  { %v604_v55 = vpop.permute.xlu0 %603 }
 0x37e   :  { %v613_v57 = vmul.f32 %v604_v55, %v589_v56  ;;  %624 = vrot.lane.b32.xlu0 %v614_v54, %s3696_s3 }
 0x380   :  { %620 = vrot.lane.b32.xlu1 %v613_v57, %s3698_s0  ;;  %s3715_s0 = sld [smem:[#allocation15_spill]] }
 0x385   :  { %v706_v32 = vpop.f32.mrf.mxu0 }
 0x386   :  { %v940_v33 = vpack.c.bf16 %v706_v32, %v706_v32  ;;  %v3293_v10 = vld [vmem:[%s3715_s0] sm:$0x3f] }
 0x388   :  { %v1109_v34 = vunpack.c.l.b16 %v940_v33 }
 0x38d   :  { %v708_v36 = vpop.f32.mrf.mxu0 }
 0x38f   :  { %v599_v62 = vpop.permute.xlu1 %598 }
 0x390   :  { %v612_v63 = vmul.f32 %v599_v62, %v588_v60 }
 0x392   :  { %616 = vrot.lane.b32.xlu2 %v612_v63, %s2914_s4 }
 0x397   :  { %v457_v1 = vpop.permute.xlu1 %456  ;;  %v594_v12 = vpop.permute.xlu0 %593 }
 0x398   :  { %v474_v2 = vmul.f32 %v457_v1, %v450_v0 }
 0x39a   :  { %v563_v3 = vadd.f32 %v499_v35, %v474_v2  ;;  %v3250_v35 = vpack.c.b16 %v1109_v34, %v1109_v34 }
 0x39c   :  { %568 = vst.msk [vmem:[#allocation4] sm:$0x3f] %vm87_vm6, %v563_v3  ;;  %1111 = vrot.lane.b32.xlu1 %v3250_v35, %s2908_s25 }
 0x3a3   :  { %v587_v14 = vld [vmem:[#allocation4] sm:$0x3f] }
 0x3a4   :  { %v611_v17 = vmul.f32 %v594_v12, %v587_v14 }
 0x3a6   :  { %v762_v49 = vpop.f32.mrf.mxu2 }
 0x3a7   :  { %v942_v5 = vpack.c.bf16 %v762_v49, %v762_v49 }
 0x3a9   :  { %v1167_v40 = vunpack.c.l.b16 %v942_v5 }
 0x3ae   :  { %v764_v47 = vpop.f32.mrf.mxu2 }
 0x3b6   :  { %v886_v7 = vpop.f32.mrf.mxu2 }
 0x3b7   :  { %v946_v11 = vpack.c.bf16 %v886_v7, %v886_v7 }
 0x3ec   :  { %v617_v16 = vpop.permute.xlu2 %616 }
 0x3ed   :  { %v627_v18 = vsel %vm266_vm2, %v611_v17, %v617_v16  ;;  %v888_v17 = vpop.f32.mrf.mxu2 }
 0x3f0   :  { %v625_v20 = vpop.permute.xlu0 %624 }
 0x3f2   :  { %v621_v19 = vpop.permute.xlu1 %620 }
 0x3f3   :  { %v628_v21 = vsel %vm486_vm5, %v627_v18, %v621_v19 }
 0x3f4   :  { %v630_v22 = vsel %vm629_vm7, %v628_v21, %v625_v20 }
 0x3f5   :  { %v631_v24 = vpack.c.bf16 %v630_v22, %v630_v22 }
 0x3f7   :  { %2406 = vmatmul.msk.bf16.vlgmr.msrb.gmra.mxu3 %vm110_vm0, %v631_v24 }
 0x3f8   :  { %908 = vmatpush.bf16.msrb.mxu3 %v2661_v23 }
 0x3fc   :  { %909 = vmatpush.bf16.msrb.mxu3 %v2660_v25 }
 0x407   :  { %2442 = vmatmul.msk.bf16.vlgmr.msra.gmra.mxu3 %vm110_vm0, %v667_v15  ;;  %v1055_v15 = vsel %vm1053_vm8, %v946_v11, 0 }
 0x40e   :  { %v1112_v18 = vpop.permute.xlu1 %1111 }
 0x47a   :  { %v660_v37 = vpop.f32.mrf.mxu3 }
 0x47b   :  { %v668_v38 = vpack.c.bf16 %v660_v37, %v660_v37 }
 0x47d   :  { %2424 = vmatmul.msk.bf16.vlgmr.msrb.gmra.mxu1 %vm110_vm0, %v668_v38  ;;  %2451 = vmatmul.msk.bf16.vlgmr.msrb.gmra.mxu0 %vm110_vm0, %v668_v38 }
 0x47e   :  { %2478 = vmatmul.msk.bf16.vlgmr.msrb.gmra.mxu3 %vm110_vm0, %v668_v38  ;;  %1064 = vmatpush.bf16.msrb.mxu0 %v1055_v15 }
 0x482   :  { %v662_v41 = vpop.f32.mrf.mxu3 }
 0x48a   :  { %v799_v42 = vpop.f32.mrf.mxu3 }
 0x48b   :  { %v943_v43 = vpack.c.bf16 %v799_v42, %v799_v42 }
 0x48d   :  { %2460 = vmatmul.msk.bf16.vlgmr.msra.gmra.mxu1 %vm110_vm0, %v3246_v31  ;;  %v953_v44 = vsel %vm266_vm2, %v943_v43, 0  ;;  %v1114_v45 = vunpack.c.l.b16 %v943_v43  ;;  %2487 = vmatmul.msk.bf16.vlgmr.msra.gmra.mxu0 %vm110_vm0, %v3246_v31  ;;  %v3315_v43 = vpack.c.b16 %v1167_v40, %v1167_v40 }
 0x48e   :  { %962 = vmatpush.bf16.xpose.msrb.mxu1 %v953_v44 }
 0x48f   :  { %v3267_v46 = vpack.c.b16 %v1114_v45, %v1114_v45  ;;  %v1238_v45 = vunpack.c.l.b16 %v946_v11 }
 0x491   :  { %1116 = vrot.lane.b32.xlu2 %v3267_v46, %s2908_s25 }
 0x492   :  { %v801_v48 = vpop.f32.mrf.mxu3 }
 0x493   :  { %v3320_v48 = vpack.c.b16 %v1238_v45, %v1238_v45 }
 0x49d   :  { %2488 = vmatmul.msk.bf16.vlgmr.msrb.gmra.mxu1 %vm266_vm2, %v940_v33 }
 0x4eb   :  { %v1117_v0 = vpop.permute.xlu2 %1116 }
 0x4ec   :  { %v1122_v3 = vsel %vm266_vm2, %v1117_v0, 0 }
 0x4fa   :  { %v734_v50 = vpop.f32.mrf.mxu1  ;;  %v824_v51 = vpop.f32.mrf.mxu0 }
 0x4fb   :  { %v3272_v52 = vpack.c.bf16 %v824_v51, %v824_v51  ;;  %v3278_v60 = vpack.c.bf16 %v734_v50, %v734_v50 }
 0x4fd   :  { %v972_v53 = vsel %vm266_vm2, %v3272_v52, 0  ;;  %v1143_v49 = vunpack.c.l.b16 %v3272_v52  ;;  %v1138_v50 = vunpack.c.l.b16 %v3278_v60 }
 0x4fe   :  { %981 = vmatpush.bf16.xpose.msrb.mxu2 %v972_v53 }
 0x4ff   :  { %v3325_v47 = vpack.c.b16 %v1143_v49, %v1143_v49  ;;  %v3330_v51 = vpack.c.b16 %v1138_v50, %v1138_v50 }
 0x501   :  { %v911_v54 = vpop.f32.mrf.mxu3 }
 0x502   :  { %v3276_v55 = vpack.c.bf16 %v911_v54, %v911_v54  ;;  %v736_v56 = vpop.f32.mrf.mxu1  ;;  %v826_v57 = vpop.f32.mrf.mxu0 }
 0x504   :  { %v1074_v62 = vsel %vm1053_vm8, %v3276_v55, 0 }
 0x505   :  { %1083 = vmatpush.bf16.msra.mxu1 %v1074_v62  ;;  %2489 = vmatmul.msk.bf16.vlgmr.msrb.gmra.mxu2 %vm266_vm2, %v3278_v60 }
 0x509   :  { %v913_v63 = vpop.f32.mrf.mxu3 }
 0x50a   :  { %v849_v1 = vpop.f32.mrf.mxu1 }
 0x50b   :  { %v945_v2 = vpack.c.bf16 %v849_v1, %v849_v1  ;;  %v936_v1 = vpop.f32.mrf.mxu0 }
 0x50d   :  { %v991_v4 = vsel %vm266_vm2, %v945_v2, 0  ;;  %v1172_v20 = vunpack.c.l.b16 %v945_v2  ;;  %v3335_v2 = vpack.c.bf16 %v936_v1, %v936_v1 }
 0x50e   :  { %1000 = vmatpush.bf16.xpose.msra.mxu3 %v991_v4 }
 0x50f   :  { %v3304_v21 = vpack.c.b16 %v1172_v20, %v1172_v20  ;;  %v1093_v60 = vsel %vm1053_vm8, %v3335_v2, 0 }
 0x510   :  { %1102 = vmatpush.bf16.msra.mxu2 %v1093_v60 }
 0x512   :  { %v851_v6 = vpop.f32.mrf.mxu1 }
 0x515   :  { %2490 = vmatmul.msk.bf16.vlgmr.msra.gmra.mxu3 %vm266_vm2, %v942_v5  ;;  %v938_v5 = vpop.f32.mrf.mxu0 }
 0x516   :  { %1131 = vmatpush.bf16.xpose.msrb.mxu3 %v1122_v3 }
 0x51a   :  { %v964_v9 = vpop.f32.mrf.mxu1 }
 0x51b   :  { %v1006_v12 = vmul.f32 0.35355338, %v964_v9 }
 0x51d   :  { %v1009_v14 = vadd.f32 %v1006_v12, %v3293_v10 }
 0x51f   :  { %v1013_v16 = vsel %vm1012_vm9, %v1009_v14, -inf }
 0x520   :  { %1014 = vmax.xlane.f32.xlu1 %v1013_v16 }
 0x522   :  { %v966_v19 = vpop.f32.mrf.mxu1 }
 0x525   :  { %2494 = vmatmul.msk.bf16.vlgmr.msrb.gmra.mxu3 %vm266_vm2, %v1112_v18 }
 0x539   :  { %1174 = vrot.lane.b32.xlu1 %v3304_v21, %s2908_s25 }
 0x588   :  { %v983_v22 = vpop.f32.mrf.mxu2 }
 0x589   :  { %v1007_v23 = vmul.f32 0.35355338, %v983_v22 }
 0x58b   :  { %v1010_v24 = vadd.f32 %v1007_v23, %v3293_v10 }
 0x58d   :  { %v1016_v59 = vsel %vm1012_vm9, %v1010_v24, -inf }
 0x58e   :  { %1017 = vmax.xlane.f32.xlu0 %v1016_v59 }
 0x590   :  { %v985_v61 = vpop.f32.mrf.mxu2 }
 0x593   :  { %v1015_v30 = vpop.xlane.xlu1 %1014 }
 0x594   :  { %v1022_v31 = vsub.f32 %v1009_v14, %v1015_v30 }
 0x596   :  { %v1025_v32 = vmul.f32 1.442695, %v1022_v31 }
 0x598   :  { %v1002_v25 = vpop.f32.mrf.mxu3  ;;  %2760 = vpow2.f32 %v1025_v32 }
 0x599   :  { %v1008_v26 = vmul.f32 0.35355338, %v1002_v25 }
 0x59b   :  { %v1011_v27 = vadd.f32 %v1008_v26, %v3293_v10 }
 0x59d   :  { %v1019_v28 = vsel %vm1012_vm9, %v1011_v27, -inf }
 0x59e   :  { %1020 = vmax.xlane.f32.xlu2 %v1019_v28  ;;  %v2761_v42 = vpop.eup %2760 }
 0x59f   :  { %v1031_v44 = vsel %vm1012_vm9, %v2761_v42, 0.0 }
 0x5a0   :  { %v1004_v29 = vpop.f32.mrf.mxu3 }
 0x5a8   :  { %v1133_v33 = vpop.f32.mrf.mxu3 }
 0x5a9   :  { %v1195_v34 = vmul.f32 0.35355338, %v1133_v33 }
 0x5ab   :  { %v1175_v36 = vpop.permute.xlu1 %1174  ;;  %v1198_v37 = vadd.f32 %v1195_v34, %v3293_v10 }
 0x5ac   :  { %v1180_v38 = vsel %vm266_vm2, %v1175_v36, 0 }
 0x5ad   :  { %1189 = vmatpush.bf16.xpose.msrb.mxu1 %v1180_v38  ;;  %v1201_v39 = vsel %vm1012_vm9, %v1198_v37, -inf }
 0x5ae   :  { %1202 = vmax.xlane.f32.xlu0 %v1201_v39 }
 0x5b0   :  { %v1135_v41 = vpop.f32.mrf.mxu3 }
 0x5b6   :  { %1169 = vrot.lane.b32.xlu2 %v3315_v43, %s2908_s25  ;;  %1032 = vadd.xlane.f32.xlu0 %v1031_v44 }
 0x5ca   :  { %1240 = vrot.lane.b32.xlu0 %v3320_v48, %s2908_s25 }
 0x5d2   :  { %1145 = vrot.lane.b32.xlu0 %v3325_v47, %s2908_s25 }
 0x5da   :  { %1140 = vrot.lane.b32.xlu0 %v3330_v51, %s2908_s25 }
 0x601   :  { %v1018_v53 = vpop.xlane.xlu0 %1017 }
 0x602   :  { %v1023_v54 = vsub.f32 %v1010_v24, %v1018_v53 }
 0x604   :  { %v1027_v56 = vmul.f32 1.442695, %v1023_v54 }
 0x606   :  { %2762 = vpow2.f32 %v1027_v56 }
 0x60c   :  { %v2763_v57 = vpop.eup %2762 }
 0x60d   :  { %v1034_v62 = vsel %vm1012_vm9, %v2763_v57, 0.0 }
 0x60e   :  { %1035 = vadd.xlane.f32.xlu2 %v1034_v62 }
 0x611   :  { %v1021_v52 = vpop.xlane.xlu2 %1020 }
 0x612   :  { %v1024_v63 = vsub.f32 %v1011_v27, %v1021_v52 }
 0x614   :  { %v1029_v0 = vmul.f32 1.442695, %v1024_v63 }
 0x616   :  { %2764 = vpow2.f32 %v1029_v0 }
 0x619   :  { %v1170_v22 = vpop.permute.xlu2 %1169 }
 0x61c   :  { %v2765_v3 = vpop.eup %2764 }
 0x61d   :  { %v1037_v4 = vsel %vm1012_vm9, %v2765_v3, 0.0 }
 0x61e   :  { %1038 = vadd.xlane.f32.xlu1 %v1037_v4 }
 0x621   :  { %v1203_v6 = vpop.xlane.xlu0 %1202 }
 0x622   :  { %v1210_v13 = vsub.f32 %v1198_v37, %v1203_v6 }
 0x624   :  { %v1213_v15 = vmul.f32 1.442695, %v1210_v13 }
 0x626   :  { %1334 = vrot.lane.b32.xlu2 %v3325_v47, %s2906_s30 }
 0x629   :  { %v1033_v7 = vpop.xlane.xlu0 %1032 }
 0x62a   :  { %2766 = vrcp.f32 %v1033_v7  ;;  %v1286_v7 = vunpack.c.l.b16 %v3335_v2 }
 0x62b   :  { %2768 = vpow2.f32 %v1213_v15 }
 0x630   :  { %v2767_v8 = vpop.eup %2766 }
 0x631   :  { %v1043_v9 = vmul.f32 %v2767_v8, %v2761_v42  ;;  %v2769_v18 = vpop.eup %2768  ;;  %v3376_v8 = vpack.c.b16 %v1286_v7, %v1286_v7 }
 0x632   :  { %v1219_v20 = vsel %vm1012_vm9, %v2769_v18, 0.0 }
 0x633   :  { %v1046_v11 = vpack.c.bf16 %v1043_v9, %v1043_v9 }
 0x635   :  { %2491 = vmatmul.msk.bf16.vlgmr.msrb.gmra.mxu0 %vm1049_vm10, %v1046_v11 }
 0x637   :  { %1311 = vrot.lane.b32.xlu1 %v3267_v46, %s2906_s30 }
 0x63c   :  { %v1241_v12 = vpop.permute.xlu0 %1240 }
 0x63d   :  { %v1246_v14 = vsel %vm1053_vm8, %v1241_v12, 0 }
 0x63e   :  { %1255 = vmatpush.bf16.msrb.mxu2 %v1246_v14 }
 0x63f   :  { %1309 = vrot.lane.b32.xlu1 %v3250_v35, %s2906_s30 }
 0x644   :  { %v1146_v16 = vpop.permute.xlu0 %1145 }
 0x645   :  { %v1151_v17 = vsel %vm266_vm2, %v1146_v16, 0 }
 0x646   :  { %1160 = vmatpush.bf16.xpose.msra.mxu0 %v1151_v17 }
 0x64c   :  { %v1141_v19 = vpop.permute.xlu0 %1140 }
 0x64d   :  { %2495 = vmatmul.msk.bf16.vlgmr.msra.gmra.mxu0 %vm266_vm2, %v1141_v19 }
 0x64f   :  { %1220 = vadd.xlane.f32.xlu2 %v1219_v20 }
 0x667   :  { %1332 = vrot.lane.b32.xlu2 %v3330_v51, %s2906_s30 }
 0x681   :  { %v1036_v23 = vpop.xlane.xlu2 %1035 }
 0x682   :  { %2770 = vrcp.f32 %v1036_v23 }
 0x688   :  { %v2771_v24 = vpop.eup %2770 }
 0x689   :  { %v1044_v59 = vmul.f32 %v2771_v24, %v2763_v57  ;;  %v1335_v28 = vpop.permute.xlu2 %1334 }
 0x68a   :  { %v1340_v30 = vsel %vm266_vm2, %v1335_v28, 0 }
 0x68b   :  { %v1047_v61 = vpack.c.bf16 %v1044_v59, %v1044_v59 }
 0x68d   :  { %2492 = vmatmul.msk.bf16.vlgmr.msra.gmra.mxu1 %vm1049_vm10, %v1047_v61 }
 0x691   :  { %v1039_v25 = vpop.xlane.xlu1 %1038 }
 0x692   :  { %2772 = vrcp.f32 %v1039_v25 }
 0x698   :  { %v2773_v26 = vpop.eup %2772 }
 0x699   :  { %v1045_v27 = vmul.f32 %v2773_v26, %v2765_v3 }
 0x69b   :  { %v1048_v29 = vpack.c.bf16 %v1045_v27, %v1045_v27 }
 0x69d   :  { %2493 = vmatmul.msk.bf16.vlgmr.msra.gmra.mxu2 %vm1049_vm10, %v1048_v29  ;;  %2496 = vmatmul.msk.bf16.vlgmr.msrb.gmra.mxu1 %vm266_vm2, %v1170_v22 }
 0x69e   :  { %1349 = vmatpush.bf16.xpose.msra.mxu2 %v1340_v30 }
 0x6a9   :  { %v1312_v31 = vpop.permute.xlu1 %1311 }
 0x6aa   :  { %v1317_v32 = vsel %vm266_vm2, %v1312_v31, 0 }
 0x6ab   :  { %1326 = vmatpush.bf16.xpose.msra.mxu1 %v1317_v32 }
 0x6b1   :  { %v1310_v33 = vpop.permute.xlu1 %1309 }
 0x6b2   :  { %v3358_v34 = vpop.f32.mrf.mxu0  ;;  %2500 = vmatmul.msk.bf16.vlgmr.msra.gmra.mxu1 %vm266_vm2, %v1310_v33 }
 0x6ba   :  { %v1068_v36 = vpop.f32.mrf.mxu0 }
 0x6c2   :  { %v1221_v37 = vpop.xlane.xlu2 %1220 }
 0x6c3   :  { %2774 = vrcp.f32 %v1221_v37 }
 0x6c9   :  { %v2775_v38 = vpop.eup %2774 }
 0x6ca   :  { %v1231_v39 = vmul.f32 %v2775_v38, %v2769_v18  ;;  %v1162_v40 = vpop.f32.mrf.mxu0  ;;  %v1333_v50 = vpop.permute.xlu2 %1332 }
 0x6cb   :  { %v1196_v41 = vmul.f32 0.35355338, %v1162_v40 }
 0x6cc   :  { %v1234_v42 = vpack.c.bf16 %v1231_v39, %v1231_v39 }
 0x6cd   :  { %v1199_v44 = vadd.f32 %v1196_v41, %v3293_v10 }
 0x6ce   :  { %2497 = vmatmul.msk.bf16.vlgmr.msrb.gmra.mxu2 %vm1049_vm10, %v1234_v42 }
 0x6cf   :  { %v1204_v45 = vsel %vm1012_vm9, %v1199_v44, -inf }
 0x6d0   :  { %1205 = vmax.xlane.f32.xlu1 %v1204_v45 }
 0x6d2   :  { %v1164_v49 = vpop.f32.mrf.mxu0 }
 0x6de   :  { %2501 = vmatmul.msk.bf16.vlgmr.msra.gmra.mxu2 %vm266_vm2, %v1333_v50 }
 0x6e9   :  { %1420 = vrot.lane.b32.xlu1 %v3320_v48, %s2906_s30 }
 0x70a   :  { %v3367_v53 = vpop.f32.mrf.mxu1 }
 0x712   :  { %v1087_v54 = vpop.f32.mrf.mxu1 }
 0x71a   :  { %v1191_v56 = vpop.f32.mrf.mxu1 }
 0x71b   :  { %v1197_v57 = vmul.f32 0.35355338, %v1191_v56 }
 0x71d   :  { %v1200_v62 = vadd.f32 %v1197_v57, %v3293_v10 }
 0x71f   :  { %v1207_v52 = vsel %vm1012_vm9, %v1200_v62, -inf }
 0x720   :  { %v3371_v63 = vpop.f32.mrf.mxu2  ;;  %1208 = vmax.xlane.f32.xlu0 %v1207_v52 }
 0x722   :  { %v1193_v0 = vpop.f32.mrf.mxu1 }
 0x728   :  { %v1106_v1 = vpop.f32.mrf.mxu2 }
 0x72f   :  { %v1328_v60 = vpop.f32.mrf.mxu1 }
 0x730   :  { %v1378_v3 = vmul.f32 0.35355338, %v1328_v60 }
 0x732   :  { %v1381_v4 = vadd.f32 %v1378_v3, %v3293_v10 }
 0x734   :  { %v1384_v5 = vsel %vm1012_vm9, %v1381_v4, -inf }
 0x735   :  { %1385 = vmax.xlane.f32.xlu2 %v1384_v5 }
 0x737   :  { %v1330_v6 = vpop.f32.mrf.mxu1 }
 0x743   :  { %v1206_v12 = vpop.xlane.xlu1 %1205 }
 0x744   :  { %v1211_v13 = vsub.f32 %v1199_v44, %v1206_v12 }
 0x746   :  { %v1215_v14 = vmul.f32 1.442695, %v1211_v13 }
 0x748   :  { %2776 = vpow2.f32 %v1215_v14 }
 0x74d   :  { %1288 = vrot.lane.b32.xlu2 %v3376_v8, %s2908_s25 }
 0x74e   :  { %v2777_v19 = vpop.eup %2776 }
 0x74f   :  { %v1222_v20 = vsel %vm1012_vm9, %v2777_v19, 0.0 }
 0x751   :  { %v3380_v9 = vpop.f32.mrf.mxu2 }
 0x755   :  { %1357 = vrot.lane.b32.xlu2 %v3304_v21, %s2906_s30 }
 0x759   :  { %v1259_v11 = vpop.f32.mrf.mxu2 }
 0x75b   :  { %v1421_v26 = vpop.permute.xlu1 %1420 }
 0x75c   :  { %v1426_v29 = vsel %vm1053_vm8, %v1421_v26, 0 }
 0x75d   :  { %1508 = vrot.lane.b32.xlu2 %v3325_v47, %s2907_s24  ;;  %v1262_v47 = vunpack.c.l.b16 %v3276_v55 }
 0x75f   :  { %v3394_v22 = vpack.c.b16 %v1262_v47, %v1262_v47 }
 0x761   :  { %v1351_v15 = vpop.f32.mrf.mxu2 }
 0x762   :  { %v1379_v16 = vmul.f32 0.35355338, %v1351_v15 }
 0x764   :  { %v1382_v2 = vadd.f32 %v1379_v16, %v3293_v10 }
 0x765   :  { %1531 = vrot.lane.b32.xlu2 %v3304_v21, %s2907_s24 }
 0x766   :  { %v1387_v17 = vsel %vm1012_vm9, %v1382_v2, -inf }
 0x767   :  { %1388 = vmax.xlane.f32.xlu0 %v1387_v17 }
 0x769   :  { %v1353_v18 = vpop.f32.mrf.mxu2 }
 0x76d   :  { %1485 = vrot.lane.b32.xlu2 %v3267_v46, %s2907_s24 }
 0x76f   :  { %1223 = vadd.xlane.f32.xlu0 %v1222_v20 }
 0x783   :  { %1264 = vrot.lane.b32.xlu0 %v3394_v22, %s2908_s25  ;;  %s2922_s25 = smov [#allocation8]  }
 0x784   :  { %s2324_s5 = sshll.u32 %s2922_s25, 4  ;;  %s2325_s5 = int_to_ptr.vmem [resolvable:$true] %s2324_s5 }
 0x78b   :  { %1441 = vrot.lane.b32.xlu0 %v3394_v22, %s2906_s30 }
 0x793   :  { %1355 = vrot.lane.b32.xlu0 %v3315_v43, %s2906_s30  ;;  %v1209_v21 = vpop.xlane.xlu0 %1208 }
 0x794   :  { %v1212_v23 = vsub.f32 %v1200_v62, %v1209_v21 }
 0x796   :  { %v1217_v24 = vmul.f32 1.442695, %v1212_v23 }
 0x798   :  { %2778 = vpow2.f32 %v1217_v24 }
 0x79b   :  { %1506 = vrot.lane.b32.xlu0 %v3330_v51, %s2907_s24 }
 0x79e   :  { %v2779_v46 = vpop.eup %2778 }
 0x79f   :  { %v1225_v55 = vsel %vm1012_vm9, %v2779_v46, 0.0 }
 0x7a0   :  { %1226 = vadd.xlane.f32.xlu1 %v1225_v55 }
 0x7a3   :  { %1483 = vrot.lane.b32.xlu0 %v3250_v35, %s2907_s24 }
 0x7a8   :  { %v1386_v59 = vpop.xlane.xlu2 %1385 }
 0x7a9   :  { %v1393_v61 = vsub.f32 %v1381_v4, %v1386_v59 }
 0x7ab   :  { %v1396_v25 = vmul.f32 1.442695, %v1393_v61 }
 0x7ad   :  { %2780 = vpow2.f32 %v1396_v25 }
 0x7b0   :  { %v1289_v27 = vpop.permute.xlu2 %1288 }
 0x7b1   :  { %v1294_v28 = vsel %vm1053_vm8, %v1289_v27, 0 }
 0x7b2   :  { %1303 = vmatpush.bf16.msrb.mxu0 %v1294_v28 }
 0x7b3   :  { %v2781_v30 = vpop.eup %2780 }
 0x7b4   :  { %v1402_v51 = vsel %vm1012_vm9, %v2781_v30, 0.0 }
 0x7b5   :  { %1403 = vadd.xlane.f32.xlu1 %v1402_v51 }
 0x7b6   :  { %1435 = vmatpush.bf16.msra.mxu0 %v1426_v29 }
 0x7b8   :  { %v1358_v31 = vpop.permute.xlu2 %1357 }
 0x7b9   :  { %v1363_v49 = vsel %vm266_vm2, %v1358_v31, 0 }
 0x7c0   :  { %v1509_v36 = vpop.permute.xlu2 %1508 }
 0x7c1   :  { %v1514_v7 = vsel %vm266_vm2, %v1509_v36, 0 }
 0x7c8   :  { %v1532_v40 = vpop.permute.xlu2 %1531 }
 0x7c9   :  { %v1537_v52 = vsel %vm266_vm2, %v1532_v40, 0 }
 0x7d0   :  { %v1486_v50 = vpop.permute.xlu2 %1485 }
 0x7d1   :  { %v1491_v56 = vsel %vm266_vm2, %v1486_v50, 0 }
 0x7da   :  { %v1389_v32 = vpop.xlane.xlu0 %1388 }
 0x7db   :  { %v1394_v33 = vsub.f32 %v1382_v2, %v1389_v32 }
 0x7dd   :  { %v1398_v35 = vmul.f32 1.442695, %v1394_v33 }
 0x7df   :  { %2782 = vpow2.f32 %v1398_v35 }
 0x7e2   :  { %v1224_v39 = vpop.xlane.xlu0 %1223 }
 0x7e3   :  { %2784 = vrcp.f32 %v1224_v39 }
 0x7e5   :  { %v2783_v37 = vpop.eup %2782 }
 0x7e6   :  { %v1405_v38 = vsel %vm1012_vm9, %v2783_v37, 0.0 }
 0x7e7   :  { %1406 = vadd.xlane.f32.xlu1 %v1405_v38 }
 0x7e9   :  { %v2785_v41 = vpop.eup %2784 }
 0x7ea   :  { %v1232_v42 = vmul.f32 %v2785_v41, %v2777_v19 }
 0x7ec   :  { %v1235_v54 = vpack.c.bf16 %v1232_v42, %v1232_v42 }
 0x7f5   :  { %v1265_v44 = vpop.permute.xlu0 %1264 }
 0x7f6   :  { %v1270_v45 = vsel %vm1053_vm8, %v1265_v44, 0 }
 0x7f7   :  { %1279 = vmatpush.bf16.msra.mxu3 %v1270_v45 }
 0x7fa   :  { %2498 = vmatmul.msk.bf16.vlgmr.msra.gmra.mxu3 %vm1049_vm10, %v1235_v54 }
 0x7fb   :  { %1372 = vmatpush.bf16.xpose.msrb.mxu3 %v1363_v49 }
 0x7fd   :  { %v1442_v57 = vpop.permute.xlu0 %1441 }
 0x7fe   :  { %v1447_v62 = vsel %vm1053_vm8, %v1442_v57, 0 }
 0x7ff   :  { %1456 = vmatpush.bf16.msrb.mxu1 %v1447_v62 }
 0x800   :  { %1529 = vrot.lane.b32.xlu1 %v3315_v43, %s2907_s24 }
 0x803   :  { %1500 = vmatpush.bf16.xpose.msra.mxu3 %v1491_v56  ;;  %1546 = vmatpush.bf16.xpose.msra.mxu1 %v1537_v52 }
 0x805   :  { %v1356_v0 = vpop.permute.xlu0 %1355 }
 0x80a   :  { %2502 = vmatmul.msk.bf16.vlgmr.msrb.gmra.mxu3 %vm266_vm2, %v1356_v0 }
 0x80d   :  { %v1507_v1 = vpop.permute.xlu0 %1506 }
 0x813   :  { %v1227_v60 = vpop.xlane.xlu1 %1226 }
 0x814   :  { %2786 = vrcp.f32 %v1227_v60 }
 0x815   :  { %v1484_v3 = vpop.permute.xlu0 %1483 }
 0x81a   :  { %v2787_v4 = vpop.eup %2786  ;;  %2506 = vmatmul.msk.bf16.vlgmr.msra.gmra.mxu3 %vm266_vm2, %v1484_v3 }
 0x81b   :  { %v1233_v5 = vmul.f32 %v2787_v4, %v2779_v46 }
 0x81d   :  { %v1236_v6 = vpack.c.bf16 %v1233_v5, %v1233_v5 }
 0x81f   :  { %2499 = vmatmul.msk.bf16.vlgmr.msrb.gmra.mxu0 %vm1049_vm10, %v1236_v6 }
 0x820   :  { %1523 = vmatpush.bf16.xpose.msrb.mxu0 %v1514_v7 }
 0x828   :  { %v1404_v11 = vpop.xlane.xlu1 %1403 }
 0x829   :  { %2788 = vrcp.f32 %v1404_v11 }
 0x82f   :  { %v2789_v43 = vpop.eup %2788 }
 0x830   :  { %v1414_v12 = vmul.f32 %v2789_v43, %v2781_v30 }
 0x832   :  { %v1417_v13 = vpack.c.bf16 %v1414_v12, %v1414_v12 }
 0x834   :  { %2503 = vmatmul.msk.bf16.vlgmr.msra.gmra.mxu0 %vm1049_vm10, %v1417_v13 }
 0x844   :  { %2507 = vmatmul.msk.bf16.vlgmr.msrb.gmra.mxu0 %vm266_vm2, %v1507_v1 }
 0x85a   :  { %v1407_v14 = vpop.xlane.xlu1 %1406 }
 0x85b   :  { %2790 = vrcp.f32 %v1407_v14 }
 0x861   :  { %v2791_v15 = vpop.eup %2790 }
 0x862   :  { %v1415_v16 = vmul.f32 %v2791_v15, %v2783_v37 }
 0x864   :  { %v1418_v2 = vpack.c.bf16 %v1415_v16, %v1415_v16 }
 0x866   :  { %2504 = vmatmul.msk.bf16.vlgmr.msrb.gmra.mxu1 %vm1049_vm10, %v1418_v2 }
 0x872   :  { %v1530_v17 = vpop.permute.xlu1 %1529 }
 0x876   :  { %2508 = vmatmul.msk.bf16.vlgmr.msra.gmra.mxu1 %vm266_vm2, %v1530_v17 }
 0x87d   :  { %v1281_v18 = vpop.f32.mrf.mxu3 }
 0x885   :  { %v1283_v19 = vpop.f32.mrf.mxu3 }
 0x88d   :  { %v1374_v20 = vpop.f32.mrf.mxu3 }
 0x88e   :  { %v1380_v47 = vmul.f32 0.35355338, %v1374_v20 }
 0x890   :  { %v1383_v21 = vadd.f32 %v1380_v47, %v3293_v10 }
 0x892   :  { %v1390_v23 = vsel %vm1012_vm9, %v1383_v21, -inf }
 0x893   :  { %1391 = vmax.xlane.f32.xlu1 %v1390_v23 }
 0x895   :  { %v1376_v24 = vpop.f32.mrf.mxu3 }
 0x89c   :  { %v1305_v46 = vpop.f32.mrf.mxu0 }
 0x89d   :  { %v2714_v55 = vpack.i.bf16 %v1305_v46, %v1281_v18  ;;  %v1502_v59 = vpop.f32.mrf.mxu3 }
 0x89e   :  { %v1552_v51 = vmul.f32 0.35355338, %v1502_v59 }
 0x8a0   :  { %v1555_v33 = vadd.f32 %v1552_v51, %v3293_v10 }
 0x8a2   :  { %v1558_v35 = vsel %vm1012_vm9, %v1555_v33, -inf }
 0x8a4   :  { %v1307_v61 = vpop.f32.mrf.mxu0 }
 0x8a5   :  { %v1504_v25 = vpop.f32.mrf.mxu3 }
 0x8b1   :  { %v3429_v26 = vpop.f32.mrf.mxu0 }
 0x8b9   :  { %v1439_v27 = vpop.f32.mrf.mxu0 }
 0x8c1   :  { %v1525_v28 = vpop.f32.mrf.mxu0 }
 0x8c2   :  { %v1553_v29 = vmul.f32 0.35355338, %v1525_v28 }
 0x8c4   :  { %v1556_v30 = vadd.f32 %v1553_v29, %v3293_v10 }
 0x8c6   :  { %v1561_v31 = vsel %vm1012_vm9, %v1556_v30, -inf }
 0x8c7   :  { %1562 = vmax.xlane.f32.xlu2 %v1561_v31 }
 0x8c9   :  { %v1527_v32 = vpop.f32.mrf.mxu0 }
 0x8cf   :  { %1559 = vmax.xlane.f32.xlu2 %v1558_v35 }
 0x8e3   :  { %v3435_v36 = vpop.f32.mrf.mxu1 }
 0x8eb   :  { %v1460_v37 = vpop.f32.mrf.mxu1 }
 0x8ec   :  { %v2667_v37 = vld [vmem:[%s3680_s12 + $0x18] sm:$0xff] }
 0x8f3   :  { %v1548_v38 = vpop.f32.mrf.mxu1 }
 0x8f4   :  { %v1554_v39 = vmul.f32 0.35355338, %v1548_v38 }
 0x8f6   :  { %v1557_v40 = vadd.f32 %v1554_v39, %v3293_v10 }
 0x8f8   :  { %v1564_v41 = vsel %vm1012_vm9, %v1557_v40, -inf }
 0x8f9   :  { %1565 = vmax.xlane.f32.xlu0 %v1564_v41  ;;  %v2668_v41 = vld [vmem:[%s3680_s12 + $0x20] sm:$0xff] }
 0x8fb   :  { %v1550_v42 = vpop.f32.mrf.mxu1 }
 0x8fc   :  { %v2665_v42 = vld [vmem:[%s3680_s12 + $0x8] sm:$0xff] }
 0x8fd   :  { %1738 = vmatpush.bf16.msrb.mxu1 %v2665_v42  ;;  %v2682_v42 = vld [vmem:[%s3684_s16 + $0x2c] sm:$0xf0] }
 0x906   :  { %v1392_v44 = vpop.xlane.xlu1 %1391 }
 0x907   :  { %v1395_v45 = vsub.f32 %v1383_v21, %v1392_v44 }
 0x909   :  { %v1400_v49 = vmul.f32 1.442695, %v1395_v45 }
 0x90b   :  { %2792 = vpow2.f32 %v1400_v49 }
 0x911   :  { %v2793_v50 = vpop.eup %2792 }
 0x912   :  { %v1408_v54 = vsel %vm1012_vm9, %v2793_v50, 0.0 }
 0x913   :  { %1409 = vadd.xlane.f32.xlu1 %v1408_v54 }
 0x92c   :  { %1462 = vrot.lane.b32.xlu1 %v3376_v8, %s2906_s30  ;;  %s3717_s30 = smov 24  }
 0x93a   :  { %v1563_v56 = vpop.xlane.xlu2 %1562 }
 0x93b   :  { %v1568_v57 = vsub.f32 %v1556_v30, %v1563_v56 }
 0x93d   :  { %v1572_v62 = vmul.f32 1.442695, %v1568_v57 }
 0x93f   :  { %2794 = vpow2.f32 %v1572_v62 }
 0x942   :  { %v1560_v10 = vpop.xlane.xlu2 %1559 }
 0x943   :  { %v1567_v52 = vsub.f32 %v1555_v33, %v1560_v10 }
 0x945   :  { %v2795_v0 = vpop.eup %2794  ;;  %v1570_v60 = vmul.f32 1.442695, %v1567_v52 }
 0x946   :  { %v1579_v1 = vsel %vm1012_vm9, %v2795_v0, 0.0 }
 0x947   :  { %1580 = vadd.xlane.f32.xlu2 %v1579_v1  ;;  %2796 = vpow2.f32 %v1570_v60 }
 0x94d   :  { %v2797_v3 = vpop.eup %2796 }
 0x94e   :  { %v1576_v4 = vsel %vm1012_vm9, %v2797_v3, 0.0 }
 0x956   :  { %1577 = vadd.xlane.f32.xlu1 %v1576_v4 }
 0x95f   :  { %1615 = vrot.lane.b32.xlu2 %v3394_v22, %s2907_s24 }
 0x967   :  { %2715 = vrot.lane.b32.xlu2 %v2714_v55, %s2914_s4 }
 0x96c   :  { %v1566_v5 = vpop.xlane.xlu0 %1565 }
 0x96d   :  { %v1569_v6 = vsub.f32 %v1557_v40, %v1566_v5  ;;  %v2666_v40 = vld [vmem:[%s3680_s12 + $0x10] sm:$0xff] }
 0x96f   :  { %v1574_v7 = vmul.f32 1.442695, %v1569_v6  ;;  %v2664_v6 = vld [vmem:[%s3680_s12] sm:$0xff] }
 0x970   :  { %1739 = vmatpush.bf16.msrb.mxu1 %v2664_v6  ;;  %v2679_v6 = vld [vmem:[%s3684_s16 + $0x14] sm:$0xf0] }
 0x971   :  { %2798 = vpow2.f32 %v1574_v7 }
 0x977   :  { %v2799_v11 = vpop.eup %2798 }
 0x978   :  { %v1582_v43 = vsel %vm1012_vm9, %v2799_v11, 0.0 }
 0x979   :  { %1583 = vadd.xlane.f32.xlu0 %v1582_v43 }
 0x986   :  { %v1410_v12 = vpop.xlane.xlu1 %1409 }
 0x987   :  { %2800 = vrcp.f32 %v1410_v12 }
 0x98d   :  { %1636 = vrot.lane.b32.xlu0 %v3376_v8, %s2907_s24  ;;  %v2801_v13 = vpop.eup %2800 }
 0x98e   :  { %v1416_v22 = vmul.f32 %v2801_v13, %v2793_v50 }
 0x990   :  { %v1419_v16 = vpack.c.bf16 %v1416_v22, %v1416_v22 }
 0x995   :  { %1594 = vrot.lane.b32.xlu0 %v3320_v48, %s2907_s24 }
 0x99e   :  { %v1463_v14 = vpop.permute.xlu1 %1462 }
 0x99f   :  { %v1468_v15 = vsel %vm1053_vm8, %v1463_v14, 0 }
 0x9a0   :  { %1477 = vmatpush.bf16.msrb.mxu2 %v1468_v15 }
 0x9a3   :  { %2505 = vmatmul.msk.bf16.vlgmr.msrb.gmra.mxu2 %vm1049_vm10, %v1419_v16 }
 0x9ba   :  { %v1581_v2 = vpop.xlane.xlu2 %1580 }
 0x9bb   :  { %2802 = vrcp.f32 %v1581_v2 }
 0x9c1   :  { %v2803_v17 = vpop.eup %2802 }
 0x9c2   :  { %v1589_v18 = vmul.f32 %v2803_v17, %v2795_v0  ;;  %v1616_v19 = vpop.permute.xlu2 %1615  ;;  %v2675_v17 = vld [vmem:[%s3681_s13 + $0x28] sm:$0xff] }
 0x9c3   :  { %v1621_v8 = vsel %vm1053_vm8, %v1616_v19, 0  ;;  %v2673_v19 = vld [vmem:[%s3681_s13 + $0x18] sm:$0xff] }
 0x9c4   :  { %v1592_v20 = vpack.c.bf16 %v1589_v18, %v1589_v18  ;;  %1630 = vmatpush.bf16.msrb.mxu3 %v1621_v8  ;;  %v2674_v18 = vld [vmem:[%s3681_s13 + $0x20] sm:$0xff]  ;;  %v2672_v8 = vld [vmem:[%s3681_s13 + $0x10] sm:$0xff] }
 0x9c7   :  { %2510 = vmatmul.msk.bf16.vlgmr.msrb.gmra.mxu3 %vm1049_vm10, %v1592_v20  ;;  %v2671_v20 = vld [vmem:[%s3681_s13 + $0x8] sm:$0xff] }
 0x9c9   :  { %v1578_v47 = vpop.xlane.xlu1 %1577 }
 0x9ec   :  { %v1584_v48 = vpop.xlane.xlu0 %1583 }
 0x9ed   :  { %2804 = vrcp.f32 %v1584_v48  ;;  %v2670_v48 = vld [vmem:[%s3681_s13] sm:$0xff]  ;;  %s2917_s13 = smov 96  }
 0x9ee   :  { %2806 = vrcp.f32 %v1578_v47 }
 0x9f3   :  { %v2805_v21 = vpop.eup %2804 }
 0x9f4   :  { %v1590_v23 = vmul.f32 %v2805_v21, %v2799_v11  ;;  %v2807_v59 = vpop.eup %2806 }
 0x9f5   :  { %v1588_v61 = vmul.f32 %v2807_v59, %v2797_v3 }
 0x9f6   :  { %v1593_v55 = vpack.c.bf16 %v1590_v23, %v1590_v23 }
 0x9f7   :  { %v1591_v28 = vpack.c.bf16 %v1588_v61, %v1588_v61 }
 0x9ff   :  { %v1637_v24 = vpop.permute.xlu0 %1636 }
 0xa00   :  { %v1642_v46 = vsel %vm1053_vm8, %v1637_v24, 0 }
 0xa01   :  { %1651 = vmatpush.bf16.msra.mxu0 %v1642_v46 }
 0xa04   :  { %2511 = vmatmul.msk.bf16.vlgmr.msra.gmra.mxu0 %vm1049_vm10, %v1593_v55  ;;  %v2733_v55 = vld [vmem:[%s3682_s14] ss:$0 sm:$0xff]  ;;  %s2337_s14 = sshll.u32 %s3691_s23, 4  ;;  %s2338_s14 = int_to_ptr.hbm [resolvable:$true] %s2337_s14 }
 0xa05   :  { %1871 = vmatpush.bf16.msrb.mxu0 %v2675_v17 }
 0xa07   :  { %v1595_v25 = vpop.permute.xlu0 %1594 }
 0xa08   :  { %v1600_v27 = vsel %vm1053_vm8, %v1595_v25, 0 }
 0xa09   :  { %1609 = vmatpush.bf16.msra.mxu2 %v1600_v27  ;;  %1872 = vmatpush.bf16.msrb.mxu0 %v2674_v18 }
 0xa0c   :  { %2509 = vmatmul.msk.bf16.vlgmr.msra.gmra.mxu2 %vm1049_vm10, %v1591_v28 }
 0xa0d   :  { %1766 = vmatpush.bf16.msrb.mxu2 %v2667_v37  ;;  %1873 = vmatpush.bf16.msrb.mxu0 %v2673_v19 }
 0xa11   :  { %1767 = vmatpush.bf16.msrb.mxu2 %v2666_v40  ;;  %1874 = vmatpush.bf16.msrb.mxu0 %v2672_v8  ;;  %v1935_v40 = vld [vmem:[%s3683_s15 + $0x18] sm:$0xff] }
 0xa12   :  { %1951 = vmatpush.msra.mxu1 %v1935_v40 }
 0xa15   :  { %1875 = vmatpush.bf16.msrb.mxu0 %v2671_v20 }
 0xa19   :  { %1876 = vmatpush.bf16.msrb.mxu0 %v2670_v48 }
 0xa26   :  { %v1479_v29 = vpop.f32.mrf.mxu2 }
 0xa27   :  { %v2719_v30 = vpack.i.bf16 %v1479_v29, %v3435_v36  ;;  %v2669_v36 = vld [vmem:[%s3680_s12 + $0x28] sm:$0xff]  ;;  %s2915_s12 = smov 32  }
 0xa28   :  { %1794 = vmatpush.bf16.msra.mxu3 %v2669_v36 }
 0xa29   :  { %2720 = vrot.lane.b32.xlu0 %v2719_v30, %s3716_s11 }
 0xa2c   :  { %1795 = vmatpush.bf16.msra.mxu3 %v2668_v41  ;;  %v2584_v41 = vld [vmem:[%s3684_s16 + $0x20] sm:$0xf] }
 0xa2e   :  { %v1481_v51 = vpop.f32.mrf.mxu2 }
 0xa31   :  { %1660 = vrot.lane.b32.xlu0 %v3380_v9, %s2914_s4 }
 0xa4a   :  { %v1632_v31 = vpop.f32.mrf.mxu3 }
 0xa52   :  { %v1634_v32 = vpop.f32.mrf.mxu3 }
 0xa81   :  { %v1653_v33 = vpop.f32.mrf.mxu0 }
 0xa82   :  { %v2724_v35 = vpack.i.bf16 %v1653_v33, %v1632_v31 }
 0xa84   :  { %2725 = vrot.lane.b32.xlu2 %v2724_v35, %s3717_s30 }
 0xa89   :  { %v1655_v38 = vpop.f32.mrf.mxu0 }
 0xa8c   :  { %1672 = vrot.lane.b32.xlu2 %v3429_v26, %s3716_s11  ;;  %v2716_v26 = vpop.permute.xlu2 %2715 }
 0xa8d   :  { %v2718_v45 = vunpack.i.h.bf16 %v2716_v26  ;;  %v2717_v49 = vunpack.i.l.bf16 %v2716_v26  ;;  %v2680_v26 = vld [vmem:[%s3684_s16 + $0x24] sm:$0xf] }
 0xa8f   :  { %v1611_v9 = vpop.f32.mrf.mxu2  ;;  %v1695_v57 = vsel %vm266_vm2, %v3371_v63, %v2718_v45  ;;  %v1694_v62 = vsel %vm266_vm2, %v3367_v53, %v2717_v49  ;;  %v2586_v45 = vld [vmem:[%s3684_s16 + $0x30] sm:$0xf0] }
 0xa90   :  { %1684 = vrot.lane.b32.xlu0 %v1611_v9, %s3717_s30  ;;  %v1934_v49 = vld [vmem:[%s3683_s15 + $0x10] sm:$0xff] }
 0xa91   :  { %1952 = vmatpush.msra.mxu1 %v1934_v49  ;;  %v2918_v49 = vmov 2  }
 0xa92   :  { %2730 = vset.pattern.permute.xlu1 %v2918_v49  ;;  %v2691_v49 = vld [vmem:[%s3688_s20 + $0x38] sm:$0xff] }
 0xa97   :  { %v1613_v39 = vpop.f32.mrf.mxu2 }
 0xa9b   :  { %v2721_v44 = vpop.permute.xlu0 %2720 }
 0xa9c   :  { %v2723_v50 = vunpack.i.h.bf16 %v2721_v44  ;;  %v2722_v54 = vunpack.i.l.bf16 %v2721_v44  ;;  %v2585_v44 = vor.u32 %v2682_v42, %v2584_v41 }
 0xa9e   :  { %v1697_v0 = vsel %vm486_vm5, %v1694_v62, %v2722_v54  ;;  %v1698_v1 = vsel %vm486_vm5, %v1695_v57, %v2723_v50  ;;  %v2589_v50 = vor.u32 %v2680_v26, %v2586_v45  ;;  %2087 = vmatpush.bf16.msra.mxu2 %v2585_v44  ;;  %v1933_v54 = vld [vmem:[%s3683_s15 + $0x8] sm:$0xff]  ;;  %v2678_v57 = vld [vmem:[%s3684_s16 + $0xc] sm:$0xf0] }
 0xa9f   :  { %1953 = vmatpush.msra.mxu1 %v1933_v54 }
 0xaa0   :  { %2100 = vmatpush.bf16.msrb.mxu3 %v2589_v50  ;;  %v2919_v50 = vmov 1  }
 0xaa1   :  { %2729 = vset.pattern.permute.xlu0 %v2919_v50 }
 0xaa3   :  { %v1661_v53 = vpop.permute.xlu0 %1660 }
 0xaa4   :  { %v1693_v7 = vsel %vm266_vm2, %v3358_v34, %v1661_v53  ;;  %vm2163_vm2 = vcmask 1045504  }
 0xade   :  { %v2726_v56 = vpop.permute.xlu2 %2725 }
 0xadf   :  { %v2728_v10 = vunpack.i.h.bf16 %v2726_v56  ;;  %v2727_v52 = vunpack.i.l.bf16 %v2726_v56  ;;  %v2568_v56 = vld [vmem:[%s3684_s16] sm:$0xf] }
 0xae0   :  { %v2569_v62 = vor.u32 %v2678_v57, %v2568_v56 }
 0xae1   :  { %v1701_v60 = vsel %vm629_vm7, %v1698_v1, %v2728_v10  ;;  %v1700_v3 = vsel %vm629_vm7, %v1697_v0, %v2727_v52  ;;  %v2676_v10 = vld [vmem:[%s3684_s16 + $0x4] sm:$0xf]  ;;  %v2570_v52 = vld [vmem:[%s3684_s16 + $0x10] sm:$0xf0] }
 0xae2   :  { %v1704_v4 = vpack.c.bf16 %v1701_v60, %v1701_v60  ;;  %v1703_v5 = vpack.c.bf16 %v1700_v3, %v1700_v3  ;;  %v1932_v0 = vld [vmem:[%s3683_s15] sm:$0xff]  ;;  %v2573_v1 = vor.u32 %v2676_v10, %v2570_v52  ;;  %v2592_v60 = vld [vmem:[%s3684_s16 + $0x28] sm:$0xf]  ;;  %v2683_v3 = vld [vmem:[%s3684_s16 + $0x34] sm:$0xf0]  ;;  %2088 = vmatpush.bf16.msra.mxu2 %v2569_v62  ;;  %v2920_v62 = vmov 3  }
 0xae3   :  { %1954 = vmatpush.msra.mxu1 %v1932_v0  ;;  %v2921_v52 = vmov 6.0  }
 0xae4   :  { %2529 = vmatmul.msk.bf16.vlgmr.msrb.gmra.mxu2 %vm110_vm0, %v1703_v5  ;;  %2538 = vmatmul.msk.bf16.vlgmr.msra.gmra.mxu3 %vm110_vm0, %v1704_v4  ;;  %v2593_v4 = vor.u32 %v2683_v3, %v2592_v60  ;;  %v2576_v5 = vld [vmem:[%s3684_s16 + $0x8] sm:$0xf] }
 0xae5   :  { %2101 = vmatpush.bf16.msrb.mxu3 %v2573_v1 }
 0xae6   :  { %v1673_v63 = vpop.permute.xlu2 %1672 }
 0xae7   :  { %v1696_v11 = vsel %vm486_vm5, %v1693_v7, %v1673_v63  ;;  %v2577_v63 = vor.u32 %v2679_v6, %v2576_v5  ;;  %v2028_v5 = vld [vmem:[%s3685_s17] sm:$0xf] }
 0xae9   :  { %2282 = vmatpush.bf16.msra.mxu3 %v2691_v49 }
 0xb02   :  { %v1685_v43 = vpop.permute.xlu0 %1684 }
 0xb03   :  { %v1699_v12 = vsel %vm629_vm7, %v1696_v11, %v1685_v43  ;;  %v2681_v11 = vld [vmem:[%s3684_s16 + $0x2c] sm:$0xf]  ;;  %v2594_v43 = vld [vmem:[%s3684_s16 + $0x38] sm:$0xf0] }
 0xb04   :  { %v1702_v13 = vpack.c.bf16 %v1699_v12, %v1699_v12  ;;  %v2677_v12 = vld [vmem:[%s3684_s16 + $0xc] sm:$0xf] }
 0xb06   :  { %2520 = vmatmul.msk.bf16.vlgmr.msrb.gmra.mxu1 %vm110_vm0, %v1702_v13  ;;  %v2597_v13 = vor.u32 %v2681_v11, %v2594_v43  ;;  %v2031_v11 = vperm.slane %v2028_v5, 1 }
 0xb07   :  { %2113 = vmatpush.bf16.msrb.mxu1 %v2593_v4 }
 0xb08   :  { %2126 = vmatpush.bf16.msrb.mxu2 %v2597_v13  ;;  %v2032_v13 = vperm.slane %v2028_v5, 2 }
 0xb0b   :  { %2114 = vmatpush.bf16.msrb.mxu1 %v2577_v63 }
 0xb67   :  { %v1769_v22 = vpop.f32.mrf.mxu2  ;;  %v1797_v14 = vpop.f32.mrf.mxu3 }
 0xb68   :  { %1802 = vrot.lane.b32.xlu2 %v1769_v22, %s2915_s12  ;;  %1806 = vrot.lane.b32.xlu0 %v1797_v14, %s2916_s7  ;;  %v2578_v22 = vld [vmem:[%s3684_s16 + $0x18] sm:$0xf0]  ;;  %s2313_s16 = sshll.u32 %s2923_s1, 4  ;;  %s2314_s16 = int_to_ptr.vmem [resolvable:$true] %s2313_s16 }
 0xb69   :  { %v2581_v14 = vor.u32 %v2677_v12, %v2578_v22  ;;  %v2157_v12 = vlaneseq }
 0xb6b   :  { %2127 = vmatpush.bf16.msrb.mxu2 %v2581_v14  ;;  %v2033_v14 = vperm.slane %v2028_v5, 3 }
 0xb6f   :  { %v1771_v15 = vpop.f32.mrf.mxu2  ;;  %v1799_v16 = vpop.f32.mrf.mxu3 }
 0xb83   :  { %v3503_v2 = vpop.f32.mrf.mxu1 }
 0xb8b   :  { %v1743_v34 = vpop.f32.mrf.mxu1 }
 0xbc2   :  { %v1803_v47 = vpop.permute.xlu2 %1802 }
 0xbc3   :  { %v1809_v21 = vsel %vm110_vm0, %v3503_v2, %v1803_v47 }
 0xbda   :  { %v1807_v23 = vpop.permute.xlu0 %1806 }
 0xbdb   :  { %v1811_v24 = vsel %vm1810_vm11, %v1809_v21, %v1807_v23 }
 0xbdc   :  { %v1812_v46 = vpack.c.bf16 %v1811_v24, %v1811_v24 }
 0xbde   :  { %2563 = vmatmul.msk.bf16.vlgmr.msrb.gmra.mxu0 %vm1865_vm12, %v1812_v46 }
 0xc5b   :  { %v1878_v59 = vpop.f32.mrf.mxu0 }
 0xc5c   :  { %v1879_v61 = vadd.f32 %v2733_v55, %v1878_v59 }
 0xc5e   :  { %1887 = vrot.lane.b32.xlu1 %v1879_v61, %s2916_s7  ;;  %1883 = vrot.lane.b32.xlu2 %v1879_v61, %s2917_s13 }
 0xc63   :  { %v1880_v25 = vpop.f32.mrf.mxu0 }
 0xcb8   :  { %v1884_v27 = vpop.permute.xlu2 %1883 }
 0xcb9   :  { %v1886_v28 = vmax.f32 %v1879_v61, %v1884_v27 }
 0xcd0   :  { %v1888_v29 = vpop.permute.xlu1 %1887 }
 0xcd1   :  { %v1890_v30 = vmax.f32 %v1886_v28, %v1888_v29 }
 0xcd3   :  { %1901 = vrot.lane.b32.xlu2 %v1890_v30, %s2916_s7  ;;  %1895 = vrot.lane.b32.xlu0 %v1890_v30, %s2915_s12  ;;  %v1891_v53 = vsub.f32 %v1879_v61, %v1890_v30 }
 0xcd5   :  { %v1892_v7 = vmul.f32 1.442695, %v1891_v53 }
 0xd2d   :  { %v1902_v51 = vpop.permute.xlu2 %1901 }
 0xd2e   :  { %v1904_v31 = vsub.f32 %v1879_v61, %v1902_v51 }
 0xd30   :  { %v1905_v32 = vmul.f32 1.442695, %v1904_v31 }
 0xd32   :  { %2808 = vpow2.f32 %v1905_v32 }
 0xd38   :  { %v2809_v33 = vpop.eup %2808 }
 0xd39   :  { %1913 = vrot.lane.b32.xlu2 %v2809_v33, %s2916_s7  ;;  %v1925_v35 = vmul.f32 %v2809_v33, %v1807_v23 }
 0xd41   :  { %1927 = vrot.lane.b32.xlu2 %v1925_v35, %s2916_s7 }
 0xd45   :  { %v1896_v37 = vpop.permute.xlu0 %1895 }
 0xd46   :  { %v1898_v36 = vsub.f32 %v1879_v61, %v1896_v37 }
 0xd48   :  { %v1899_v38 = vmul.f32 1.442695, %v1898_v36 }
 0xd4a   :  { %2810 = vpow2.f32 %v1899_v38 }
 0xd4b   :  { %2812 = vpow2.f32 %v1892_v7  ;;  %v2030_v7 = vperm.slane %v2028_v5, 0 }
 0xd50   :  { %v2811_v9 = vpop.eup %2810 }
 0xd51   :  { %1908 = vrot.lane.b32.xlu0 %v2811_v9, %s2917_s13  ;;  %v1919_v39 = vmul.f32 %v2811_v9, %v1803_v47  ;;  %v2813_v15 = vpop.eup %2812 }
 0xd52   :  { %v1918_v19 = vmul.f32 %v2813_v15, %v3503_v2 }
 0xd59   :  { %1921 = vrot.lane.b32.xlu0 %v1919_v39, %s2917_s13 }
 0xd93   :  { %v1914_v16 = vpop.permute.xlu2 %1913 }
 0xd9b   :  { %v1928_v48 = vpop.permute.xlu2 %1927 }
 0xdc3   :  { %v1909_v34 = vpop.permute.xlu0 %1908 }
 0xdc4   :  { %v1911_v17 = vadd.f32 %v2813_v15, %v1909_v34 }
 0xdc6   :  { %v1916_v18 = vadd.f32 %v1914_v16, %v1911_v17 }
 0xdc8   :  { %2814 = vrcp.f32 %v1916_v18  ;;  %v2158_v18 = vand.u32 127, %v2157_v12 }
 0xdcb   :  { %v1922_v8 = vpop.permute.xlu0 %1921 }
 0xdcc   :  { %v1924_v20 = vadd.f32 %v1922_v8, %v1918_v19 }
 0xdce   :  { %v2815_v47 = vpop.eup %2814  ;;  %v1930_v21 = vadd.f32 %v1928_v48, %v1924_v20 }
 0xdd0   :  { %v1931_v23 = vmul.f32 %v2815_v47, %v1930_v21 }
 0xdd2   :  { %v2019_v24 = vpack.c.bf16 %v1931_v23, %v1931_v23  ;;  %2564 = vmatmul.msk.f32.vlgmr.msra.gmra.mxu1 %vm110_vm0, %v1931_v23 }
 0xdd4   :  { %2598 = vmatmul.msk.bf16.vlgmr.msra.gmra.mxu2 %vm110_vm0, %v2019_v24  ;;  %2599 = vmatmul.msk.bf16.vlgmr.msrb.gmra.mxu3 %vm110_vm0, %v2019_v24 }
 0xdda   :  { %2600 = vmatmul.msk.bf16.vlgmr.msrb.gmra.mxu1 %vm110_vm0, %v2019_v24 }
 0xde4   :  { %2601 = vmatmul.msk.bf16.vlgmr.msrb.gmra.mxu2 %vm110_vm0, %v2019_v24  ;;  %vm2159_vm0 = vcmp.lt.s32.totalorder %v2158_v18, 14 }
 0xe4f   :  { %v1956_v46 = vpop.f32.mrf.mxu1 }
 0xe50   :  { %v1960_v2 = vsel %vm1959_vm13, %v1956_v46, -inf }
 0xe51   :  { %1961 = vmax.xlane.f32.xlu0 %v1960_v2 }
 0xe57   :  { %v3600_v55 = vpop.f32.mrf.mxu2  ;;  %v3602_v59 = vpop.f32.mrf.mxu3 }
 0xe58   :  { %v3604_v61 = vpop.f32.mrf.mxu1  ;;  %v2091_v16 = vadd.f32 %v3600_v55, %v2030_v7  ;;  %v2104_v34 = vadd.f32 %v3602_v59, %v2031_v11  ;;  %v2684_v11 = vld [vmem:[%s3688_s20] sm:$0xff] }
 0xe59   :  { %v2117_v20 = vadd.f32 %v3604_v61, %v2032_v13 }
 0xe5f   :  { %v2092_v25 = vpop.f32.mrf.mxu2  ;;  %v2105_v27 = vpop.f32.mrf.mxu3 }
 0xe60   :  { %v2118_v28 = vpop.f32.mrf.mxu1 }
 0xe67   :  { %v3606_v29 = vpop.f32.mrf.mxu2 }
 0xe68   :  { %v2130_v23 = vadd.f32 %v3606_v29, %v2033_v14 }
 0xe6f   :  { %v2131_v30 = vpop.f32.mrf.mxu2 }
 0xe70   :  { %v2602_v30 = vsel %vm2159_vm0, 1.0, %v2910_v58 }
 0xec4   :  { %v1962_v51 = vpop.xlane.xlu0 %1961 }
 0xec5   :  { %v1963_v31 = vsub.f32 %v1956_v46, %v1962_v51 }
 0xec7   :  { %v1964_v32 = vmul.f32 1.442695, %v1963_v31 }
 0xec9   :  { %2816 = vpow2.f32 %v1964_v32 }
 0xecf   :  { %v2817_v33 = vpop.eup %2816 }
 0xed0   :  { %v1966_v35 = vsel %vm1959_vm13, %v2817_v33, 0.0 }
 0xed1   :  { %1967 = vadd.xlane.f32.xlu1 %v1966_v35 }
 0xf44   :  { %v1968_v37 = vpop.xlane.xlu1 %1967 }
 0xf45   :  { %2818 = vrcp.f32 %v1968_v37 }
 0xf4b   :  { %v2819_v36 = vpop.eup %2818 }
 0xf4c   :  { %v1970_v38 = vmul.f32 %v2819_v36, %v2817_v33 }
 0xf4e   :  { %v1971_v9 = vsel %vm1959_vm13, %v1970_v38, -inf  ;;  %v1988_v0 = vsel %vm1959_vm13, %v1970_v38, 0.0 }
 0xf4f   :  { %1972 = vmax.xlane.f32.xlu2 %v1971_v9  ;;  %v1989_v60 = vrot.slane %v1988_v0, 4 }
 0xf51   :  { %v1990_v53 = vadd.f32 %v1989_v60, %v1988_v0 }
 0xf53   :  { %v1991_v22 = vrot.slane %v1990_v53, 2 }
 0xf55   :  { %v1992_v21 = vadd.f32 %v1991_v22, %v1990_v53 }
 0xf57   :  { %v1993_v59 = vrot.slane %v1992_v21, 1 }
 0xf59   :  { %v1994_v33 = vadd.f32 %v1993_v59, %v1992_v21 }
 0xfc2   :  { %v1973_v39 = vpop.xlane.xlu2 %1972 }
 0xfc3   :  { %vm1974_vm14 = vcmp.ge.f32.partialorder %v1970_v38, %v1973_v39 }
 0xfc4   :  { %v1975_v40 = vsel %vm1974_vm14, -inf, %v1970_v38 }
 0xfc5   :  { %v1976_v41 = vsel %vm1959_vm13, %v1975_v40, -inf }
 0xfc6   :  { %1977 = vmax.xlane.f32.xlu0 %v1976_v41 }
0x1039   :  { %v1978_v42 = vpop.xlane.xlu0 %1977 }
0x103a   :  { %vm1979_vm15 = vcmp.ge.f32.partialorder %v1970_v38, %v1978_v42 }
0x103b   :  { %v2565_v26 = vsel %vm1979_vm15, 1.0, %v2910_v58 }
0x103c   :  { %v1982_v44 = vmul.f32 %v2565_v26, %v1970_v38  ;;  %v2003_v10 = vsel %vm1959_vm13, %v2565_v26, 0.0 }
0x103d   :  { %v2004_v1 = vrot.slane %v2003_v10, 4 }
0x103e   :  { %v1983_v45 = vsel %vm1959_vm13, %v1982_v44, 0.0 }
0x103f   :  { %1984 = vadd.xlane.f32.xlu1 %v1983_v45  ;;  %v2005_v4 = vadd.f32 %v2004_v1, %v2003_v10  ;;  %v2688_v10 = vld [vmem:[%s3688_s20 + $0x20] sm:$0xff] }
0x1041   :  { %v2006_v43 = vrot.slane %v2005_v4, 2 }
0x1043   :  { %v2007_v17 = vadd.f32 %v2006_v43, %v2005_v4  ;;  %v2735_v43 = vld [vmem:[%s3687_s19] ss:$0 sm:$0xff] }
0x1045   :  { %v2008_v2 = vrot.slane %v2007_v17, 1 }
0x1047   :  { %v2009_v61 = vadd.f32 %v2008_v2, %v2007_v17 }
0x10b2   :  { %v1985_v54 = vpop.xlane.xlu1 %1984 }
0x10b3   :  { %2820 = vrcp.f32 %v1985_v54  ;;  %v2690_v54 = vld [vmem:[%s3688_s20 + $0x30] sm:$0xff] }
0x10b4   :  { %2822 = vrcp.f32 %v2921_v52  ;;  %2283 = vmatpush.bf16.msra.mxu3 %v2690_v54  ;;  %v2687_v52 = vld [vmem:[%s3688_s20 + $0x18] sm:$0xff] }
0x10b9   :  { %v2821_v56 = vpop.eup %2820 }
0x10ba   :  { %v1987_v57 = vmul.f32 %v2821_v56, %v1982_v44  ;;  %v2823_v3 = vpop.eup %2822 }
0x10bb   :  { %v1996_v63 = vmul.f32 6.0, %v2823_v3  ;;  %vm2000_vm1 = vweird.f32 %v2823_v3 }
0x10bc   :  { %2146 = vperm.xlu1 %2730, %v1987_v57   ;;  %2140 = vperm.xlu0 %2729, %v1987_v57  }
0x10bd   :  { %2135 = vperm.xlu2 %2713, %v1987_v57   ;;  %v1997_v15 = vsub.f32 1.0, %v1996_v63  ;;  %v2734_v63 = vld [vmem:[%s3686_s18] ss:$0 sm:$0xff] }
0x10bf   :  { %v1998_v46 = vmul.f32 %v2823_v3, %v1997_v15 }
0x10c1   :  { %v1999_v51 = vadd.f32 %v2823_v3, %v1998_v46 }
0x10c3   :  { %v2001_v35 = vsel %vm2000_vm1, %v2823_v3, %v1999_v51  ;;  %v2686_v3 = vld [vmem:[%s3688_s20 + $0x10] sm:$0xff] }
0x10c4   :  { %2732 = vset.pattern.permute.xlu0 %v2920_v62  ;;  %v2010_v37 = vmul.f32 %v2009_v61, %v2001_v35  ;;  %v2002_v36 = vmul.f32 %v2001_v35, %v1994_v33 }
0x10c5   :  { %2731 = vset.pattern.permute.xlu2 %v2920_v62  ;;  %v2689_v62 = vld [vmem:[%s3688_s20 + $0x28] sm:$0xff] }
0x10c6   :  { %2152 = vperm.xlu2 %2731, %v1987_v57   ;;  %v2011_v38 = vmul.f32 %v2010_v37, %v2002_v36  ;;  %2284 = vmatpush.bf16.msra.mxu3 %v2689_v62 }
0x10c8   :  { %v2013_v9 = vsel %vm2012_vm3, %v2011_v38, 0.0 }
0x10ca   :  { %2285 = vmatpush.bf16.msra.mxu3 %v2688_v10 }
0x10ce   :  { %2286 = vmatpush.bf16.msra.mxu3 %v2687_v52 }
0x10d2   :  { %2287 = vmatpush.bf16.msra.mxu3 %v2686_v3 }
0x1117   :  { %v2136_v6 = vpop.permute.xlu2 %2135 }
0x1118   :  { %v2138_v48 = vmul.f32 %v2136_v6, %v2091_v16  ;;  %v2685_v6 = vld [vmem:[%s3688_s20 + $0x8] sm:$0xff]  ;;  %s2326_s20 = sshll.u32 %s3690_s22, 4  ;;  %s2924_s22 = smov [#allocation10]   ;;  %s2327_s20 = int_to_ptr.hbm [resolvable:$true] %s2326_s20 }
0x1119   :  { %2288 = vmatpush.bf16.msra.mxu3 %v2685_v6  ;;  %s2335_s9 = sshll.u32 %s2924_s22, 4  ;;  %s2336_s9 = int_to_ptr.vmem [resolvable:$true] %s2335_s9 }
0x111d   :  { %2289 = vmatpush.bf16.msra.mxu3 %v2684_v11 }
0x1120   :  { %v2153_v24 = vpop.permute.xlu2 %2152 }
0x1121   :  { %v2155_v55 = vmul.f32 %v2153_v24, %v2130_v23 }
0x112e   :  { %v2147_v19 = vpop.permute.xlu1 %2146  ;;  %v2141_v8 = vpop.permute.xlu0 %2140 }
0x112f   :  { %v2143_v47 = vmul.f32 %v2141_v8, %v2104_v34  ;;  %v2149_v25 = vmul.f32 %v2147_v19, %v2117_v20 }
0x1131   :  { %v2144_v27 = vadd.f32 %v2143_v47, %v2138_v48 }
0x1133   :  { %v2150_v28 = vadd.f32 %v2149_v25, %v2144_v27 }
0x1135   :  { %v2156_v31 = vadd.f32 %v2155_v55, %v2150_v28 }
0x1137   :  { %v2162_v32 = vmul.f32 %v2602_v30, %v2156_v31 }
0x1139   :  { %v2164_v29 = vsel %vm2163_vm2, %v2162_v32, 0.0 }
0x113a   :  { %2165 = vadd.xlane.f32.xlu1 %v2164_v29 }
0x1142   :  { %2014 = vadd.xlane.f32.xlu1 %v2013_v9 }
0x11ad   :  { %v2166_v39 = vpop.xlane.xlu1 %2165 }
0x11ae   :  { %v2167_v40 = vmul.f32 0.071428575, %v2166_v39 }
0x11b0   :  { %v2168_v58 = vsub.f32 %v2156_v31, %v2167_v40 }
0x11b2   :  { %v2169_v41 = vmul.f32 %v2602_v30, %v2168_v58 }
0x11b4   :  { %v2170_v42 = vmul.f32 %v2169_v41, %v2169_v41 }
0x11b5   :  { %v2015_v26 = vpop.xlane.xlu1 %2014 }
0x11b6   :  { %v2016_v44 = vmul.f32 4.0, %v2015_v26  ;;  %v2171_v45 = vsel %vm2163_vm2, %v2170_v42, 0.0 }
0x11b7   :  { %2172 = vadd.xlane.f32.xlu2 %v2171_v45 }
0x11b8   :  { %2018 = vst.msk [vmem:[#allocation8] sm:$0x1] %vm2017_vm4, %v2016_v44 }
0x11b9   :  { %2329 = dma.vmem_to_hbm [thread:$0]  %s2325_s5, 16, %s2327_s20, [#allocation9]  }
0x122a   :  { %v2173_v50 = vpop.xlane.xlu2 %2172 }
0x122b   :  { %v2174_v56 = vmul.f32 0.071428575, %v2173_v50 }
0x122d   :  { %v2175_v57 = vadd.f32 1e-05, %v2174_v56 }
0x122f   :  { %2824 = vrsqrt.f32 %v2175_v57  ;;  %vm2182_vm6 = vweird.f32 %v2175_v57 }
0x1235   :  { %v2825_v0 = vpop.eup %2824 }
0x1236   :  { %v2177_v1 = vmul.f32 %v2825_v0, %v2175_v57  ;;  %vm2183_vm5 = vweird.f32 %v2825_v0 }
0x1237   :  { %vm2184_vm7 = vmor %vm2182_vm6, %vm2183_vm5 }
0x1238   :  { %v2178_v60 = vmul.f32 %v2825_v0, %v2177_v1 }
0x123a   :  { %v2179_v4 = vmul.f32 0.5, %v2178_v60 }
0x123c   :  { %v2180_v5 = vsub.f32 1.5, %v2179_v4 }
0x123e   :  { %v2181_v53 = vmul.f32 %v2825_v0, %v2180_v5 }
0x1240   :  { %v2185_v7 = vsel %vm2184_vm7, %v2825_v0, %v2181_v53 }
0x1241   :  { %v2186_v12 = vmul.f32 %v2185_v7, %v2168_v58 }
0x1243   :  { %v2191_v13 = vmul.f32 %v2734_v63, %v2186_v12 }
0x1245   :  { %v2196_v22 = vadd.f32 %v2735_v43, %v2191_v13 }
0x1247   :  { %v2603_v14 = vmul.f32 -1.442695, %v2196_v22  ;;  %2197 = vst [vmem:[#allocation6] sm:$0x3f] %v2196_v22 }
0x1248   :  { %2318 = dma.vmem_to_hbm [thread:$0]  %s2314_s16, 128, %s2316_s8, [#allocation7]  }
0x1249   :  { %2826 = vpow2.f32 %v2603_v14 }
0x124f   :  { %v2827_v15 = vpop.eup %2826 }
0x1250   :  { %v2201_v16 = vadd.f32 1.0, %v2827_v15 }
0x1252   :  { %2828 = vrcp.f32 %v2201_v16  ;;  %v2213_v19 = vand.u32 2147483648, %v2201_v16  ;;  %v2211_v20 = vand.u32 2147483647, %v2201_v16  ;;  %vm2207_vm9 = vweird.f32 %v2201_v16 }
0x1254   :  { %v2214_v47 = vor.u32 1.1754944e-38, %v2213_v19  ;;  %vm2212_vm11 = vcmp.eq.f32.partialorder %v2211_v20, 8.507059e+37 }
0x1258   :  { %v2829_v34 = vpop.eup %2828 }
0x1259   :  { %v2203_v17 = vmul.f32 %v2829_v34, %v2201_v16  ;;  %vm2208_vm8 = vweird.f32 %v2829_v34 }
0x125a   :  { %vm2209_vm10 = vmor %vm2207_vm9, %vm2208_vm8 }
0x125b   :  { %v2204_v18 = vsub.f32 1.0, %v2203_v17 }
0x125d   :  { %v2205_v8 = vmul.f32 %v2829_v34, %v2204_v18 }
0x125f   :  { %v2206_v48 = vadd.f32 %v2829_v34, %v2205_v8 }
0x1261   :  { %v2210_v21 = vsel %vm2209_vm10, %v2829_v34, %v2206_v48 }
0x1262   :  { %v2215_v23 = vsel %vm2212_vm11, %v2214_v47, %v2210_v21 }
0x1263   :  { %v2217_v24 = vpack.c.bf16 %v2215_v23, %v2215_v23 }
0x1265   :  { %2290 = vmatmul.bf16.vlgmr.msra.gmra.mxu3 %v2217_v24 }
0x12e8   :  { %v2291_v46 = vpop.f32.mrf.mxu3 }
0x12e9   :  { %v2295_v2 = vmul.f32 %v2291_v46, %v2215_v23 }
0x12eb   :  { %v2296_v25 = vsel %vm2163_vm2, %v2295_v2, 0.0 }
0x12ec   :  { %2297 = vadd.xlane.f32.xlu0 %v2296_v25 }
0x12f0   :  { %v2293_v27 = vpop.f32.mrf.mxu3 }
0x135f   :  { %v2298_v55 = vpop.xlane.xlu0 %2297 }
0x1360   :  { %v2299_v28 = vsel %vm2163_vm2, %v2298_v55, 0.0 }
0x1361   :  { %v2300_v59 = vrot.slane %v2299_v28, 4 }
0x1363   :  { %v2301_v30 = vadd.f32 %v2300_v59, %v2299_v28 }
0x1365   :  { %v2302_v51 = vrot.slane %v2301_v30, 2 }
0x1367   :  { %v2303_v31 = vadd.f32 %v2302_v51, %v2301_v30 }
0x1369   :  { %v2304_v61 = vrot.slane %v2303_v31, 1 }
0x136b   :  { %v2305_v32 = vadd.f32 %v2304_v61, %v2303_v31 }
0x136d   :  { %v2306_v33 = vmul.f32 0.0005, %v2305_v32 }
0x136f   :  { %2307 = vst.msk [vmem:[#allocation10] sm:$0x1] %vm2017_vm4, %v2306_v33 }
0x1370   :  { %2340 = dma.vmem_to_hbm [thread:$0]  %s2336_s9, 16, %s2338_s14, [#allocation9]  }
0x1371   :  { %2902 = dma.done.wait [#allocation7], 128  }
0x1372   :  { %2903 = vsyncadd [#allocation7], 4294967168 }
0x1373   :  { %2904 = dma.done.wait [#allocation9], 32  }
0x1374   :  { %2905 = vsyncadd [#allocation9], 4294967264 }
0x1375   :  { %2353 = vsyncpa [#allocation7], 1 }
0x1376   :  { %2354 = vsyncpa [#allocation9], 1 }

</bundles_post_ra>
